<compile_context>
chip_gen: v5e
topology: v5e:2x2
jax: 0.10.0
libtpu: 0.0.40
codegen_flags: <defaults>
</compile_context>

<pallas_src>
import functools

import jax
import jax.numpy as jnp
from jax.experimental import pallas as pl
from jax.experimental.pallas import tpu as pltpu

D_MODEL = 32
D_FFN = 1024
F_HALF = D_FFN // 2
EPS = 1e-5  # PyTorch LayerNorm default


def _round_up(n, m):
    return ((n + m - 1) // m) * m


def _layernorm(x, gamma, beta):
    # Fused single pass: E[x] and E[x^2] together (one reduction sweep each).
    mu = jnp.mean(x, axis=-1, keepdims=True)
    mu2 = jnp.mean(x * x, axis=-1, keepdims=True)
    var = jnp.maximum(mu2 - mu * mu, 0.0)
    return (x - mu) * jax.lax.rsqrt(var + EPS) * gamma + beta


def _chip_config():
    """Per-generation tiling / precision knobs (conservative fallback)."""
    kind = ""
    try:
        kind = jax.devices()[0].device_kind.lower()
    except Exception:
        pass
    if "v7" in kind or "7x" in kind:
        # 64 MiB physical VMEM, 2 TensorCores -> cap VMEM, keep >= 2 grid blocks.
        return dict(bf16_glu=True, m_target=1024, vmem_bytes=48 << 20, min_blocks=2)
    if "v6" in kind:
        return dict(bf16_glu=True, m_target=2048, vmem_bytes=64 << 20, min_blocks=1)
    if "v5e" in kind or "v5 lite" in kind or "v5lite" in kind:
        # No bf16 VPU/EUP on v5e: keep all elementwise math f32.
        return dict(bf16_glu=False, m_target=2048, vmem_bytes=64 << 20, min_blocks=1)
    return dict(bf16_glu=False, m_target=1024, vmem_bytes=32 << 20, min_blocks=1)


def _pick_m_block(n_rows, cfg):
    rows8 = _round_up(n_rows, 8)
    if rows8 <= cfg["m_target"]:
        blocks = cfg["min_blocks"]
        if blocks > 1 and rows8 >= 8 * blocks:
            # Split small problems so both v7x TensorCores get a block.
            return _round_up((rows8 + blocks - 1) // blocks, 8)
        return rows8
    return cfg["m_target"]


def decoder_layer_kernel(x_ref,              # VMEM (M, D)  f32  rows of tgt*(1+sigmoid(.))
                         g1_ref, b1_ref,     # VMEM (1, D)  f32  norm1 gamma / beta
                         w1a_ref, w1g_ref,   # VMEM (D, F)  bf16 linear1 halves (transposed)
                         b1a_ref, b1g_ref,   # VMEM (1, F)       linear1 bias halves
                         w2_ref, b2_ref,     # VMEM (F, D) bf16, (1, D) f32  linear2 (half)
                         g3_ref, b3_ref,     # VMEM (1, D)  f32  norm3 gamma / beta
                         o_ref,              # VMEM (M, D)  f32
                         *, bf16_glu):
    # cross_attn + residual (tgt * (1 + sigmoid)) already folded into x by the wrapper.
    t = _layernorm(x_ref[...], g1_ref[0], b1_ref[0])             # (M, D) f32

    # --- FFN: split linear1 -> GLU -> linear2(half) -> residual -> norm3 ---
    tb = t.astype(jnp.bfloat16)                                  # bf16 MXU operands
    if bf16_glu:
        # v6e / v7x: bf16 VPU + EUP -> keep the wide (M, F) GLU stage in bf16.
        a = jnp.dot(tb, w1a_ref[...], preferred_element_type=jnp.bfloat16) + b1a_ref[0]
        g = jnp.dot(tb, w1g_ref[...], preferred_element_type=jnp.bfloat16) + b1g_ref[0]
        y = a * jax.nn.sigmoid(g)                                # bf16, feeds MXU directly
    else:
        # v5e / unknown: no bf16 VPU/EUP -> f32 elementwise math, cast once for dot2.
        a = jnp.dot(tb, w1a_ref[...], preferred_element_type=jnp.float32) + b1a_ref[0]
        g = jnp.dot(tb, w1g_ref[...], preferred_element_type=jnp.float32) + b1g_ref[0]
        y = (a * jax.nn.sigmoid(g)).astype(jnp.bfloat16)
    z = jnp.dot(y, w2_ref[...], preferred_element_type=jnp.float32) + b2_ref[0]
    o_ref[...] = _layernorm(t + z, g3_ref[0], b3_ref[0])         # (M, D) f32


def decoder_layer(tgt, params):
    B, C, W, D = tgt.shape
    assert D == D_MODEL
    cfg = _chip_config()
    n_rows = B * C * W

    xf = tgt.astype(jnp.float32)
    # Hoisted channel attention + residual: only B*C scalars of real work; the
    # broadcast multiply fuses with the reshape / pad ops below in XLA.
    m_bc = jnp.mean(xf, axis=(2, 3), keepdims=True)                       # (B, C, 1, 1)
    s_bc = jax.nn.sigmoid(params["conv_w"] * m_bc + params["conv_b"])
    x = (xf * (1.0 + s_bc)).reshape(n_rows, D)

    m_block = _pick_m_block(n_rows, cfg)
    n_pad = _round_up(n_rows, m_block)
    if n_pad != n_rows:
        x = jnp.pad(x, ((0, n_pad - n_rows), (0, 0)))
    grid = (n_pad // m_block,)

    # --- parameter prep: bf16 matmul weights; bias/LN params in the matching dtype ---
    bias_dt = jnp.bfloat16 if cfg["bf16_glu"] else jnp.float32
    g1 = params["g1"].reshape(1, D).astype(jnp.float32)
    b1 = params["b1"].reshape(1, D).astype(jnp.float32)
    w1a = params["w1"][:F_HALF].T.astype(jnp.bfloat16)            # (D, F)
    w1g = params["w1"][F_HALF:].T.astype(jnp.bfloat16)            # (D, F)
    b1a = params["bias1"][:F_HALF].reshape(1, F_HALF).astype(bias_dt)
    b1g = params["bias1"][F_HALF:].reshape(1, F_HALF).astype(bias_dt)
    w2 = params["w2"][:, :F_HALF].T.astype(jnp.bfloat16)          # (F, D)  (see TODO above)
    b2 = params["bias2"].reshape(1, D).astype(jnp.float32)
    g3 = params["g3"].reshape(1, D).astype(jnp.float32)
    b3 = params["b3"].reshape(1, D).astype(jnp.float32)

    flops = 3 * 2 * n_pad * D * F_HALF                   # two (M,32)@(32,512) + (M,512)@(512,32)
    transcendentals = n_pad * F_HALF + 2 * n_pad         # GLU sigmoids + layernorm rsqrts
    bytes_accessed = (2 * n_pad * D * 4                  # x, out
                      + 3 * D * F_HALF * 2               # bf16 weights
                      + (2 * F_HALF + 6 * D) * 4)        # biases / norm params

    def _call(single_buffer_consts):
        if single_buffer_consts:
            # Constants never change across grid steps -> single-buffer them.
            const = lambda shape: pl.BlockSpec(shape, lambda i: (0, 0),
                                               pipeline_mode=pl.Buffered(1))
        else:
            const = lambda shape: pl.BlockSpec(shape, lambda i: (0, 0))
        return pl.pallas_call(
            functools.partial(decoder_layer_kernel, bf16_glu=cfg["bf16_glu"]),
            out_shape=jax.ShapeDtypeStruct((n_pad, D), jnp.float32),
            grid=grid,
            in_specs=[
                pl.BlockSpec((m_block, D), lambda i: (i, 0)),        # x rows
                const((1, D)), const((1, D)),                        # norm1
                const((D, F_HALF)), const((D, F_HALF)),              # linear1 halves (bf16)
                const((1, F_HALF)), const((1, F_HALF)),              # linear1 bias halves
                const((F_HALF, D)), const((1, D)),                   # linear2 (half, bf16) + bias
                const((1, D)), const((1, D)),                        # norm3
            ],
            out_specs=pl.BlockSpec((m_block, D), lambda i: (i, 0)),
            compiler_params=pltpu.CompilerParams(
                dimension_semantics=("parallel",),
                vmem_limit_bytes=cfg["vmem_bytes"],
            ),
            cost_estimate=pl.CostEstimate(
                flops=flops,
                transcendentals=transcendentals,
                bytes_accessed=bytes_accessed,
            ),
        )(x, g1, b1, w1a, w1g, b1a, b1g, w2, b2, g3, b3)

    try:
        out = _call(True)
    except Exception:                     # older jax without pipeline_mode support
        out = _call(False)

    return out[:n_rows].reshape(B, C, W, D)


def reference(tgt, params):
    """Pure-JAX f32 reference mirroring the (fixed) PyTorch forward in eval mode."""
    m = jnp.mean(tgt, axis=(2, 3), keepdims=True)
    s = jax.nn.sigmoid(params["conv_w"] * m + params["conv_b"])
    t = tgt + tgt * s
    t = _layernorm(t, params["g1"], params["b1"])
    h = t @ params["w1"].T + params["bias1"]
    a, g = h[..., :F_HALF], h[..., F_HALF:]
    y = a * jax.nn.sigmoid(g)
    z = y @ params["w2"][:, :F_HALF].T + params["bias2"]
    return _layernorm(t + z, params["g3"], params["b3"])


def init_params(key):
    ks = jax.random.split(key, 6)
    return {
        "conv_w": jax.random.normal(ks[0], ()) * 0.5,                  # Conv2d(1,1,1) weight
        "conv_b": jax.random.normal(ks[1], ()) * 0.5,                  # Conv2d(1,1,1) bias
        "g1": jnp.ones((D_MODEL,), jnp.float32),
        "b1": jnp.zeros((D_MODEL,), jnp.float32),
        "w1": jax.random.normal(ks[2], (D_FFN, D_MODEL)) * 0.05,       # Linear(32, 1024)
        "bias1": jax.random.normal(ks[3], (D_FFN,)) * 0.05,
        "w2": jax.random.normal(ks[4], (D_MODEL, D_FFN)) * 0.05,       # Linear(1024, 32)
        "bias2": jax.random.normal(ks[5], (D_MODEL,)) * 0.05,
        "g3": jnp.ones((D_MODEL,), jnp.float32),
        "b3": jnp.zeros((D_MODEL,), jnp.float32),
    }


if __name__ == "__main__":
    key = jax.random.PRNGKey(0)
    pkey, xkey = jax.random.split(key)
    params = jax.tree.map(lambda a: a.astype(jnp.float32), init_params(pkey))

    B, C, W = 2, 4, 8
    tgt = jax.random.normal(xkey, (B, C, W, D_MODEL), jnp.float32)

    out = jax.block_until_ready(decoder_layer(tgt, params))
    ref = reference(tgt, params)
    assert out.shape == tgt.shape

    # bf16 MXU operands (and, on v6e/v7x, a bf16 GLU stage) vs. a pure f32 reference.
    tol = 5e-2 if _chip_config()["bf16_glu"] else 2e-2
    max_err = float(jnp.max(jnp.abs(out - ref)))
    assert jnp.allclose(out, ref, atol=tol, rtol=tol), max_err
    print("KERNEL_OK")
</pallas_src>

<mosaic_0001>
module attributes {stable_mosaic.version = 11 : i64} {
  func.func @decoder_layer_kernel(%arg0: i32, %arg1: memref<64x32xf32, #tpu.memory_space<vmem>>, %arg2: memref<1x32xf32, #tpu.memory_space<vmem>>, %arg3: memref<1x32xf32, #tpu.memory_space<vmem>>, %arg4: memref<32x512xbf16, #tpu.memory_space<vmem>>, %arg5: memref<32x512xbf16, #tpu.memory_space<vmem>>, %arg6: memref<1x512xf32, #tpu.memory_space<vmem>>, %arg7: memref<1x512xf32, #tpu.memory_space<vmem>>, %arg8: memref<512x32xbf16, #tpu.memory_space<vmem>>, %arg9: memref<1x32xf32, #tpu.memory_space<vmem>>, %arg10: memref<1x32xf32, #tpu.memory_space<vmem>>, %arg11: memref<1x32xf32, #tpu.memory_space<vmem>>, %arg12: memref<64x32xf32, #tpu.memory_space<vmem>>) attributes {dimension_semantics = [#tpu.dimension_semantics<parallel>], iteration_bounds = array<i64: 1>, scalar_prefetch = 0 : i64, scratch_operands = 0 : i64, tpu.core_type = #tpu.core_type<tc>, window_params = [{transform_indices = @transform_0, window_bounds = array<i64: 64, 32>}, {pipeline_mode = #tpu.pipeline_mode<synchronous>, transform_indices = @transform_1, window_bounds = array<i64: 1, 32>}, {pipeline_mode = #tpu.pipeline_mode<synchronous>, transform_indices = @transform_2, window_bounds = array<i64: 1, 32>}, {pipeline_mode = #tpu.pipeline_mode<synchronous>, transform_indices = @transform_3, window_bounds = array<i64: 32, 512>}, {pipeline_mode = #tpu.pipeline_mode<synchronous>, transform_indices = @transform_4, window_bounds = array<i64: 32, 512>}, {pipeline_mode = #tpu.pipeline_mode<synchronous>, transform_indices = @transform_5, window_bounds = array<i64: 1, 512>}, {pipeline_mode = #tpu.pipeline_mode<synchronous>, transform_indices = @transform_6, window_bounds = array<i64: 1, 512>}, {pipeline_mode = #tpu.pipeline_mode<synchronous>, transform_indices = @transform_7, window_bounds = array<i64: 512, 32>}, {pipeline_mode = #tpu.pipeline_mode<synchronous>, transform_indices = @transform_8, window_bounds = array<i64: 1, 32>}, {pipeline_mode = #tpu.pipeline_mode<synchronous>, transform_indices = @transform_9, window_bounds = array<i64: 1, 32>}, {pipeline_mode = #tpu.pipeline_mode<synchronous>, transform_indices = @transform_10, window_bounds = array<i64: 1, 32>}, {transform_indices = @transform_11, window_bounds = array<i64: 64, 32>}]} {
    %c0 = arith.constant 0 : index
    %c0_0 = arith.constant 0 : index
    %0 = vector.load %arg1[%c0, %c0_0] : memref<64x32xf32, #tpu.memory_space<vmem>>, vector<64x32xf32>
    %c0_1 = arith.constant 0 : index
    %c0_2 = arith.constant 0 : index
    %1 = vector.load %arg2[%c0_1, %c0_2] : memref<1x32xf32, #tpu.memory_space<vmem>>, vector<1x32xf32>
    %2 = vector.shape_cast %1 : vector<1x32xf32> to vector<32xf32>
    %c0_3 = arith.constant 0 : index
    %c0_4 = arith.constant 0 : index
    %3 = vector.load %arg3[%c0_3, %c0_4] : memref<1x32xf32, #tpu.memory_space<vmem>>, vector<1x32xf32>
    %4 = vector.shape_cast %3 : vector<1x32xf32> to vector<32xf32>
    %cst = arith.constant dense<0.000000e+00> : vector<64xf32>
    %5 = vector.multi_reduction <add>, %0, %cst [1] : vector<64x32xf32> to vector<64xf32>
    %6 = vector.shape_cast %5 : vector<64xf32> to vector<64x1xf32>
    %cst_5 = arith.constant 3.200000e+01 : f32
    %7 = vector.broadcast %cst_5 : f32 to vector<64x1xf32>
    %8 = arith.divf %6, %7 : vector<64x1xf32>
    %9 = arith.mulf %0, %0 : vector<64x32xf32>
    %cst_6 = arith.constant dense<0.000000e+00> : vector<64xf32>
    %10 = vector.multi_reduction <add>, %9, %cst_6 [1] : vector<64x32xf32> to vector<64xf32>
    %11 = vector.shape_cast %10 : vector<64xf32> to vector<64x1xf32>
    %cst_7 = arith.constant 3.200000e+01 : f32
    %12 = vector.broadcast %cst_7 : f32 to vector<64x1xf32>
    %13 = arith.divf %11, %12 : vector<64x1xf32>
    %14 = arith.mulf %8, %8 : vector<64x1xf32>
    %15 = arith.subf %13, %14 : vector<64x1xf32>
    %cst_8 = arith.constant 0.000000e+00 : f32
    %16 = vector.broadcast %cst_8 : f32 to vector<64x1xf32>
    %17 = arith.maximumf %15, %16 : vector<64x1xf32>
    %18 = vector.broadcast %8 : vector<64x1xf32> to vector<64x32xf32>
    %19 = arith.subf %0, %18 : vector<64x32xf32>
    %cst_9 = arith.constant 9.99999974E-6 : f32
    %20 = vector.broadcast %cst_9 : f32 to vector<64x1xf32>
    %21 = arith.addf %17, %20 : vector<64x1xf32>
    %22 = math.rsqrt %21 : vector<64x1xf32>
    %23 = vector.broadcast %22 : vector<64x1xf32> to vector<64x32xf32>
    %24 = arith.mulf %19, %23 : vector<64x32xf32>
    %25 = vector.shape_cast %2 : vector<32xf32> to vector<1x32xf32>
    %26 = vector.broadcast %25 : vector<1x32xf32> to vector<64x32xf32>
    %27 = arith.mulf %24, %26 : vector<64x32xf32>
    %28 = vector.shape_cast %4 : vector<32xf32> to vector<1x32xf32>
    %29 = vector.broadcast %28 : vector<1x32xf32> to vector<64x32xf32>
    %30 = arith.addf %27, %29 : vector<64x32xf32>
    %31 = arith.truncf %30 : vector<64x32xf32> to vector<64x32xbf16>
    %c0_10 = arith.constant 0 : index
    %c0_11 = arith.constant 0 : index
    %32 = vector.load %arg4[%c0_10, %c0_11] : memref<32x512xbf16, #tpu.memory_space<vmem>>, vector<32x512xbf16>
    %cst_12 = arith.constant dense<0.000000e+00> : vector<64x512xf32>
    %33 = tpu.matmul %31, %32, %cst_12 {dimension_numbers = #tpu.dot_dimension_numbers<[1], [0], [0], [1], [0, 0, 1, 1], [], []>} : vector<64x32xbf16>, vector<32x512xbf16>, vector<64x512xf32> -> vector<64x512xf32>
    %c0_13 = arith.constant 0 : index
    %c0_14 = arith.constant 0 : index
    %34 = vector.load %arg6[%c0_13, %c0_14] : memref<1x512xf32, #tpu.memory_space<vmem>>, vector<1x512xf32>
    %35 = vector.shape_cast %34 : vector<1x512xf32> to vector<512xf32>
    %36 = vector.shape_cast %35 : vector<512xf32> to vector<1x512xf32>
    %37 = vector.broadcast %36 : vector<1x512xf32> to vector<64x512xf32>
    %38 = arith.addf %33, %37 : vector<64x512xf32>
    %c0_15 = arith.constant 0 : index
    %c0_16 = arith.constant 0 : index
    %39 = vector.load %arg5[%c0_15, %c0_16] : memref<32x512xbf16, #tpu.memory_space<vmem>>, vector<32x512xbf16>
    %cst_17 = arith.constant dense<0.000000e+00> : vector<64x512xf32>
    %40 = tpu.matmul %31, %39, %cst_17 {dimension_numbers = #tpu.dot_dimension_numbers<[1], [0], [0], [1], [0, 0, 1, 1], [], []>} : vector<64x32xbf16>, vector<32x512xbf16>, vector<64x512xf32> -> vector<64x512xf32>
    %c0_18 = arith.constant 0 : index
    %c0_19 = arith.constant 0 : index
    %41 = vector.load %arg7[%c0_18, %c0_19] : memref<1x512xf32, #tpu.memory_space<vmem>>, vector<1x512xf32>
    %42 = vector.shape_cast %41 : vector<1x512xf32> to vector<512xf32>
    %43 = vector.shape_cast %42 : vector<512xf32> to vector<1x512xf32>
    %44 = vector.broadcast %43 : vector<1x512xf32> to vector<64x512xf32>
    %45 = arith.addf %40, %44 : vector<64x512xf32>
    %46 = arith.negf %45 : vector<64x512xf32>
    %47 = math.exp %46 : vector<64x512xf32>
    %cst_20 = arith.constant 1.000000e+00 : f32
    %48 = vector.broadcast %cst_20 : f32 to vector<64x512xf32>
    %49 = arith.addf %48, %47 : vector<64x512xf32>
    %50 = arith.divf %48, %49 : vector<64x512xf32>
    %51 = arith.mulf %38, %50 : vector<64x512xf32>
    %52 = arith.truncf %51 : vector<64x512xf32> to vector<64x512xbf16>
    %c0_21 = arith.constant 0 : index
    %c0_22 = arith.constant 0 : index
    %53 = vector.load %arg8[%c0_21, %c0_22] : memref<512x32xbf16, #tpu.memory_space<vmem>>, vector<512x32xbf16>
    %cst_23 = arith.constant dense<0.000000e+00> : vector<64x32xf32>
    %54 = tpu.matmul %52, %53, %cst_23 {dimension_numbers = #tpu.dot_dimension_numbers<[1], [0], [0], [1], [0, 0, 1, 1], [], []>} : vector<64x512xbf16>, vector<512x32xbf16>, vector<64x32xf32> -> vector<64x32xf32>
    %c0_24 = arith.constant 0 : index
    %c0_25 = arith.constant 0 : index
    %55 = vector.load %arg9[%c0_24, %c0_25] : memref<1x32xf32, #tpu.memory_space<vmem>>, vector<1x32xf32>
    %56 = vector.shape_cast %55 : vector<1x32xf32> to vector<32xf32>
    %57 = vector.shape_cast %56 : vector<32xf32> to vector<1x32xf32>
    %58 = vector.broadcast %57 : vector<1x32xf32> to vector<64x32xf32>
    %59 = arith.addf %54, %58 : vector<64x32xf32>
    %60 = arith.addf %30, %59 : vector<64x32xf32>
    %c0_26 = arith.constant 0 : index
    %c0_27 = arith.constant 0 : index
    %61 = vector.load %arg10[%c0_26, %c0_27] : memref<1x32xf32, #tpu.memory_space<vmem>>, vector<1x32xf32>
    %62 = vector.shape_cast %61 : vector<1x32xf32> to vector<32xf32>
    %c0_28 = arith.constant 0 : index
    %c0_29 = arith.constant 0 : index
    %63 = vector.load %arg11[%c0_28, %c0_29] : memref<1x32xf32, #tpu.memory_space<vmem>>, vector<1x32xf32>
    %64 = vector.shape_cast %63 : vector<1x32xf32> to vector<32xf32>
    %cst_30 = arith.constant dense<0.000000e+00> : vector<64xf32>
    %65 = vector.multi_reduction <add>, %60, %cst_30 [1] : vector<64x32xf32> to vector<64xf32>
    %66 = vector.shape_cast %65 : vector<64xf32> to vector<64x1xf32>
    %cst_31 = arith.constant 3.200000e+01 : f32
    %67 = vector.broadcast %cst_31 : f32 to vector<64x1xf32>
    %68 = arith.divf %66, %67 : vector<64x1xf32>
    %69 = arith.mulf %60, %60 : vector<64x32xf32>
    %cst_32 = arith.constant dense<0.000000e+00> : vector<64xf32>
    %70 = vector.multi_reduction <add>, %69, %cst_32 [1] : vector<64x32xf32> to vector<64xf32>
    %71 = vector.shape_cast %70 : vector<64xf32> to vector<64x1xf32>
    %cst_33 = arith.constant 3.200000e+01 : f32
    %72 = vector.broadcast %cst_33 : f32 to vector<64x1xf32>
    %73 = arith.divf %71, %72 : vector<64x1xf32>
    %74 = arith.mulf %68, %68 : vector<64x1xf32>
    %75 = arith.subf %73, %74 : vector<64x1xf32>
    %cst_34 = arith.constant 0.000000e+00 : f32
    %76 = vector.broadcast %cst_34 : f32 to vector<64x1xf32>
    %77 = arith.maximumf %75, %76 : vector<64x1xf32>
    %78 = vector.broadcast %68 : vector<64x1xf32> to vector<64x32xf32>
    %79 = arith.subf %60, %78 : vector<64x32xf32>
    %cst_35 = arith.constant 9.99999974E-6 : f32
    %80 = vector.broadcast %cst_35 : f32 to vector<64x1xf32>
    %81 = arith.addf %77, %80 : vector<64x1xf32>
    %82 = math.rsqrt %81 : vector<64x1xf32>
    %83 = vector.broadcast %82 : vector<64x1xf32> to vector<64x32xf32>
    %84 = arith.mulf %79, %83 : vector<64x32xf32>
    %85 = vector.shape_cast %62 : vector<32xf32> to vector<1x32xf32>
    %86 = vector.broadcast %85 : vector<1x32xf32> to vector<64x32xf32>
    %87 = arith.mulf %84, %86 : vector<64x32xf32>
    %88 = vector.shape_cast %64 : vector<32xf32> to vector<1x32xf32>
    %89 = vector.broadcast %88 : vector<1x32xf32> to vector<64x32xf32>
    %90 = arith.addf %87, %89 : vector<64x32xf32>
    %c0_36 = arith.constant 0 : index
    %c0_37 = arith.constant 0 : index
    %91 = vector.load %arg12[%c0_36, %c0_37] : memref<64x32xf32, #tpu.memory_space<vmem>>, vector<64x32xf32>
    tpu.vector_store %arg12[%c0_36, %c0_37], %90 {strides = array<i32>} : memref<64x32xf32, #tpu.memory_space<vmem>>, vector<64x32xf32>,
    return
  }
  func.func @transform_0(%arg0: i32) -> (i32, i32) {
    %c0_i32 = arith.constant 0 : i32
    %c0_i32_0 = arith.constant 0 : i32
    return %arg0, %c0_i32 : i32, i32
  }
  func.func @transform_1(%arg0: i32) -> (i32, i32) {
    %c0_i32 = arith.constant 0 : i32
    %c0_i32_0 = arith.constant 0 : i32
    %c0_i32_1 = arith.constant 0 : i32
    return %c0_i32, %c0_i32_0 : i32, i32
  }
  func.func @transform_2(%arg0: i32) -> (i32, i32) {
    %c0_i32 = arith.constant 0 : i32
    %c0_i32_0 = arith.constant 0 : i32
    %c0_i32_1 = arith.constant 0 : i32
    return %c0_i32, %c0_i32_0 : i32, i32
  }
  func.func @transform_3(%arg0: i32) -> (i32, i32) {
    %c0_i32 = arith.constant 0 : i32
    %c0_i32_0 = arith.constant 0 : i32
    %c0_i32_1 = arith.constant 0 : i32
    return %c0_i32, %c0_i32_0 : i32, i32
  }
  func.func @transform_4(%arg0: i32) -> (i32, i32) {
    %c0_i32 = arith.constant 0 : i32
    %c0_i32_0 = arith.constant 0 : i32
    %c0_i32_1 = arith.constant 0 : i32
    return %c0_i32, %c0_i32_0 : i32, i32
  }
  func.func @transform_5(%arg0: i32) -> (i32, i32) {
    %c0_i32 = arith.constant 0 : i32
    %c0_i32_0 = arith.constant 0 : i32
    %c0_i32_1 = arith.constant 0 : i32
    return %c0_i32, %c0_i32_0 : i32, i32
  }
  func.func @transform_6(%arg0: i32) -> (i32, i32) {
    %c0_i32 = arith.constant 0 : i32
    %c0_i32_0 = arith.constant 0 : i32
    %c0_i32_1 = arith.constant 0 : i32
    return %c0_i32, %c0_i32_0 : i32, i32
  }
  func.func @transform_7(%arg0: i32) -> (i32, i32) {
    %c0_i32 = arith.constant 0 : i32
    %c0_i32_0 = arith.constant 0 : i32
    %c0_i32_1 = arith.constant 0 : i32
    return %c0_i32, %c0_i32_0 : i32, i32
  }
  func.func @transform_8(%arg0: i32) -> (i32, i32) {
    %c0_i32 = arith.constant 0 : i32
    %c0_i32_0 = arith.constant 0 : i32
    %c0_i32_1 = arith.constant 0 : i32
    return %c0_i32, %c0_i32_0 : i32, i32
  }
  func.func @transform_9(%arg0: i32) -> (i32, i32) {
    %c0_i32 = arith.constant 0 : i32
    %c0_i32_0 = arith.constant 0 : i32
    %c0_i32_1 = arith.constant 0 : i32
    return %c0_i32, %c0_i32_0 : i32, i32
  }
  func.func @transform_10(%arg0: i32) -> (i32, i32) {
    %c0_i32 = arith.constant 0 : i32
    %c0_i32_0 = arith.constant 0 : i32
    %c0_i32_1 = arith.constant 0 : i32
    return %c0_i32, %c0_i32_0 : i32, i32
  }
  func.func @transform_11(%arg0: i32) -> (i32, i32) {
    %c0_i32 = arith.constant 0 : i32
    %c0_i32_0 = arith.constant 0 : i32
    return %arg0, %c0_i32 : i32, i32
  }
}

module attributes {stable_mosaic.version = 11 : i64} {
  func.func @decoder_layer_kernel(%arg0: i32, %arg1: memref<64x32xf32, #tpu.memory_space<vmem>>, %arg2: memref<1x32xf32, #tpu.memory_space<vmem>>, %arg3: memref<1x32xf32, #tpu.memory_space<vmem>>, %arg4: memref<32x512xbf16, #tpu.memory_space<vmem>>, %arg5: memref<32x512xbf16, #tpu.memory_space<vmem>>, %arg6: memref<1x512xf32, #tpu.memory_space<vmem>>, %arg7: memref<1x512xf32, #tpu.memory_space<vmem>>, %arg8: memref<512x32xbf16, #tpu.memory_space<vmem>>, %arg9: memref<1x32xf32, #tpu.memory_space<vmem>>, %arg10: memref<1x32xf32, #tpu.memory_space<vmem>>, %arg11: memref<1x32xf32, #tpu.memory_space<vmem>>, %arg12: memref<64x32xf32, #tpu.memory_space<vmem>>) attributes {dimension_semantics = [#tpu.dimension_semantics<parallel>], iteration_bounds = array<i64: 1>, scalar_prefetch = 0 : i64, scratch_operands = 0 : i64, tpu.core_type = #tpu.core_type<tc>, window_params = [{transform_indices = @transform_0, window_bounds = array<i64: 64, 32>}, {pipeline_mode = #tpu.pipeline_mode<synchronous>, transform_indices = @transform_1, window_bounds = array<i64: 1, 32>}, {pipeline_mode = #tpu.pipeline_mode<synchronous>, transform_indices = @transform_2, window_bounds = array<i64: 1, 32>}, {pipeline_mode = #tpu.pipeline_mode<synchronous>, transform_indices = @transform_3, window_bounds = array<i64: 32, 512>}, {pipeline_mode = #tpu.pipeline_mode<synchronous>, transform_indices = @transform_4, window_bounds = array<i64: 32, 512>}, {pipeline_mode = #tpu.pipeline_mode<synchronous>, transform_indices = @transform_5, window_bounds = array<i64: 1, 512>}, {pipeline_mode = #tpu.pipeline_mode<synchronous>, transform_indices = @transform_6, window_bounds = array<i64: 1, 512>}, {pipeline_mode = #tpu.pipeline_mode<synchronous>, transform_indices = @transform_7, window_bounds = array<i64: 512, 32>}, {pipeline_mode = #tpu.pipeline_mode<synchronous>, transform_indices = @transform_8, window_bounds = array<i64: 1, 32>}, {pipeline_mode = #tpu.pipeline_mode<synchronous>, transform_indices = @transform_9, window_bounds = array<i64: 1, 32>}, {pipeline_mode = #tpu.pipeline_mode<synchronous>, transform_indices = @transform_10, window_bounds = array<i64: 1, 32>}, {transform_indices = @transform_11, window_bounds = array<i64: 64, 32>}]} {
    %c0 = arith.constant 0 : index
    %c0_0 = arith.constant 0 : index
    %0 = vector.load %arg1[%c0, %c0_0] : memref<64x32xf32, #tpu.memory_space<vmem>>, vector<64x32xf32>
    %c0_1 = arith.constant 0 : index
    %c0_2 = arith.constant 0 : index
    %1 = vector.load %arg2[%c0_1, %c0_2] : memref<1x32xf32, #tpu.memory_space<vmem>>, vector<1x32xf32>
    %2 = vector.shape_cast %1 : vector<1x32xf32> to vector<32xf32>
    %c0_3 = arith.constant 0 : index
    %c0_4 = arith.constant 0 : index
    %3 = vector.load %arg3[%c0_3, %c0_4] : memref<1x32xf32, #tpu.memory_space<vmem>>, vector<1x32xf32>
    %4 = vector.shape_cast %3 : vector<1x32xf32> to vector<32xf32>
    %cst = arith.constant dense<0.000000e+00> : vector<64xf32>
    %5 = vector.multi_reduction <add>, %0, %cst [1] : vector<64x32xf32> to vector<64xf32>
    %6 = vector.shape_cast %5 : vector<64xf32> to vector<64x1xf32>
    %cst_5 = arith.constant 3.200000e+01 : f32
    %7 = vector.broadcast %cst_5 : f32 to vector<64x1xf32>
    %8 = arith.divf %6, %7 : vector<64x1xf32>
    %9 = arith.mulf %0, %0 : vector<64x32xf32>
    %cst_6 = arith.constant dense<0.000000e+00> : vector<64xf32>
    %10 = vector.multi_reduction <add>, %9, %cst_6 [1] : vector<64x32xf32> to vector<64xf32>
    %11 = vector.shape_cast %10 : vector<64xf32> to vector<64x1xf32>
    %cst_7 = arith.constant 3.200000e+01 : f32
    %12 = vector.broadcast %cst_7 : f32 to vector<64x1xf32>
    %13 = arith.divf %11, %12 : vector<64x1xf32>
    %14 = arith.mulf %8, %8 : vector<64x1xf32>
    %15 = arith.subf %13, %14 : vector<64x1xf32>
    %cst_8 = arith.constant 0.000000e+00 : f32
    %16 = vector.broadcast %cst_8 : f32 to vector<64x1xf32>
    %17 = arith.maximumf %15, %16 : vector<64x1xf32>
    %18 = vector.broadcast %8 : vector<64x1xf32> to vector<64x32xf32>
    %19 = arith.subf %0, %18 : vector<64x32xf32>
    %cst_9 = arith.constant 9.99999974E-6 : f32
    %20 = vector.broadcast %cst_9 : f32 to vector<64x1xf32>
    %21 = arith.addf %17, %20 : vector<64x1xf32>
    %22 = math.rsqrt %21 : vector<64x1xf32>
    %23 = vector.broadcast %22 : vector<64x1xf32> to vector<64x32xf32>
    %24 = arith.mulf %19, %23 : vector<64x32xf32>
    %25 = vector.shape_cast %2 : vector<32xf32> to vector<1x32xf32>
    %26 = vector.broadcast %25 : vector<1x32xf32> to vector<64x32xf32>
    %27 = arith.mulf %24, %26 : vector<64x32xf32>
    %28 = vector.shape_cast %4 : vector<32xf32> to vector<1x32xf32>
    %29 = vector.broadcast %28 : vector<1x32xf32> to vector<64x32xf32>
    %30 = arith.addf %27, %29 : vector<64x32xf32>
    %31 = arith.truncf %30 : vector<64x32xf32> to vector<64x32xbf16>
    %c0_10 = arith.constant 0 : index
    %c0_11 = arith.constant 0 : index
    %32 = vector.load %arg4[%c0_10, %c0_11] : memref<32x512xbf16, #tpu.memory_space<vmem>>, vector<32x512xbf16>
    %cst_12 = arith.constant dense<0.000000e+00> : vector<64x512xf32>
    %33 = tpu.matmul %31, %32, %cst_12 {dimension_numbers = #tpu.dot_dimension_numbers<[1], [0], [0], [1], [0, 0, 1, 1], [], []>} : vector<64x32xbf16>, vector<32x512xbf16>, vector<64x512xf32> -> vector<64x512xf32>
    %c0_13 = arith.constant 0 : index
    %c0_14 = arith.constant 0 : index
    %34 = vector.load %arg6[%c0_13, %c0_14] : memref<1x512xf32, #tpu.memory_space<vmem>>, vector<1x512xf32>
    %35 = vector.shape_cast %34 : vector<1x512xf32> to vector<512xf32>
    %36 = vector.shape_cast %35 : vector<512xf32> to vector<1x512xf32>
    %37 = vector.broadcast %36 : vector<1x512xf32> to vector<64x512xf32>
    %38 = arith.addf %33, %37 : vector<64x512xf32>
    %c0_15 = arith.constant 0 : index
    %c0_16 = arith.constant 0 : index
    %39 = vector.load %arg5[%c0_15, %c0_16] : memref<32x512xbf16, #tpu.memory_space<vmem>>, vector<32x512xbf16>
    %cst_17 = arith.constant dense<0.000000e+00> : vector<64x512xf32>
    %40 = tpu.matmul %31, %39, %cst_17 {dimension_numbers = #tpu.dot_dimension_numbers<[1], [0], [0], [1], [0, 0, 1, 1], [], []>} : vector<64x32xbf16>, vector<32x512xbf16>, vector<64x512xf32> -> vector<64x512xf32>
    %c0_18 = arith.constant 0 : index
    %c0_19 = arith.constant 0 : index
    %41 = vector.load %arg7[%c0_18, %c0_19] : memref<1x512xf32, #tpu.memory_space<vmem>>, vector<1x512xf32>
    %42 = vector.shape_cast %41 : vector<1x512xf32> to vector<512xf32>
    %43 = vector.shape_cast %42 : vector<512xf32> to vector<1x512xf32>
    %44 = vector.broadcast %43 : vector<1x512xf32> to vector<64x512xf32>
    %45 = arith.addf %40, %44 : vector<64x512xf32>
    %46 = arith.negf %45 : vector<64x512xf32>
    %47 = math.exp %46 : vector<64x512xf32>
    %cst_20 = arith.constant 1.000000e+00 : f32
    %48 = vector.broadcast %cst_20 : f32 to vector<64x512xf32>
    %49 = arith.addf %48, %47 : vector<64x512xf32>
    %50 = arith.divf %48, %49 : vector<64x512xf32>
    %51 = arith.mulf %38, %50 : vector<64x512xf32>
    %52 = arith.truncf %51 : vector<64x512xf32> to vector<64x512xbf16>
    %c0_21 = arith.constant 0 : index
    %c0_22 = arith.constant 0 : index
    %53 = vector.load %arg8[%c0_21, %c0_22] : memref<512x32xbf16, #tpu.memory_space<vmem>>, vector<512x32xbf16>
    %cst_23 = arith.constant dense<0.000000e+00> : vector<64x32xf32>
    %54 = tpu.matmul %52, %53, %cst_23 {dimension_numbers = #tpu.dot_dimension_numbers<[1], [0], [0], [1], [0, 0, 1, 1], [], []>} : vector<64x512xbf16>, vector<512x32xbf16>, vector<64x32xf32> -> vector<64x32xf32>
    %c0_24 = arith.constant 0 : index
    %c0_25 = arith.constant 0 : index
    %55 = vector.load %arg9[%c0_24, %c0_25] : memref<1x32xf32, #tpu.memory_space<vmem>>, vector<1x32xf32>
    %56 = vector.shape_cast %55 : vector<1x32xf32> to vector<32xf32>
    %57 = vector.shape_cast %56 : vector<32xf32> to vector<1x32xf32>
    %58 = vector.broadcast %57 : vector<1x32xf32> to vector<64x32xf32>
    %59 = arith.addf %54, %58 : vector<64x32xf32>
    %60 = arith.addf %30, %59 : vector<64x32xf32>
    %c0_26 = arith.constant 0 : index
    %c0_27 = arith.constant 0 : index
    %61 = vector.load %arg10[%c0_26, %c0_27] : memref<1x32xf32, #tpu.memory_space<vmem>>, vector<1x32xf32>
    %62 = vector.shape_cast %61 : vector<1x32xf32> to vector<32xf32>
    %c0_28 = arith.constant 0 : index
    %c0_29 = arith.constant 0 : index
    %63 = vector.load %arg11[%c0_28, %c0_29] : memref<1x32xf32, #tpu.memory_space<vmem>>, vector<1x32xf32>
    %64 = vector.shape_cast %63 : vector<1x32xf32> to vector<32xf32>
    %cst_30 = arith.constant dense<0.000000e+00> : vector<64xf32>
    %65 = vector.multi_reduction <add>, %60, %cst_30 [1] : vector<64x32xf32> to vector<64xf32>
    %66 = vector.shape_cast %65 : vector<64xf32> to vector<64x1xf32>
    %cst_31 = arith.constant 3.200000e+01 : f32
    %67 = vector.broadcast %cst_31 : f32 to vector<64x1xf32>
    %68 = arith.divf %66, %67 : vector<64x1xf32>
    %69 = arith.mulf %60, %60 : vector<64x32xf32>
    %cst_32 = arith.constant dense<0.000000e+00> : vector<64xf32>
    %70 = vector.multi_reduction <add>, %69, %cst_32 [1] : vector<64x32xf32> to vector<64xf32>
    %71 = vector.shape_cast %70 : vector<64xf32> to vector<64x1xf32>
    %cst_33 = arith.constant 3.200000e+01 : f32
    %72 = vector.broadcast %cst_33 : f32 to vector<64x1xf32>
    %73 = arith.divf %71, %72 : vector<64x1xf32>
    %74 = arith.mulf %68, %68 : vector<64x1xf32>
    %75 = arith.subf %73, %74 : vector<64x1xf32>
    %cst_34 = arith.constant 0.000000e+00 : f32
    %76 = vector.broadcast %cst_34 : f32 to vector<64x1xf32>
    %77 = arith.maximumf %75, %76 : vector<64x1xf32>
    %78 = vector.broadcast %68 : vector<64x1xf32> to vector<64x32xf32>
    %79 = arith.subf %60, %78 : vector<64x32xf32>
    %cst_35 = arith.constant 9.99999974E-6 : f32
    %80 = vector.broadcast %cst_35 : f32 to vector<64x1xf32>
    %81 = arith.addf %77, %80 : vector<64x1xf32>
    %82 = math.rsqrt %81 : vector<64x1xf32>
    %83 = vector.broadcast %82 : vector<64x1xf32> to vector<64x32xf32>
    %84 = arith.mulf %79, %83 : vector<64x32xf32>
    %85 = vector.shape_cast %62 : vector<32xf32> to vector<1x32xf32>
    %86 = vector.broadcast %85 : vector<1x32xf32> to vector<64x32xf32>
    %87 = arith.mulf %84, %86 : vector<64x32xf32>
    %88 = vector.shape_cast %64 : vector<32xf32> to vector<1x32xf32>
    %89 = vector.broadcast %88 : vector<1x32xf32> to vector<64x32xf32>
    %90 = arith.addf %87, %89 : vector<64x32xf32>
    %c0_36 = arith.constant 0 : index
    %c0_37 = arith.constant 0 : index
    %91 = vector.load %arg12[%c0_36, %c0_37] : memref<64x32xf32, #tpu.memory_space<vmem>>, vector<64x32xf32>
    tpu.vector_store %arg12[%c0_36, %c0_37], %90 {strides = array<i32>} : memref<64x32xf32, #tpu.memory_space<vmem>>, vector<64x32xf32>,
    return
  }
  func.func @transform_0(%arg0: i32) -> (i32, i32) {
    %c0_i32 = arith.constant 0 : i32
    %c0_i32_0 = arith.constant 0 : i32
    return %arg0, %c0_i32 : i32, i32
  }
  func.func @transform_1(%arg0: i32) -> (i32, i32) {
    %c0_i32 = arith.constant 0 : i32
    %c0_i32_0 = arith.constant 0 : i32
    %c0_i32_1 = arith.constant 0 : i32
    return %c0_i32, %c0_i32_0 : i32, i32
  }
  func.func @transform_2(%arg0: i32) -> (i32, i32) {
    %c0_i32 = arith.constant 0 : i32
    %c0_i32_0 = arith.constant 0 : i32
    %c0_i32_1 = arith.constant 0 : i32
    return %c0_i32, %c0_i32_0 : i32, i32
  }
  func.func @transform_3(%arg0: i32) -> (i32, i32) {
    %c0_i32 = arith.constant 0 : i32
    %c0_i32_0 = arith.constant 0 : i32
    %c0_i32_1 = arith.constant 0 : i32
    return %c0_i32, %c0_i32_0 : i32, i32
  }
  func.func @transform_4(%arg0: i32) -> (i32, i32) {
    %c0_i32 = arith.constant 0 : i32
    %c0_i32_0 = arith.constant 0 : i32
    %c0_i32_1 = arith.constant 0 : i32
    return %c0_i32, %c0_i32_0 : i32, i32
  }
  func.func @transform_5(%arg0: i32) -> (i32, i32) {
    %c0_i32 = arith.constant 0 : i32
    %c0_i32_0 = arith.constant 0 : i32
    %c0_i32_1 = arith.constant 0 : i32
    return %c0_i32, %c0_i32_0 : i32, i32
  }
  func.func @transform_6(%arg0: i32) -> (i32, i32) {
    %c0_i32 = arith.constant 0 : i32
    %c0_i32_0 = arith.constant 0 : i32
    %c0_i32_1 = arith.constant 0 : i32
    return %c0_i32, %c0_i32_0 : i32, i32
  }
  func.func @transform_7(%arg0: i32) -> (i32, i32) {
    %c0_i32 = arith.constant 0 : i32
    %c0_i32_0 = arith.constant 0 : i32
    %c0_i32_1 = arith.constant 0 : i32
    return %c0_i32, %c0_i32_0 : i32, i32
  }
  func.func @transform_8(%arg0: i32) -> (i32, i32) {
    %c0_i32 = arith.constant 0 : i32
    %c0_i32_0 = arith.constant 0 : i32
    %c0_i32_1 = arith.constant 0 : i32
    return %c0_i32, %c0_i32_0 : i32, i32
  }
  func.func @transform_9(%arg0: i32) -> (i32, i32) {
    %c0_i32 = arith.constant 0 : i32
    %c0_i32_0 = arith.constant 0 : i32
    %c0_i32_1 = arith.constant 0 : i32
    return %c0_i32, %c0_i32_0 : i32, i32
  }
  func.func @transform_10(%arg0: i32) -> (i32, i32) {
    %c0_i32 = arith.constant 0 : i32
    %c0_i32_0 = arith.constant 0 : i32
    %c0_i32_1 = arith.constant 0 : i32
    return %c0_i32, %c0_i32_0 : i32, i32
  }
  func.func @transform_11(%arg0: i32) -> (i32, i32) {
    %c0_i32 = arith.constant 0 : i32
    %c0_i32_0 = arith.constant 0 : i32
    return %arg0, %c0_i32 : i32, i32
  }
}

</mosaic_0001>

<bundles_post_ra>
// kernel: tpu_custom_call.1
= control target key start
LH: loop header
LB: loop body
LE: loop exit
PB: predicated region body
PF: predicated region fallthrough
CT: control target
= control target key end

     0   :  { %vm49_vm0 = vcmask 261120   ;;  %v2391_v32 = vmov 32.0   ;;  %s3969_s0 = inlined_call_operand.vmem [shape: f32[64,32], index: 0, kind: input, shape index: {}]   ;;  %s3970_s1 = inlined_call_operand.vmem [shape: f32[1,32], index: 1, kind: input, shape index: {}]   ;;  %s3971_s2 = inlined_call_operand.vmem [shape: f32[1,32], index: 2, kind: input, shape index: {}]   ;;  %s3972_s3 = inlined_call_operand.vmem [shape: bf16[32,512], index: 3, kind: input, shape index: {}]   ;;  %s3973_s4 = inlined_call_operand.vmem [shape: bf16[32,512], index: 4, kind: input, shape index: {}]   ;;  %s3974_s7 = inlined_call_operand.vmem [shape: bf16[512,32], index: 7, kind: input, shape index: {}]   ;;  %s3975_s5 = inlined_call_operand.vmem [shape: f32[1,512], index: 5, kind: input, shape index: {}]   ;;  %s3976_s6 = inlined_call_operand.vmem [shape: f32[1,512], index: 6, kind: input, shape index: {}]   ;;  %s3977_s8 = inlined_call_operand.vmem [shape: f32[1,32], index: 8, kind: input, shape index: {}]   ;;  %s3978_s9 = inlined_call_operand.vmem [shape: f32[1,32], index: 9, kind: input, shape index: {}]   ;;  %s3979_s10 = inlined_call_operand.vmem [shape: f32[1,32], index: 10, kind: input, shape index: {}]   ;;  %s3980_s11 = inlined_call_operand.vmem [shape: f32[64,32], index: 11, kind: output, shape index: {}]  }
   0x1   :  { %v2455_v0 = vld [vmem:[%s3969_s0] sm:$0xff]  ;;  %v2460_v1 = vld [vmem:[%s3969_s0 + $0x10] sm:$0xff]  ;;  %v2471_v5 = vld [vmem:[%s3969_s0 + $0x8] sm:$0xff]  ;;  %2229 = vrcp.f32 %v2391_v32 }
   0x2   :  { %v50_v2 = vsel %vm49_vm0, %v2455_v0, 0.0  ;;  %v56_v3 = vsel %vm49_vm0, %v2460_v1, 0.0  ;;  %v89_v4 = vmul.f32 %v2455_v0, %v2455_v0  ;;  %v2477_v7 = vld [vmem:[%s3969_s0 + $0x18] sm:$0xff]  ;;  %v90_v8 = vmul.f32 %v2471_v5, %v2471_v5  ;;  %v2491_v13 = vld [vmem:[%s3969_s0 + $0x20] sm:$0xff]  ;;  %v2501_v17 = vld [vmem:[%s3969_s0 + $0x28] sm:$0xff] }
   0x3   :  { %51 = vadd.xlane.f32.xlu0 %v50_v2  ;;  %57 = vadd.xlane.f32.xlu2 %v56_v3  ;;  %v53_v9 = vsel %vm49_vm0, %v2471_v5, 0.0  ;;  %v59_v10 = vsel %vm49_vm0, %v2477_v7, 0.0  ;;  %v91_v12 = vmul.f32 %v2460_v1, %v2460_v1  ;;  %v92_v14 = vmul.f32 %v2477_v7, %v2477_v7  ;;  %v2514_v23 = vld [vmem:[%s3969_s0 + $0x30] sm:$0xff]  ;;  %v2522_v26 = vld [vmem:[%s3969_s0 + $0x38] sm:$0xff]  ;;  %v1937_v46 = vld [vmem:[%s3972_s3 + $0x20] sm:$0xf] }
   0x4   :  { %v97_v6 = vsel %vm49_vm0, %v89_v4, 0.0  ;;  %v100_v11 = vsel %vm49_vm0, %v90_v8, 0.0  ;;  %v62_v16 = vsel %vm49_vm0, %v2491_v13, 0.0  ;;  %v94_v19 = vmul.f32 %v2501_v17, %v2501_v17  ;;  %v2181_v47 = vld [vmem:[%s3972_s3 + $0x2c] sm:$0xf0] }
   0x5   :  { %98 = vadd.xlane.f32.xlu1 %v97_v6  ;;  %v103_v15 = vsel %vm49_vm0, %v91_v12, 0.0  ;;  %v106_v18 = vsel %vm49_vm0, %v92_v14, 0.0  ;;  %v93_v20 = vmul.f32 %v2491_v13, %v2491_v13  ;;  %v65_v21 = vsel %vm49_vm0, %v2501_v17, 0.0  ;;  %v2179_v48 = vld [vmem:[%s3972_s3 + $0x24] sm:$0xf] }
   0x6   :  { %v112_v22 = vsel %vm49_vm0, %v94_v19, 0.0  ;;  %v95_v25 = vmul.f32 %v2514_v23, %v2514_v23  ;;  %v68_v27 = vsel %vm49_vm0, %v2514_v23, 0.0  ;;  %v71_v29 = vsel %vm49_vm0, %v2522_v26, 0.0  ;;  %v1939_v50 = vld [vmem:[%s3972_s3 + $0x30] sm:$0xf0] }
   0x7   :  { %v109_v24 = vsel %vm49_vm0, %v93_v20, 0.0  ;;  %v96_v30 = vmul.f32 %v2522_v26, %v2522_v26  ;;  %v2230_v33 = vpop.eup %2229  ;;  %v1938_v49 = vor.u32 %v2181_v47, %v1937_v46  ;;  %v1945_v51 = vld [vmem:[%s3972_s3 + $0x28] sm:$0xf]  ;;  %v2182_v52 = vld [vmem:[%s3972_s3 + $0x34] sm:$0xf0]  ;;  %v1942_v56 = vor.u32 %v2179_v48, %v1939_v50 }
   0x8   :  { %v115_v28 = vsel %vm49_vm0, %v95_v25, 0.0  ;;  %v75_v34 = vmul.f32 32.0, %v2230_v33  ;;  %vm79_vm1 = vweird.f32 %v2230_v33  ;;  %v1946_v57 = vor.u32 %v2182_v52, %v1945_v51  ;;  %v2180_v58 = vld [vmem:[%s3972_s3 + $0x2c] sm:$0xf]  ;;  %v1947_v59 = vld [vmem:[%s3972_s3 + $0x38] sm:$0xf0] }
   0x9   :  { %v118_v31 = vsel %vm49_vm0, %v96_v30, 0.0  ;;  %359 = vmatpush.bf16.msra.mxu0 %v1938_v49  ;;  %v1950_v61 = vor.u32 %v2180_v58, %v1947_v59  ;;  %388 = vmatpush.bf16.msra.mxu1 %v1942_v56  ;;  %v1921_v2 = vld [vmem:[%s3972_s3] sm:$0xf]  ;;  %v2177_v3 = vld [vmem:[%s3972_s3 + $0xc] sm:$0xf0] }
   0xa   :  { %v76_v35 = vsub.f32 1.0, %v75_v34  ;;  %417 = vmatpush.bf16.msra.mxu2 %v1946_v57  ;;  %v2175_v8 = vld [vmem:[%s3972_s3 + $0x4] sm:$0xf]  ;;  %v1922_v12 = vor.u32 %v2177_v3, %v1921_v2  ;;  %v2178_v14 = vld [vmem:[%s3972_s3 + $0x14] sm:$0xf0] }
   0xb   :  { %54 = vadd.xlane.f32.xlu0 %v53_v9  ;;  %60 = vadd.xlane.f32.xlu2 %v59_v10  ;;  %v1923_v9 = vld [vmem:[%s3972_s3 + $0x10] sm:$0xf0]  ;;  %v1929_v10 = vld [vmem:[%s3972_s3 + $0x8] sm:$0xf] }
   0xc   :  { %v77_v36 = vmul.f32 %v2230_v33, %v76_v35  ;;  %446 = vmatpush.bf16.msra.mxu3 %v1950_v61  ;;  %v1930_v19 = vor.u32 %v2178_v14, %v1929_v10 }
   0xd   :  { %101 = vadd.xlane.f32.xlu1 %v100_v11  ;;  %360 = vmatpush.bf16.msra.mxu0 %v1922_v12 }
   0xe   :  { %v78_v37 = vadd.f32 %v2230_v33, %v77_v36  ;;  %418 = vmatpush.bf16.msra.mxu2 %v1930_v19 }
  0x10   :  { %v2532_v38 = vsel %vm79_vm1, %v2230_v33, %v78_v37 }
  0x11   :  { %3998 = vst [vmem:[#allocation2_spill] sm:$0xff] %v2532_v38 }
  0x13   :  { %104 = vadd.xlane.f32.xlu0 %v103_v15  ;;  %63 = vadd.xlane.f32.xlu2 %v62_v16  ;;  %v2176_v15 = vld [vmem:[%s3972_s3 + $0xc] sm:$0xf]  ;;  %v1931_v16 = vld [vmem:[%s3972_s3 + $0x18] sm:$0xf0] }
  0x14   :  { %v1934_v20 = vor.u32 %v2176_v15, %v1931_v16 }
  0x15   :  { %107 = vadd.xlane.f32.xlu1 %v106_v18  ;;  %v1926_v18 = vor.u32 %v2175_v8, %v1923_v9 }
  0x16   :  { %447 = vmatpush.bf16.msra.mxu3 %v1934_v20  ;;  %v2651_v20 = vld [vmem:[%s3970_s1] ss:$0 sm:$0xff] }
  0x17   :  { %389 = vmatpush.bf16.msra.mxu1 %v1926_v18 }
  0x1b   :  { %66 = vadd.xlane.f32.xlu0 %v65_v21  ;;  %113 = vadd.xlane.f32.xlu2 %v112_v22 }
  0x1d   :  { %110 = vadd.xlane.f32.xlu1 %v109_v24 }
  0x23   :  { %69 = vadd.xlane.f32.xlu0 %v68_v27  ;;  %116 = vadd.xlane.f32.xlu2 %v115_v28 }
  0x25   :  { %72 = vadd.xlane.f32.xlu1 %v71_v29 }
  0x2b   :  { %119 = vadd.xlane.f32.xlu0 %v118_v31 }
  0x76   :  { %v52_v39 = vpop.xlane.xlu0 %51  ;;  %v58_v40 = vpop.xlane.xlu2 %57 }
  0x77   :  { %v2535_v41 = vmul.f32 %v2532_v38, %v52_v39  ;;  %v2576_v4 = vmul.f32 %v2532_v38, %v58_v40 }
  0x78   :  { %v99_v42 = vpop.xlane.xlu1 %98 }
  0x79   :  { %v129_v43 = vmul.f32 %v2535_v41, %v2535_v41  ;;  %v121_v44 = vmul.f32 %v99_v42, %v2532_v38  ;;  %v131_v24 = vmul.f32 %v2576_v4, %v2576_v4  ;;  %v153_v10 = vsub.f32 %v2455_v0, %v2535_v41 }
  0x7b   :  { %v137_v45 = vsub.f32 %v121_v44, %v129_v43 }
  0x7d   :  { %v145_v53 = vmax.f32 %v137_v45, 0.0 }
  0x7e   :  { %v55_v54 = vpop.xlane.xlu0 %54  ;;  %v61_v55 = vpop.xlane.xlu2 %60 }
  0x7f   :  { %v2565_v60 = vmul.f32 %v2532_v38, %v55_v54  ;;  %v2567_v62 = vadd.f32 1e-05, %v145_v53  ;;  %v2601_v21 = vmul.f32 %v2532_v38, %v61_v55 }
  0x80   :  { %v102_v63 = vpop.xlane.xlu1 %101 }
  0x81   :  { %v130_v6 = vmul.f32 %v2565_v60, %v2565_v60  ;;  %2231 = vrsqrt.f32 %v2567_v62  ;;  %v122_v11 = vmul.f32 %v102_v63, %v2532_v38  ;;  %v132_v31 = vmul.f32 %v2601_v21, %v2601_v21 }
  0x82   :  { %vm175_vm3 = vweird.f32 %v2567_v62 }
  0x83   :  { %v138_v22 = vsub.f32 %v122_v11, %v130_v6 }
  0x85   :  { %v146_v25 = vmax.f32 %v138_v22, 0.0 }
  0x86   :  { %v105_v27 = vpop.xlane.xlu0 %104  ;;  %v64_v28 = vpop.xlane.xlu2 %63 }
  0x87   :  { %v123_v29 = vmul.f32 %v105_v27, %v2532_v38  ;;  %v2232_v30 = vpop.eup %2231  ;;  %v162_v32 = vadd.f32 1e-05, %v146_v25  ;;  %v2611_v40 = vmul.f32 %v2532_v38, %v64_v28 }
  0x88   :  { %v108_v33 = vpop.xlane.xlu1 %107  ;;  %v170_v34 = vmul.f32 %v2232_v30, %v2567_v62  ;;  %vm176_vm2 = vweird.f32 %v2232_v30 }
  0x89   :  { %v139_v35 = vsub.f32 %v123_v29, %v131_v24  ;;  %2233 = vrsqrt.f32 %v162_v32  ;;  %v124_v36 = vmul.f32 %v108_v33, %v2532_v38  ;;  %v133_v51 = vmul.f32 %v2611_v40, %v2611_v40  ;;  %vm2629_vm4 = vmor %vm175_vm3, %vm176_vm2 }
  0x8a   :  { %v171_v37 = vmul.f32 %v2232_v30, %v170_v34  ;;  %vm185_vm6 = vweird.f32 %v162_v32  ;;  %v154_v29 = vsub.f32 %v2471_v5, %v2565_v60  ;;  %v2670_v34 = vld [vmem:[%s3971_s2] ss:$0 sm:$0xff] }
  0x8b   :  { %v147_v39 = vmax.f32 %v139_v35, 0.0  ;;  %v140_v42 = vsub.f32 %v124_v36, %v132_v31 }
  0x8c   :  { %v172_v43 = vmul.f32 0.5, %v171_v37 }
  0x8d   :  { %v2613_v44 = vadd.f32 1e-05, %v147_v39  ;;  %v148_v45 = vmax.f32 %v140_v42, 0.0 }
  0x8e   :  { %v67_v46 = vpop.xlane.xlu0 %66  ;;  %v114_v47 = vpop.xlane.xlu2 %113  ;;  %v173_v48 = vsub.f32 1.5, %v172_v43 }
  0x8f   :  { %2235 = vrsqrt.f32 %v2613_v44  ;;  %v2617_v49 = vmul.f32 %v2532_v38, %v67_v46  ;;  %v2234_v50 = vpop.eup %2233  ;;  %v2621_v52 = vadd.f32 1e-05, %v148_v45  ;;  %v126_v53 = vmul.f32 %v114_v47, %v2532_v38 }
  0x90   :  { %v111_v54 = vpop.xlane.xlu1 %110  ;;  %v174_v55 = vmul.f32 %v2232_v30, %v173_v48  ;;  %v180_v56 = vmul.f32 %v2234_v50, %v162_v32  ;;  %vm186_vm5 = vweird.f32 %v2234_v50  ;;  %vm195_vm12 = vweird.f32 %v2613_v44 }
  0x91   :  { %v134_v57 = vmul.f32 %v2617_v49, %v2617_v49  ;;  %2237 = vrsqrt.f32 %v2621_v52  ;;  %v125_v58 = vmul.f32 %v111_v54, %v2532_v38  ;;  %vm187_vm7 = vmor %vm185_vm6, %vm186_vm5  ;;  %vm205_vm8 = vweird.f32 %v2621_v52 }
  0x92   :  { %v181_v59 = vmul.f32 %v2234_v50, %v180_v56  ;;  %v178_v6 = vsel %vm2629_vm4, %v2232_v30, %v174_v55 }
  0x93   :  { %v142_v61 = vsub.f32 %v126_v53, %v134_v57  ;;  %v141_v2 = vsub.f32 %v125_v58, %v133_v51  ;;  %v249_v0 = vmul.f32 %v178_v6, %v153_v10  ;;  %v1995_v10 = vld [vmem:[%s3973_s4 + $0x38] sm:$0xf0] }
  0x94   :  { %v182_v8 = vmul.f32 0.5, %v181_v59  ;;  %v1993_v59 = vld [vmem:[%s3973_s4 + $0x28] sm:$0xf] }
  0x95   :  { %v2633_v3 = vpop.eup %2235  ;;  %v150_v9 = vmax.f32 %v142_v61, 0.0  ;;  %v149_v11 = vmax.f32 %v141_v2, 0.0  ;;  %v260_v35 = vmul.f32 %v2651_v20, %v249_v0  ;;  %v2190_v61 = vld [vmem:[%s3973_s4 + $0x34] sm:$0xf0] }
  0x96   :  { %v190_v62 = vmul.f32 %v2633_v3, %v2613_v44  ;;  %v70_v12 = vpop.xlane.xlu0 %69  ;;  %v117_v14 = vpop.xlane.xlu2 %116  ;;  %v183_v15 = vsub.f32 1.5, %v182_v8  ;;  %vm196_vm10 = vweird.f32 %v2633_v3  ;;  %v156_v44 = vsub.f32 %v2477_v7, %v2601_v21 }
  0x97   :  { %v2641_v16 = vadd.f32 1e-05, %v150_v9  ;;  %v2644_v18 = vmul.f32 %v2532_v38, %v70_v12  ;;  %v2646_v19 = vpop.eup %2237  ;;  %v2654_v22 = vadd.f32 1e-05, %v149_v11  ;;  %v127_v27 = vmul.f32 %v117_v14, %v2532_v38  ;;  %v2188_v9 = vld [vmem:[%s3973_s4 + $0x2c] sm:$0xf]  ;;  %vm2740_vm13 = vmor %vm195_vm12, %vm196_vm10 }
  0x98   :  { %v191_v41 = vmul.f32 %v2633_v3, %v190_v62  ;;  %v184_v24 = vmul.f32 %v2234_v50, %v183_v15  ;;  %v200_v25 = vmul.f32 %v2646_v19, %v2621_v52  ;;  %v73_v28 = vpop.xlane.xlu1 %72  ;;  %vm206_vm9 = vweird.f32 %v2646_v19  ;;  %v1985_v12 = vld [vmem:[%s3973_s4 + $0x20] sm:$0xf]  ;;  %v2189_v14 = vld [vmem:[%s3973_s4 + $0x2c] sm:$0xf0]  ;;  %v2187_v15 = vld [vmem:[%s3973_s4 + $0x24] sm:$0xf] }
  0x99   :  { %2239 = vrsqrt.f32 %v2641_v16  ;;  %v135_v33 = vmul.f32 %v2644_v18, %v2644_v18  ;;  %v2674_v5 = vmul.f32 %v2532_v38, %v73_v28  ;;  %v2687_v51 = vadd.f32 %v2670_v34, %v260_v35  ;;  %vm2711_vm11 = vmor %vm205_vm8, %vm206_vm9 }
  0x9a   :  { %v192_v30 = vmul.f32 0.5, %v191_v41  ;;  %2241 = vrsqrt.f32 %v2654_v22  ;;  %v188_v31 = vsel %vm187_vm7, %v2234_v50, %v184_v24  ;;  %v201_v32 = vmul.f32 %v2646_v19, %v200_v25  ;;  %v1987_v41 = vld [vmem:[%s3973_s4 + $0x30] sm:$0xf0] }
  0x9b   :  { %v250_v36 = vmul.f32 %v188_v31, %v154_v29  ;;  %v143_v39 = vsub.f32 %v127_v27, %v135_v33  ;;  %v136_v43 = vmul.f32 %v2674_v5, %v2674_v5  ;;  %4001 = vst [vmem:[#allocation3_spill] sm:$0xff] %v2687_v51  ;;  %v1994_v11 = vor.u32 %v2190_v61, %v1993_v59  ;;  %v1977_v27 = vld [vmem:[%s3973_s4 + $0x8] sm:$0xf]  ;;  %v1979_v31 = vld [vmem:[%s3973_s4 + $0x18] sm:$0xf0] }
  0x9c   :  { %v193_v60 = vsub.f32 1.5, %v192_v30  ;;  %v202_v37 = vmul.f32 0.5, %v201_v32  ;;  %v155_v7 = vsub.f32 %v2460_v1, %v2576_v4  ;;  %v1998_v25 = vor.u32 %v2188_v9, %v1995_v10  ;;  %v2186_v1 = vld [vmem:[%s3973_s4 + $0x14] sm:$0xf0]  ;;  %v2184_v30 = vld [vmem:[%s3973_s4 + $0xc] sm:$0xf] }
  0x9d   :  { %v261_v42 = vmul.f32 %v2651_v20, %v250_v36  ;;  %v151_v55 = vmax.f32 %v143_v39, 0.0  ;;  %591 = vmatpush.bf16.msrb.mxu2 %v1994_v11  ;;  %v1990_v29 = vor.u32 %v2187_v15, %v1987_v41  ;;  %v1978_v35 = vor.u32 %v2186_v1, %v1977_v27  ;;  %v2185_v39 = vld [vmem:[%s3973_s4 + $0xc] sm:$0xf0] }
  0x9e   :  { %v120_v45 = vpop.xlane.xlu0 %119  ;;  %v203_v47 = vsub.f32 1.5, %v202_v37  ;;  %v194_v56 = vmul.f32 %v2633_v3, %v193_v60  ;;  %620 = vmatpush.bf16.msrb.mxu3 %v1998_v25  ;;  %v1982_v36 = vor.u32 %v2184_v30, %v1979_v31  ;;  %v1969_v60 = vld [vmem:[%s3973_s4] sm:$0xf]  ;;  %vm225_vm14 = vweird.f32 %v2641_v16 }
  0x9f   :  { %v2679_v46 = vpop.eup %2239  ;;  %v128_v48 = vmul.f32 %v120_v45, %v2532_v38  ;;  %v2690_v53 = vadd.f32 %v2670_v34, %v261_v42  ;;  %v2744_v0 = vadd.f32 1e-05, %v151_v55  ;;  %562 = vmatpush.bf16.msrb.mxu1 %v1990_v29  ;;  %v2183_v42 = vld [vmem:[%s3973_s4 + $0x4] sm:$0xf]  ;;  %v1970_v45 = vor.u32 %v2185_v39, %v1969_v60  ;;  %v2198_v60 = vld [vmem:[%s3974_s7 + $0x38] sm:$0xff] }
  0xa0   :  { %v2684_v50 = vpop.eup %2241  ;;  %v220_v54 = vmul.f32 %v2679_v46, %v2641_v16  ;;  %v204_v57 = vmul.f32 %v2646_v19, %v203_v47  ;;  %v198_v21 = vsel %vm2740_vm13, %v2633_v3, %v194_v56  ;;  %v1986_v3 = vor.u32 %v2189_v14, %v1985_v12  ;;  %v2206_v39 = vld [vmem:[%s3974_s7 + $0x78] sm:$0xff] }
  0xa1   :  { %4002 = vst [vmem:[#allocation4_spill] sm:$0xff] %v2690_v53  ;;  %v210_v58 = vmul.f32 %v2684_v50, %v2654_v22  ;;  %v2707_v63 = vpack.c.bf16 %v2690_v53, %v2687_v51  ;;  %v144_v8 = vsub.f32 %v128_v48, %v136_v43  ;;  %v251_v37 = vmul.f32 %v198_v21, %v155_v7  ;;  %v1971_v43 = vld [vmem:[%s3973_s4 + $0x10] sm:$0xf0] }
  0xa2   :  { %v221_v6 = vmul.f32 %v2679_v46, %v220_v54  ;;  %v208_v52 = vsel %vm2711_vm11, %v2646_v19, %v204_v57  ;;  %2243 = vrsqrt.f32 %v2744_v0  ;;  %533 = vmatpush.bf16.msrb.mxu0 %v1986_v3  ;;  %592 = vmatpush.bf16.msrb.mxu2 %v1978_v35  ;;  %v1974_v48 = vor.u32 %v2183_v42, %v1971_v43 }
  0xa3   :  { %v211_v62 = vmul.f32 %v2684_v50, %v210_v58  ;;  %1951 = vmatmul.msk.bf16.vlgmr.msra.gmra.mxu0 %vm49_vm0, %v2707_v63  ;;  %1955 = vmatmul.msk.bf16.vlgmr.msra.gmra.mxu1 %vm49_vm0, %v2707_v63  ;;  %v152_v24 = vmax.f32 %v144_v8, 0.0  ;;  %v252_v4 = vmul.f32 %v208_v52, %v156_v44  ;;  %v262_v56 = vmul.f32 %v2651_v20, %v251_v37  ;;  %v2222_v37 = vld [vmem:[%s3974_s7 + $0xf8] sm:$0xff] }
  0xa4   :  { %1959 = vmatmul.msk.bf16.vlgmr.msra.gmra.mxu2 %vm49_vm0, %v2707_v63  ;;  %1963 = vmatmul.msk.bf16.vlgmr.msra.gmra.mxu3 %vm49_vm0, %v2707_v63  ;;  %v222_v28 = vmul.f32 0.5, %v221_v6  ;;  %vm226_vm15 = vweird.f32 %v2679_v46  ;;  %vm215_vm1 = vweird.f32 %v2654_v22  ;;  %vm216_vm2 = vweird.f32 %v2684_v50 }
  0xa5   :  { %v212_v32 = vmul.f32 0.5, %v211_v62  ;;  %v2774_v33 = vadd.f32 1e-05, %v152_v24  ;;  %v263_v47 = vmul.f32 %v2651_v20, %v252_v4  ;;  %621 = vmatpush.bf16.msrb.mxu3 %v1982_v36  ;;  %563 = vmatpush.bf16.msrb.mxu1 %v1974_v48  ;;  %v2802_v6 = vadd.f32 %v2670_v34, %v262_v56  ;;  %vm227_vm3 = vmor %vm225_vm14, %vm226_vm15  ;;  %v2214_v36 = vld [vmem:[%s3974_s7 + $0xb8] sm:$0xff]  ;;  %v2213_v48 = vld [vmem:[%s3974_s7 + $0xb0] sm:$0xff] }
  0xa6   :  { %v223_v54 = vsub.f32 1.5, %v222_v28  ;;  %534 = vmatpush.bf16.msrb.mxu0 %v1970_v45  ;;  %vm217_vm4 = vmor %vm215_vm1, %vm216_vm2  ;;  %v157_v22 = vsub.f32 %v2491_v13, %v2611_v40  ;;  %v158_v11 = vsub.f32 %v2501_v17, %v2617_v49  ;;  %vm235_vm7 = vweird.f32 %v2744_v0  ;;  %1617 = vmatpush.bf16.msra.mxu2 %v2214_v36  ;;  %v2205_v56 = vld [vmem:[%s3974_s7 + $0x70] sm:$0xff] }
  0xa7   :  { %2245 = vrsqrt.f32 %v2774_v33  ;;  %v213_v55 = vsub.f32 1.5, %v212_v32  ;;  %v2795_v58 = vadd.f32 %v2670_v34, %v263_v47  ;;  %4008 = vst [vmem:[#allocation6_spill] sm:$0xff] %v2802_v6  ;;  %vm245_vm5 = vweird.f32 %v2774_v33 }
  0xa8   :  { %v2244_v57 = vpop.eup %2243  ;;  %v224_v61 = vmul.f32 %v2679_v46, %v223_v54  ;;  %v160_v25 = vsub.f32 %v2522_v26, %v2674_v5  ;;  %v2197_v54 = vld [vmem:[%s3974_s7 + $0x30] sm:$0xff] }
  0xa9   :  { %4007 = vst [vmem:[#allocation5_spill] sm:$0xff] %v2795_v58  ;;  %v214_v2 = vmul.f32 %v2684_v50, %v213_v55  ;;  %v230_v8 = vmul.f32 %v2244_v57, %v2744_v0  ;;  %v280_v9 = vpack.c.bf16 %v2795_v58, %v2802_v6  ;;  %vm236_vm8 = vweird.f32 %v2244_v57  ;;  %1646 = vmatpush.bf16.msra.mxu3 %v2222_v37  ;;  %v2221_v55 = vld [vmem:[%s3974_s7 + $0xf0] sm:$0xff] }
  0xaa   :  { %v228_v10 = vsel %vm227_vm3, %v2679_v46, %v224_v61  ;;  %vm237_vm10 = vmor %vm235_vm7, %vm236_vm8  ;;  %v159_v0 = vsub.f32 %v2514_v23, %v2644_v18  ;;  %1559 = vmatpush.bf16.msra.mxu0 %v2198_v60  ;;  %1588 = vmatpush.bf16.msra.mxu1 %v2206_v39 }
  0xab   :  { %v218_v52 = vsel %vm217_vm4, %v2684_v50, %v214_v2  ;;  %v231_v12 = vmul.f32 %v2244_v57, %v230_v8  ;;  %v254_v14 = vmul.f32 %v228_v10, %v158_v11  ;;  %1618 = vmatpush.bf16.msra.mxu2 %v2213_v48  ;;  %v477_v48 = vld [vmem:[%s3976_s6] sm:$0xf] }
  0xac   :  { %v253_v46 = vmul.f32 %v218_v52, %v157_v22 }
  0xad   :  { %v2246_v59 = vpop.eup %2245  ;;  %v232_v50 = vmul.f32 0.5, %v231_v12  ;;  %v265_v44 = vmul.f32 %v2651_v20, %v254_v14  ;;  %1647 = vmatpush.bf16.msra.mxu3 %v2221_v55  ;;  %v2220_v55 = vld [vmem:[%s3974_s7 + $0xe8] sm:$0xff] }
  0xae   :  { %v240_v16 = vmul.f32 %v2246_v59, %v2774_v33  ;;  %v264_v13 = vmul.f32 %v2651_v20, %v253_v46  ;;  %vm246_vm6 = vweird.f32 %v2246_v59  ;;  %1560 = vmatpush.bf16.msra.mxu0 %v2197_v54  ;;  %1589 = vmatpush.bf16.msra.mxu1 %v2205_v56  ;;  %v2212_v54 = vld [vmem:[%s3974_s7 + $0xa8] sm:$0xff]  ;;  %v2195_v56 = vld [vmem:[%s3974_s7 + $0x20] sm:$0xff] }
  0xaf   :  { %v233_v19 = vsub.f32 1.5, %v232_v50  ;;  %v2822_v17 = vadd.f32 %v2670_v34, %v265_v44  ;;  %vm247_vm9 = vmor %vm245_vm5, %vm246_vm6  ;;  %1619 = vmatpush.bf16.msra.mxu2 %v2212_v54  ;;  %v3026_v54 = vperm.slane %v477_v48, 2 }
  0xb0   :  { %v241_v62 = vmul.f32 %v2246_v59, %v240_v16  ;;  %v2825_v49 = vadd.f32 %v2670_v34, %v264_v13 }
  0xb1   :  { %4009 = vst [vmem:[#allocation7_spill] sm:$0xff] %v2822_v17  ;;  %v234_v7 = vmul.f32 %v2244_v57, %v233_v19  ;;  %1648 = vmatpush.bf16.msra.mxu3 %v2220_v55  ;;  %v3028_v55 = vperm.slane %v477_v48, 3 }
  0xb2   :  { %v242_v15 = vmul.f32 0.5, %v241_v62  ;;  %4010 = vst [vmem:[#allocation8_spill] sm:$0xff] %v2825_v49  ;;  %v281_v21 = vpack.c.bf16 %v2822_v17, %v2825_v49 }
  0xb3   :  { %1952 = vmatmul.msk.bf16.gmra.mxu0 %vm49_vm0, %v280_v9  ;;  %1956 = vmatmul.msk.bf16.gmra.mxu1 %vm49_vm0, %v280_v9  ;;  %v238_v27 = vsel %vm237_vm10, %v2244_v57, %v234_v7  ;;  %v291_v57 = vld [vmem:[%s3975_s5] sm:$0xf] }
  0xb4   :  { %1960 = vmatmul.msk.bf16.gmra.mxu2 %vm49_vm0, %v280_v9  ;;  %1964 = vmatmul.msk.bf16.gmra.mxu3 %vm49_vm0, %v280_v9  ;;  %v243_v40 = vsub.f32 1.5, %v242_v15  ;;  %v255_v4 = vmul.f32 %v238_v27, %v159_v0  ;;  %v2929_v61 = vperm.slane %v291_v57, 1  ;;  %v2941_v62 = vperm.slane %v291_v57, 2  ;;  %v2196_v0 = vld [vmem:[%s3974_s7 + $0x28] sm:$0xff] }
  0xb5   :  { %v2943_v22 = vperm.slane %v291_v57, 3  ;;  %1561 = vmatpush.bf16.msra.mxu0 %v2196_v0  ;;  %v2194_v0 = vld [vmem:[%s3974_s7 + $0x18] sm:$0xff] }
  0xb6   :  { %v244_v41 = vmul.f32 %v2246_v59, %v243_v40  ;;  %v266_v3 = vmul.f32 %v2651_v20, %v255_v4 }
  0xb8   :  { %v248_v24 = vsel %vm247_vm9, %v2246_v59, %v244_v41  ;;  %v2844_v5 = vadd.f32 %v2670_v34, %v266_v3  ;;  %v2927_v59 = vperm.slane %v291_v57, 0  ;;  %v2203_v57 = vld [vmem:[%s3974_s7 + $0x60] sm:$0xff] }
  0xb9   :  { %v256_v1 = vmul.f32 %v248_v24, %v160_v25  ;;  %1562 = vmatpush.bf16.msra.mxu0 %v2195_v56  ;;  %v2193_v56 = vld [vmem:[%s3974_s7 + $0x10] sm:$0xff] }
  0xba   :  { %4012 = vst [vmem:[#allocation10_spill] sm:$0xff] %v2844_v5 }
  0xbb   :  { %v267_v28 = vmul.f32 %v2651_v20, %v256_v1  ;;  %v2204_v1 = vld [vmem:[%s3974_s7 + $0x68] sm:$0xff] }
  0xbc   :  { %1590 = vmatpush.bf16.msra.mxu1 %v2204_v1 }
  0xbd   :  { %v2841_v26 = vadd.f32 %v2670_v34, %v267_v28  ;;  %1563 = vmatpush.bf16.msra.mxu0 %v2194_v0 }
  0xbf   :  { %4011 = vst [vmem:[#allocation9_spill] sm:$0xff] %v2841_v26  ;;  %v282_v29 = vpack.c.bf16 %v2841_v26, %v2844_v5 }
  0xc0   :  { %1591 = vmatpush.bf16.msra.mxu1 %v2203_v57  ;;  %v2201_v57 = vld [vmem:[%s3974_s7 + $0x50] sm:$0xff] }
  0xc1   :  { %1564 = vmatpush.bf16.msra.mxu0 %v2193_v56 }
  0xc3   :  { %1953 = vmatmul.msk.bf16.gmra.mxu0 %vm49_vm0, %v281_v21  ;;  %1957 = vmatmul.msk.bf16.gmra.mxu1 %vm49_vm0, %v281_v21 }
  0xc4   :  { %1961 = vmatmul.msk.bf16.gmra.mxu2 %vm49_vm0, %v281_v21  ;;  %1965 = vmatmul.msk.bf16.gmra.mxu3 %vm49_vm0, %v281_v21 }
  0xd3   :  { %1954 = vmatmul.msk.bf16.gmra.mxu0 %vm49_vm0, %v282_v29  ;;  %1958 = vmatmul.msk.bf16.gmra.mxu1 %vm49_vm0, %v282_v29 }
  0xd4   :  { %1962 = vmatmul.msk.bf16.gmra.mxu2 %vm49_vm0, %v282_v29  ;;  %1966 = vmatmul.msk.bf16.gmra.mxu3 %vm49_vm0, %v282_v29 }
  0xe3   :  { %1999 = vmatmul.msk.bf16.vlgmr.msrb.gmra.mxu0 %vm49_vm0, %v2707_v63  ;;  %2003 = vmatmul.msk.bf16.vlgmr.msrb.gmra.mxu1 %vm49_vm0, %v2707_v63 }
  0xe4   :  { %2007 = vmatmul.msk.bf16.vlgmr.msrb.gmra.mxu2 %vm49_vm0, %v2707_v63  ;;  %2011 = vmatmul.msk.bf16.vlgmr.msrb.gmra.mxu3 %vm49_vm0, %v2707_v63 }
  0xf3   :  { %2000 = vmatmul.msk.bf16.gmra.mxu0 %vm49_vm0, %v280_v9  ;;  %2004 = vmatmul.msk.bf16.gmra.mxu1 %vm49_vm0, %v280_v9 }
  0xf4   :  { %2008 = vmatmul.msk.bf16.gmra.mxu2 %vm49_vm0, %v280_v9  ;;  %2012 = vmatmul.msk.bf16.gmra.mxu3 %vm49_vm0, %v280_v9 }
 0x103   :  { %2001 = vmatmul.msk.bf16.gmra.mxu0 %vm49_vm0, %v281_v21  ;;  %2005 = vmatmul.msk.bf16.gmra.mxu1 %vm49_vm0, %v281_v21 }
 0x104   :  { %2009 = vmatmul.msk.bf16.gmra.mxu2 %vm49_vm0, %v281_v21  ;;  %2013 = vmatmul.msk.bf16.gmra.mxu3 %vm49_vm0, %v281_v21 }
 0x113   :  { %2002 = vmatmul.msk.bf16.gmra.mxu0 %vm49_vm0, %v282_v29  ;;  %2006 = vmatmul.msk.bf16.gmra.mxu1 %vm49_vm0, %v282_v29 }
 0x114   :  { %2010 = vmatmul.msk.bf16.gmra.mxu2 %vm49_vm0, %v282_v29  ;;  %2014 = vmatmul.msk.bf16.gmra.mxu3 %vm49_vm0, %v282_v29 }
 0x120   :  { %v2872_v23 = vpop.f32.mrf.mxu0  ;;  %v2874_v18 = vpop.f32.mrf.mxu1 }
 0x127   :  { %v2876_v20 = vpop.f32.mrf.mxu2  ;;  %v2878_v34 = vpop.f32.mrf.mxu3 }
 0x128   :  { %v2880_v63 = vpop.f32.mrf.mxu0  ;;  %v2882_v30 = vpop.f32.mrf.mxu1 }
 0x129   :  { %v3100_v38 = vadd.f32 %v2882_v30, %v2929_v61 }
 0x12f   :  { %v2884_v31 = vpop.f32.mrf.mxu2  ;;  %v2886_v32 = vpop.f32.mrf.mxu3 }
 0x130   :  { %v2888_v33 = vpop.f32.mrf.mxu0  ;;  %v2890_v35 = vpop.f32.mrf.mxu1  ;;  %v3104_v26 = vadd.f32 %v2884_v31, %v2941_v62 }
 0x131   :  { %v3117_v30 = vadd.f32 %v2890_v35, %v2929_v61 }
 0x133   :  { %4029 = vst [vmem:[#allocation27_spill] sm:$0xff] %v3117_v30 }
 0x137   :  { %v2904_v42 = vpop.f32.mrf.mxu2  ;;  %v2906_v43 = vpop.f32.mrf.mxu3 }
 0x138   :  { %v2908_v45 = vpop.f32.mrf.mxu0  ;;  %v2910_v47 = vpop.f32.mrf.mxu1  ;;  %v3133_v35 = vadd.f32 %v2906_v43, %v2943_v22 }
 0x13a   :  { %4031 = vst [vmem:[#allocation29_spill] sm:$0xff] %v3133_v35 }
 0x13f   :  { %v2931_v2 = vpop.f32.mrf.mxu2  ;;  %v2933_v16 = vpop.f32.mrf.mxu3 }
 0x140   :  { %v372_v8 = vpop.f32.mrf.mxu0  ;;  %v401_v9 = vpop.f32.mrf.mxu1 }
 0x141   :  { %v2936_v10 = vadd.f32 %v372_v8, %v2927_v59  ;;  %v2939_v52 = vadd.f32 %v401_v9, %v2929_v61  ;;  %v3002_v8 = vperm.slane %v477_v48, 0  ;;  %v3004_v9 = vperm.slane %v477_v48, 1 }
 0x143   :  { %4013 = vst [vmem:[#allocation11_spill] sm:$0xff] %v2936_v10 }
 0x144   :  { %4014 = vst [vmem:[#allocation12_spill] sm:$0xff] %v2939_v52 }
 0x147   :  { %v430_v11 = vpop.f32.mrf.mxu2  ;;  %v459_v12 = vpop.f32.mrf.mxu3 }
 0x148   :  { %v2946_v14 = vadd.f32 %v430_v11, %v2941_v62  ;;  %v2949_v46 = vadd.f32 %v459_v12, %v2943_v22  ;;  %v374_v15 = vpop.f32.mrf.mxu0  ;;  %v403_v50 = vpop.f32.mrf.mxu1 }
 0x149   :  { %v2952_v44 = vadd.f32 %v374_v15, %v2927_v59  ;;  %v2955_v13 = vadd.f32 %v403_v50, %v2929_v61 }
 0x14a   :  { %4015 = vst [vmem:[#allocation13_spill] sm:$0xff] %v2946_v14 }
 0x14b   :  { %4016 = vst [vmem:[#allocation14_spill] sm:$0xff] %v2949_v46 }
 0x14c   :  { %4017 = vst [vmem:[#allocation15_spill] sm:$0xff] %v2952_v44 }
 0x14d   :  { %4018 = vst [vmem:[#allocation16_spill] sm:$0xff] %v2955_v13 }
 0x14f   :  { %v432_v40 = vpop.f32.mrf.mxu2  ;;  %v461_v19 = vpop.f32.mrf.mxu3 }
 0x150   :  { %v2958_v41 = vadd.f32 %v432_v40, %v2941_v62  ;;  %v2961_v7 = vadd.f32 %v461_v19, %v2943_v22  ;;  %v377_v21 = vpop.f32.mrf.mxu0  ;;  %v406_v24 = vpop.f32.mrf.mxu1 }
 0x151   :  { %v2964_v25 = vadd.f32 %v377_v21, %v2927_v59  ;;  %v2967_v27 = vadd.f32 %v406_v24, %v2929_v61  ;;  %v2211_v21 = vld [vmem:[%s3974_s7 + $0xa0] sm:$0xff] }
 0x152   :  { %4019 = vst [vmem:[#allocation17_spill] sm:$0xff] %v2958_v41  ;;  %v2219_v24 = vld [vmem:[%s3974_s7 + $0xe0] sm:$0xff]  ;;  %1620 = vmatpush.bf16.msra.mxu2 %v2211_v21 }
 0x153   :  { %4020 = vst [vmem:[#allocation18_spill] sm:$0xff] %v2961_v7  ;;  %1649 = vmatpush.bf16.msra.mxu3 %v2219_v24 }
 0x154   :  { %4021 = vst [vmem:[#allocation19_spill] sm:$0xff] %v2964_v25 }
 0x155   :  { %4022 = vst [vmem:[#allocation20_spill] sm:$0xff] %v2967_v27 }
 0x157   :  { %v435_v4 = vpop.f32.mrf.mxu2  ;;  %v464_v28 = vpop.f32.mrf.mxu3 }
 0x158   :  { %v2976_v3 = vadd.f32 %v435_v4, %v2941_v62  ;;  %v2979_v29 = vadd.f32 %v464_v28, %v2943_v22  ;;  %v379_v36 = vpop.f32.mrf.mxu0  ;;  %v408_v60 = vpop.f32.mrf.mxu1  ;;  %v2202_v28 = vld [vmem:[%s3974_s7 + $0x58] sm:$0xff] }
 0x159   :  { %v2982_v37 = vadd.f32 %v379_v36, %v2927_v59  ;;  %v2985_v39 = vadd.f32 %v408_v60, %v2929_v61  ;;  %1592 = vmatpush.bf16.msra.mxu1 %v2202_v28  ;;  %v2192_v28 = vld [vmem:[%s3974_s7 + $0x8] sm:$0xff] }
 0x15a   :  { %4023 = vst [vmem:[#allocation21_spill] sm:$0xff] %v2976_v3  ;;  %1565 = vmatpush.bf16.msra.mxu0 %v2192_v28  ;;  %v2199_v28 = vld [vmem:[%s3974_s7 + $0x40] sm:$0xff] }
 0x15b   :  { %4024 = vst [vmem:[#allocation22_spill] sm:$0xff] %v2979_v29 }
 0x15c   :  { %4025 = vst [vmem:[#allocation23_spill] sm:$0xff] %v2982_v37 }
 0x15d   :  { %4026 = vst [vmem:[#allocation24_spill] sm:$0xff] %v2985_v39  ;;  %1593 = vmatpush.bf16.msra.mxu1 %v2201_v57  ;;  %v2209_v57 = vld [vmem:[%s3974_s7 + $0x90] sm:$0xff] }
 0x15f   :  { %v437_v11 = vpop.f32.mrf.mxu2  ;;  %v466_v12 = vpop.f32.mrf.mxu3 }
 0x160   :  { %v3007_v15 = vadd.f32 %v437_v11, %v2941_v62  ;;  %v3010_v50 = vadd.f32 %v466_v12, %v2943_v22  ;;  %v536_v40 = vpop.f32.mrf.mxu0  ;;  %v565_v19 = vpop.f32.mrf.mxu1  ;;  %v2210_v11 = vld [vmem:[%s3974_s7 + $0x98] sm:$0xff] }
 0x161   :  { %v537_v1 = vadd.f32 %v536_v40, %v3002_v8  ;;  %v566_v4 = vadd.f32 %v565_v19, %v3004_v9  ;;  %v2218_v12 = vld [vmem:[%s3974_s7 + $0xd8] sm:$0xff]  ;;  %1621 = vmatpush.bf16.msra.mxu2 %v2210_v11  ;;  %v2217_v11 = vld [vmem:[%s3974_s7 + $0xd0] sm:$0xff] }
 0x162   :  { %4027 = vst [vmem:[#allocation25_spill] sm:$0xff] %v3007_v15  ;;  %1650 = vmatpush.bf16.msra.mxu3 %v2218_v12 }
 0x163   :  { %4028 = vst [vmem:[#allocation26_spill] sm:$0xff] %v3010_v50  ;;  %v2015_v36 = vmul.f32 -1.442695, %v537_v1  ;;  %v2016_v60 = vmul.f32 -1.442695, %v566_v4 }
 0x165   :  { %2247 = vpow2.f32 %v2015_v36  ;;  %v2200_v36 = vld [vmem:[%s3974_s7 + $0x48] sm:$0xff]  ;;  %1622 = vmatpush.bf16.msra.mxu2 %v2209_v57 }
 0x166   :  { %2249 = vpow2.f32 %v2016_v60  ;;  %1594 = vmatpush.bf16.msra.mxu1 %v2200_v36  ;;  %1651 = vmatpush.bf16.msra.mxu3 %v2217_v11  ;;  %v3070_v36 = vadd.f32 %v2872_v23, %v2927_v59  ;;  %v2208_v23 = vld [vmem:[%s3974_s7 + $0x88] sm:$0xff] }
 0x167   :  { %v594_v48 = vpop.f32.mrf.mxu2  ;;  %v623_v40 = vpop.f32.mrf.mxu3 }
 0x168   :  { %v595_v19 = vadd.f32 %v594_v48, %v3026_v54  ;;  %v624_v21 = vadd.f32 %v623_v40, %v3028_v55  ;;  %v538_v24 = vpop.f32.mrf.mxu0  ;;  %v567_v0 = vpop.f32.mrf.mxu1 }
 0x169   :  { %v539_v1 = vadd.f32 %v538_v24, %v3002_v8  ;;  %v568_v4 = vadd.f32 %v567_v0, %v3004_v9  ;;  %v2191_v0 = vld [vmem:[%s3974_s7] sm:$0xff]  ;;  %1623 = vmatpush.bf16.msra.mxu2 %v2208_v23 }
 0x16a   :  { %v2017_v60 = vmul.f32 -1.442695, %v595_v19  ;;  %v2018_v56 = vmul.f32 -1.442695, %v624_v21  ;;  %1566 = vmatpush.bf16.msra.mxu0 %v2191_v0  ;;  %1595 = vmatpush.bf16.msra.mxu1 %v2199_v28  ;;  %v3113_v28 = vadd.f32 %v2888_v33, %v2927_v59  ;;  %v2207_v33 = vld [vmem:[%s3974_s7 + $0x80] sm:$0xff] }
 0x16b   :  { %v2248_v12 = vpop.eup %2247  ;;  %v2019_v24 = vmul.f32 -1.442695, %v539_v1  ;;  %v2020_v21 = vmul.f32 -1.442695, %v568_v4  ;;  %v3075_v1 = vadd.f32 %v2874_v18, %v2929_v61  ;;  %v3079_v4 = vadd.f32 %v2876_v20, %v2941_v62  ;;  %v2216_v18 = vld [vmem:[%s3974_s7 + $0xc8] sm:$0xff] }
 0x16c   :  { %v2250_v48 = vpop.eup %2249  ;;  %v3058_v40 = vadd.f32 1.0, %v2248_v12  ;;  %2251 = vpow2.f32 %v2017_v60  ;;  %v3083_v60 = vadd.f32 %v2878_v34, %v2943_v22  ;;  %v3094_v20 = vadd.f32 %v2880_v63, %v2927_v59  ;;  %1652 = vmatpush.bf16.msra.mxu3 %v2216_v18 }
 0x16d   :  { %v3060_v19 = vadd.f32 1.0, %v2250_v48  ;;  %2253 = vpow2.f32 %v2018_v56  ;;  %1624 = vmatpush.bf16.msra.mxu2 %v2207_v33 }
 0x16e   :  { %2255 = vrcp.f32 %v3058_v40  ;;  %vm776_vm11 = vweird.f32 %v3058_v40 }
 0x16f   :  { %2257 = vrcp.f32 %v3060_v19  ;;  %v596_v56 = vpop.f32.mrf.mxu2  ;;  %v625_v57 = vpop.f32.mrf.mxu3  ;;  %v797_v50 = vand.u32 2147483648, %v3060_v19  ;;  %vm791_vm2 = vweird.f32 %v3060_v19 }
 0x170   :  { %2259 = vpow2.f32 %v2019_v24  ;;  %v597_v34 = vadd.f32 %v596_v56, %v3026_v54  ;;  %v626_v11 = vadd.f32 %v625_v57, %v3028_v55  ;;  %v541_v12 = vpop.f32.mrf.mxu0  ;;  %v570_v48 = vpop.f32.mrf.mxu1  ;;  %v3109_v24 = vadd.f32 %v2886_v32, %v2943_v22 }
 0x171   :  { %2261 = vpow2.f32 %v2020_v21  ;;  %v542_v0 = vadd.f32 %v541_v12, %v3002_v8  ;;  %v3121_v21 = vadd.f32 %v2904_v42, %v2941_v62  ;;  %v571_v32 = vadd.f32 %v570_v48, %v3004_v9 }
 0x172   :  { %v2252_v63 = vpop.eup %2251  ;;  %v2021_v31 = vmul.f32 -1.442695, %v597_v34  ;;  %v2022_v23 = vmul.f32 -1.442695, %v626_v11  ;;  %v3141_v11 = vadd.f32 %v2908_v45, %v2927_v59 }
 0x173   :  { %v2254_v56 = vpop.eup %2253  ;;  %4030 = vst [vmem:[#allocation28_spill] sm:$0xff] %v3121_v21  ;;  %v3123_v57 = vadd.f32 1.0, %v2252_v63  ;;  %v2023_v42 = vmul.f32 -1.442695, %v542_v0  ;;  %v782_v63 = vand.u32 2147483648, %v3058_v40 }
 0x174   :  { %v3129_v18 = vpop.eup %2255  ;;  %v3135_v34 = vadd.f32 1.0, %v2254_v56  ;;  %2263 = vpow2.f32 %v2021_v31  ;;  %v780_v31 = vand.u32 2147483647, %v3058_v40  ;;  %v2024_v33 = vmul.f32 -1.442695, %v571_v32 }
 0x175   :  { %v3137_v12 = vpop.eup %2257  ;;  %v772_v48 = vmul.f32 %v3129_v18, %v3058_v40  ;;  %2265 = vrcp.f32 %v3123_v57  ;;  %vm777_vm12 = vweird.f32 %v3129_v18  ;;  %vm806_vm10 = vweird.f32 %v3123_v57 }
 0x176   :  { %v2260_v43 = vpop.eup %2259  ;;  %v787_v0 = vmul.f32 %v3137_v12, %v3060_v19  ;;  %2267 = vrcp.f32 %v3135_v34  ;;  %vm3189_vm13 = vcmp.eq.f32.partialorder %v780_v31, 8.507059e+37  ;;  %vm3204_vm14 = vmor %vm776_vm11, %vm777_vm12  ;;  %vm792_vm1 = vweird.f32 %v3137_v12 }
 0x177   :  { %v2262_v59 = vpop.eup %2261  ;;  %v773_v56 = vsub.f32 1.0, %v772_v48  ;;  %v3153_v5 = vadd.f32 1.0, %v2260_v43  ;;  %2269 = vpow2.f32 %v2022_v23  ;;  %v599_v17 = vpop.f32.mrf.mxu2  ;;  %v3162_v43 = vor.u32 1.1754944e-38, %v782_v63  ;;  %vm3315_vm8 = vmor %vm791_vm2, %vm792_vm1 }
 0x178   :  { %v628_v49 = vpop.f32.mrf.mxu3  ;;  %v3155_v58 = vadd.f32 1.0, %v2262_v59  ;;  %2271 = vpow2.f32 %v2023_v42  ;;  %v600_v6 = vadd.f32 %v599_v17, %v3026_v54  ;;  %v543_v53 = vpop.f32.mrf.mxu0  ;;  %v788_v32 = vsub.f32 1.0, %v787_v0  ;;  %v2215_v0 = vld [vmem:[%s3974_s7 + $0xc0] sm:$0xff] }
 0x179   :  { %v572_v51 = vpop.f32.mrf.mxu1  ;;  %v774_v29 = vmul.f32 %v3129_v18, %v773_v56  ;;  %2273 = vrcp.f32 %v3153_v5  ;;  %v629_v48 = vadd.f32 %v628_v49, %v3028_v55  ;;  %v544_v56 = vadd.f32 %v543_v53, %v3002_v8  ;;  %1653 = vmatpush.bf16.msra.mxu3 %v2215_v0 }
 0x17a   :  { %v2264_v23 = vpop.eup %2263  ;;  %2275 = vrcp.f32 %v3155_v58  ;;  %v2025_v59 = vmul.f32 -1.442695, %v600_v6  ;;  %v573_v63 = vadd.f32 %v572_v51, %v3004_v9  ;;  %v3196_v37 = vmul.f32 %v3137_v12, %v788_v32 }
 0x17b   :  { %v3166_v17 = vpop.eup %2265  ;;  %v3168_v42 = vadd.f32 1.0, %v2264_v23  ;;  %2277 = vpow2.f32 %v2024_v33  ;;  %v2026_v45 = vmul.f32 -1.442695, %v629_v48  ;;  %v3177_v6 = vadd.f32 %v3129_v18, %v774_v29 }
 0x17c   :  { %v3171_v15 = vpop.eup %2267  ;;  %v802_v49 = vmul.f32 %v3166_v17, %v3123_v57  ;;  %2279 = vpow2.f32 %v2025_v59  ;;  %v2027_v53 = vmul.f32 -1.442695, %v544_v56  ;;  %v3185_v48 = vor.u32 1.1754944e-38, %v797_v50 }
 0x17d   :  { %v2270_v23 = vpop.eup %2269  ;;  %v817_v33 = vmul.f32 %v3171_v15, %v3135_v34  ;;  %2281 = vrcp.f32 %v3168_v42  ;;  %v2028_v51 = vmul.f32 -1.442695, %v573_v63  ;;  %v779_v40 = vsel %vm3204_vm14, %v3129_v18, %v3177_v6 }
 0x17e   :  { %v2272_v3 = vpop.eup %2271  ;;  %v803_v59 = vsub.f32 1.0, %v802_v49  ;;  %v3187_v39 = vadd.f32 1.0, %v2270_v23  ;;  %2283 = vpow2.f32 %v2026_v45  ;;  %vm836_vm15 = vweird.f32 %v3153_v5 }
 0x17f   :  { %v3193_v27 = vpop.eup %2273  ;;  %v3198_v25 = vadd.f32 1.0, %v2272_v3  ;;  %2285 = vpow2.f32 %v2027_v53  ;;  %v601_v50 = vpop.f32.mrf.mxu2  ;;  %v818_v63 = vsub.f32 1.0, %v817_v33  ;;  %v784_v35 = vsel %vm3189_vm13, %v3162_v43, %v779_v40 }
 0x180   :  { %v630_v56 = vpop.f32.mrf.mxu3  ;;  %v3209_v49 = vpop.eup %2275  ;;  %v832_v3 = vmul.f32 %v3193_v27, %v3153_v5  ;;  %2287 = vrcp.f32 %v3187_v39  ;;  %v3219_v53 = vmul.f32 %v3166_v17, %v803_v59  ;;  %v602_v33 = vadd.f32 %v601_v50, %v3026_v54 }
 0x181   :  { %v546_v32 = vpop.f32.mrf.mxu0  ;;  %v575_v0 = vpop.f32.mrf.mxu1  ;;  %v847_v45 = vmul.f32 %v3209_v49, %v3155_v58  ;;  %2289 = vrcp.f32 %v3198_v25  ;;  %v631_v14 = vadd.f32 %v630_v56, %v3028_v55  ;;  %v3234_v44 = vmul.f32 %v3171_v15, %v818_v63 }
 0x182   :  { %v2278_v23 = vpop.eup %2277  ;;  %v833_v46 = vsub.f32 1.0, %v832_v3  ;;  %2291 = vpow2.f32 %v2028_v51  ;;  %v2029_v59 = vmul.f32 -1.442695, %v602_v33  ;;  %v547_v13 = vadd.f32 %v546_v32, %v3002_v8 }
 0x183   :  { %v2280_v7 = vpop.eup %2279  ;;  %v3225_v41 = vadd.f32 1.0, %v2278_v23  ;;  %v848_v18 = vsub.f32 1.0, %v847_v45  ;;  %v2030_v63 = vmul.f32 -1.442695, %v631_v14  ;;  %v576_v23 = vadd.f32 %v575_v0, %v3004_v9 }
 0x184   :  { %v3228_v31 = vpop.eup %2281  ;;  %v3230_v6 = vadd.f32 1.0, %v2280_v7  ;;  %v834_v50 = vmul.f32 %v3193_v27, %v833_v46  ;;  %v2031_v32 = vmul.f32 -1.442695, %v547_v13  ;;  %vm851_vm3 = vweird.f32 %v3155_v58 }
 0x185   :  { %v2284_v52 = vpop.eup %2283  ;;  %v862_v51 = vmul.f32 %v3228_v31, %v3168_v42  ;;  %2293 = vrcp.f32 %v3225_v41  ;;  %v849_v56 = vmul.f32 %v3209_v49, %v848_v18  ;;  %v2032_v13 = vmul.f32 -1.442695, %v576_v23 }
 0x186   :  { %4036 = vst [vmem:[#allocation30_spill] sm:$0xff] %v3230_v6  ;;  %v2286_v7 = vpop.eup %2285  ;;  %2295 = vrcp.f32 %v3230_v6  ;;  %v3244_v45 = vadd.f32 1.0, %v2284_v52  ;;  %v835_v21 = vadd.f32 %v3193_v27, %v834_v50  ;;  %v4038_v43 = vand.u32 2147483647, %v3060_v19 }
 0x187   :  { %v3246_v3 = vpop.eup %2287  ;;  %v3249_v46 = vadd.f32 1.0, %v2286_v7  ;;  %2297 = vpow2.f32 %v2029_v59  ;;  %v863_v10 = vsub.f32 1.0, %v862_v51  ;;  %v604_v52 = vpop.f32.mrf.mxu2  ;;  %vm837_vm5 = vweird.f32 %v3193_v27 }
 0x188   :  { %4037 = vst [vmem:[#allocation31_spill] sm:$0xff] %v3244_v45  ;;  %v3252_v33 = vpop.eup %2289  ;;  %v877_v18 = vmul.f32 %v3246_v3, %v3187_v39  ;;  %2299 = vrcp.f32 %v3244_v45  ;;  %v633_v14 = vpop.f32.mrf.mxu3  ;;  %v605_v0 = vadd.f32 %v604_v52, %v3026_v54  ;;  %vm3269_vm4 = vcmp.eq.f32.partialorder %v4038_v43, 8.507059e+37  ;;  %vm3294_vm6 = vmor %vm836_vm15, %vm837_vm5 }
 0x189   :  { %v2292_v7 = vpop.eup %2291  ;;  %2301 = vrcp.f32 %v3249_v46  ;;  %v548_v59 = vpop.f32.mrf.mxu0  ;;  %v634_v6 = vadd.f32 %v633_v14, %v3028_v55  ;;  %vm852_vm9 = vweird.f32 %v3209_v49  ;;  %vm866_vm12 = vweird.f32 %v3168_v42 }
 0x18a   :  { %v577_v51 = vpop.f32.mrf.mxu1  ;;  %v878_v30 = vsub.f32 1.0, %v877_v18  ;;  %v3264_v45 = vadd.f32 1.0, %v2292_v7  ;;  %2303 = vpow2.f32 %v2030_v63  ;;  %v2033_v23 = vmul.f32 -1.442695, %v605_v0  ;;  %vm3337_vm11 = vmor %vm851_vm3, %vm852_vm9 }
 0x18b   :  { %v3273_v40 = vpop.eup %2293  ;;  %2305 = vpow2.f32 %v2031_v32  ;;  %v549_v52 = vadd.f32 %v548_v59, %v3002_v8  ;;  %v578_v50 = vadd.f32 %v577_v51, %v3004_v9  ;;  %v3280_v63 = vmul.f32 %v3228_v31, %v863_v10 }
 0x18c   :  { %v3277_v18 = vpop.eup %2295  ;;  %2307 = vrcp.f32 %v3264_v45  ;;  %v2034_v14 = vmul.f32 -1.442695, %v634_v6  ;;  %v3285_v43 = vmul.f32 %v3246_v3, %v878_v30  ;;  %v840_v0 = vand.u32 2147483647, %v3153_v5 }
 0x18d   :  { %4041 = vst [vmem:[#allocation32_spill] sm:$0xff] %v3277_v18  ;;  %v2298_v7 = vpop.eup %2297  ;;  %2309 = vpow2.f32 %v2032_v13  ;;  %v2035_v32 = vmul.f32 -1.442695, %v549_v52  ;;  %v2036_v10 = vmul.f32 -1.442695, %v578_v50  ;;  %v842_v18 = vand.u32 2147483648, %v3153_v5 }
 0x18e   :  { %v3288_v59 = vpop.eup %2299  ;;  %v3290_v51 = vadd.f32 1.0, %v2298_v7  ;;  %2311 = vpow2.f32 %v2033_v23  ;;  %v839_v13 = vsel %vm3294_vm6, %v3193_v27, %v835_v21  ;;  %vm3304_vm7 = vcmp.eq.f32.partialorder %v840_v0, 8.507059e+37 }
 0x18f   :  { %v3299_v30 = vpop.eup %2301  ;;  %2313 = vpow2.f32 %v2034_v14  ;;  %v790_v23 = vadd.f32 %v3137_v12, %v3196_v37  ;;  %v843_v7 = vor.u32 1.1754944e-38, %v842_v18  ;;  %v850_v27 = vadd.f32 %v3209_v49, %v849_v56 }
 0x190   :  { %v2304_v50 = vpop.eup %2303  ;;  %2315 = vrcp.f32 %v3290_v51  ;;  %v855_v18 = vand.u32 2147483647, %v3155_v58  ;;  %v1251_v6 = vmul.f32 %v784_v35, %v3070_v36  ;;  %vm821_vm14 = vweird.f32 %v3135_v34 }
 0x191   :  { %v2306_v21 = vpop.eup %2305  ;;  %v3321_v14 = vadd.f32 1.0, %v2304_v50  ;;  %2317 = vpow2.f32 %v2035_v32  ;;  %v794_v37 = vsel %vm3315_vm8, %v3137_v12, %v790_v23  ;;  %v844_v56 = vsel %vm3304_vm7, %v843_v7, %v839_v13  ;;  %v606_v12 = vpop.f32.mrf.mxu2 }
 0x192   :  { %v3327_v0 = vpop.eup %2307  ;;  %v3330_v19 = vadd.f32 1.0, %v2306_v21  ;;  %2319 = vpow2.f32 %v2036_v10  ;;  %v635_v23 = vpop.f32.mrf.mxu3  ;;  %v1255_v5 = vmul.f32 %v844_v56, %v3094_v20  ;;  %v799_v10 = vsel %vm3269_vm4, %v3185_v48, %v794_v37 }
 0x193   :  { %v2310_v50 = vpop.eup %2309  ;;  %2321 = vrcp.f32 %v3321_v14  ;;  %v854_v36 = vsel %vm3337_vm11, %v3209_v49, %v850_v27  ;;  %v551_v35 = vpop.f32.mrf.mxu0  ;;  %vm3353_vm13 = vcmp.eq.f32.partialorder %v855_v18, 8.507059e+37  ;;  %v857_v20 = vand.u32 2147483648, %v3155_v58 }
 0x194   :  { %v2312_v13 = vpop.eup %2311  ;;  %2323 = vrcp.f32 %v3330_v19  ;;  %v3351_v52 = vadd.f32 1.0, %v2310_v50  ;;  %v580_v29 = vpop.f32.mrf.mxu1  ;;  %v1283_v37 = vpack.c.bf16 %v1255_v5, %v1251_v6  ;;  %v607_v49 = vadd.f32 %v606_v12, %v3026_v54 }
 0x195   :  { %v2314_v48 = vpop.eup %2313  ;;  %v3358_v21 = vadd.f32 1.0, %v2312_v13  ;;  %v636_v27 = vadd.f32 %v635_v23, %v3028_v55  ;;  %v858_v32 = vor.u32 1.1754944e-38, %v857_v20  ;;  %v552_v58 = vadd.f32 %v551_v35, %v3002_v8 }
 0x196   :  { %4050 = vst [vmem:[#allocation33_spill] sm:$0xff] %v3351_v52  ;;  %v3362_v56 = vpop.eup %2315  ;;  %2325 = vrcp.f32 %v3351_v52  ;;  %v3366_v18 = vadd.f32 1.0, %v2314_v48  ;;  %1567 = vmatmul.bf16.vlgmr.msra.gmra.mxu0 %v1283_v37  ;;  %v1252_v6 = vmul.f32 %v799_v10, %v3075_v1  ;;  %v2037_v12 = vmul.f32 -1.442695, %v607_v49 }
 0x197   :  { %v2318_v50 = vpop.eup %2317  ;;  %2327 = vrcp.f32 %v3358_v21  ;;  %v581_v23 = vadd.f32 %v580_v29, %v3004_v9  ;;  %v859_v48 = vsel %vm3353_vm13, %v858_v32, %v854_v36  ;;  %v2038_v20 = vmul.f32 -1.442695, %v636_v27 }
 0x198   :  { %v2320_v5 = vpop.eup %2319  ;;  %2329 = vrcp.f32 %v3366_v18  ;;  %v3373_v13 = vadd.f32 1.0, %v2318_v50  ;;  %vm881_vm15 = vweird.f32 %v3187_v39  ;;  %v1256_v1 = vmul.f32 %v859_v48, %v3100_v38 }
 0x199   :  { %v3377_v52 = vpop.eup %2321  ;;  %v3380_v35 = vadd.f32 1.0, %v2320_v5  ;;  %2331 = vpow2.f32 %v2037_v12  ;;  %v2039_v10 = vmul.f32 -1.442695, %v552_v58  ;;  %v2040_v37 = vmul.f32 -1.442695, %v581_v23  ;;  %v609_v49 = vpop.f32.mrf.mxu2 }
 0x19a   :  { %v3383_v29 = vpop.eup %2323  ;;  %2333 = vrcp.f32 %v3373_v13  ;;  %v805_v7 = vadd.f32 %v3166_v17, %v3219_v53  ;;  %vm807_vm1 = vweird.f32 %v3166_v17  ;;  %v1284_v36 = vpack.c.bf16 %v1256_v1, %v1252_v6 }
 0x19b   :  { %2335 = vrcp.f32 %v3380_v35  ;;  %vm3392_vm2 = vmor %vm806_vm10, %vm807_vm1  ;;  %v812_v38 = vand.u32 2147483648, %v3123_v57  ;;  %v865_v27 = vadd.f32 %v3228_v31, %v3280_v63  ;;  %vm867_vm3 = vweird.f32 %v3228_v31 }
 0x19c   :  { %v3399_v32 = vpop.eup %2325  ;;  %2337 = vpow2.f32 %v2038_v20  ;;  %v809_v53 = vsel %vm3392_vm2, %v3166_v17, %v805_v7  ;;  %v870_v58 = vand.u32 2147483647, %v3168_v42  ;;  %1596 = vmatmul.bf16.vlgmr.msra.gmra.mxu1 %v1284_v36  ;;  %vm3410_vm4 = vmor %vm866_vm12, %vm867_vm3  ;;  %v872_v12 = vand.u32 2147483648, %v3168_v42 }
 0x19d   :  { %v3406_v50 = vpop.eup %2327  ;;  %2339 = vpow2.f32 %v2039_v10  ;;  %v813_v6 = vor.u32 1.1754944e-38, %v812_v38  ;;  %v820_v17 = vadd.f32 %v3171_v15, %v3234_v44  ;;  %v4057_v5 = vand.u32 2147483647, %v3123_v57 }
 0x19e   :  { %v3417_v23 = vpop.eup %2329  ;;  %2341 = vpow2.f32 %v2040_v37  ;;  %v869_v48 = vsel %vm3410_vm4, %v3228_v31, %v865_v27  ;;  %vm822_vm6 = vweird.f32 %v3171_v15  ;;  %v873_v10 = vor.u32 1.1754944e-38, %v872_v12 }
 0x19f   :  { %vm811_vm5 = vcmp.eq.f32.partialorder %v4057_v5, 8.507059e+37  ;;  %v2332_v20 = vpop.eup %2331  ;;  %vm3427_vm7 = vmor %vm821_vm14, %vm822_vm6  ;;  %v825_v44 = vand.u32 2147483647, %v3135_v34  ;;  %v827_v57 = vand.u32 2147483648, %v3135_v34  ;;  %vm871_vm8 = vcmp.eq.f32.partialorder %v870_v58, 8.507059e+37 }
 0x1a0   :  { %v814_v1 = vsel %vm811_vm5, %v813_v6, %v809_v53  ;;  %v3433_v37 = vpop.eup %2333  ;;  %v3435_v7 = vadd.f32 1.0, %v2332_v20  ;;  %v824_v31 = vsel %vm3427_vm7, %v3171_v15, %v820_v17  ;;  %v880_v36 = vadd.f32 %v3246_v3, %v3285_v43  ;;  %v553_v20 = vpop.f32.mrf.mxu0 }
 0x1a1   :  { %v3442_v38 = vpop.eup %2335  ;;  %v874_v27 = vsel %vm871_vm8, %v873_v10, %v869_v48  ;;  %v1253_v53 = vmul.f32 %v814_v1, %v3079_v4  ;;  %v828_v6 = vor.u32 1.1754944e-38, %v827_v57  ;;  %vm882_vm9 = vweird.f32 %v3246_v3  ;;  %v638_v48 = vpop.f32.mrf.mxu3 }
 0x1a2   :  { %v2338_v34 = vpop.eup %2337  ;;  %v1257_v63 = vmul.f32 %v874_v27, %v3104_v26  ;;  %vm826_vm10 = vcmp.eq.f32.partialorder %v825_v44, 8.507059e+37  ;;  %vm3449_vm11 = vmor %vm881_vm15, %vm882_vm9  ;;  %v885_v43 = vand.u32 2147483647, %v3187_v39  ;;  %v887_v58 = vand.u32 2147483648, %v3187_v39  ;;  %v582_v39 = vpop.f32.mrf.mxu1 }
 0x1a3   :  { %v2340_v12 = vpop.eup %2339  ;;  %v3455_v17 = vadd.f32 1.0, %v2338_v34  ;;  %v829_v4 = vsel %vm826_vm10, %v828_v6, %v824_v31  ;;  %v884_v5 = vsel %vm3449_vm11, %v3246_v3, %v880_v36  ;;  %v610_v26 = vadd.f32 %v609_v49, %v3026_v54 }
 0x1a4   :  { %v2342_v1 = vpop.eup %2341  ;;  %2343 = vrcp.f32 %v3435_v7  ;;  %v3462_v10 = vadd.f32 1.0, %v2340_v12  ;;  %v1285_v42 = vpack.c.bf16 %v1257_v63, %v1253_v53  ;;  %v888_v44 = vor.u32 1.1754944e-38, %v887_v58 }
 0x1a5   :  { %2345 = vrcp.f32 %v3455_v17  ;;  %v3465_v57 = vadd.f32 1.0, %v2342_v1  ;;  %vm886_vm12 = vcmp.eq.f32.partialorder %v885_v43, 8.507059e+37  ;;  %v2041_v31 = vmul.f32 -1.442695, %v610_v26 }
 0x1a6   :  { %1625 = vmatmul.bf16.vlgmr.msra.gmra.mxu2 %v1285_v42  ;;  %v889_v3 = vsel %vm886_vm12, %v888_v44, %v884_v5  ;;  %v1254_v36 = vmul.f32 %v829_v4, %v3083_v60  ;;  %v639_v49 = vadd.f32 %v638_v48, %v3028_v55  ;;  %v554_v27 = vadd.f32 %v553_v20, %v3002_v8 }
 0x1a7   :  { %2347 = vrcp.f32 %v3462_v10  ;;  %v1258_v53 = vmul.f32 %v889_v3, %v3109_v24  ;;  %v583_v6 = vadd.f32 %v582_v39, %v3004_v9  ;;  %v892_v34 = vmul.f32 %v3252_v33, %v3198_v25 }
 0x1a8   :  { %v3477_v63 = vadd.f32 %v2910_v47, %v2929_v61  ;;  %2349 = vpow2.f32 %v2041_v31  ;;  %v2042_v15 = vmul.f32 -1.442695, %v639_v49  ;;  %v2043_v60 = vmul.f32 -1.442695, %v554_v27 }
 0x1a9   :  { %2351 = vrcp.f32 %v3465_v57  ;;  %v1286_v43 = vpack.c.bf16 %v1258_v53, %v1254_v36  ;;  %v2044_v8 = vmul.f32 -1.442695, %v583_v6  ;;  %v893_v58 = vsub.f32 1.0, %v892_v34 }
 0x1aa   :  { %v3480_v12 = vpop.eup %2343  ;;  %v3484_v9 = vadd.f32 %v2931_v2, %v2941_v62  ;;  %2353 = vpow2.f32 %v2042_v15  ;;  %v902_v24 = vand.u32 2147483648, %v3198_v25  ;;  %v952_v47 = vmul.f32 %v3299_v30, %v3249_v46 }
 0x1ab   :  { %v3489_v61 = vpop.eup %2345  ;;  %1654 = vmatmul.bf16.vlgmr.msra.gmra.mxu3 %v1286_v43  ;;  %2355 = vpow2.f32 %v2043_v60  ;;  %v894_v4 = vmul.f32 %v3252_v33, %v893_v58  ;;  %vm897_vm13 = vweird.f32 %v3252_v33  ;;  %v900_v5 = vand.u32 2147483647, %v3198_v25 }
 0x1ac   :  { %v3496_v2 = vadd.f32 %v2933_v16, %v2943_v22  ;;  %2357 = vpow2.f32 %v2044_v8  ;;  %vm896_vm14 = vweird.f32 %v3198_v25  ;;  %v953_v62 = vsub.f32 1.0, %v952_v47 }
 0x1ad   :  { %v3499_v26 = vpop.eup %2347  ;;  %v895_v48 = vadd.f32 %v3252_v33, %v894_v4  ;;  %v960_v20 = vand.u32 2147483647, %v3249_v46  ;;  %v962_v1 = vand.u32 2147483648, %v3249_v46  ;;  %v907_v42 = vmul.f32 %v3273_v40, %v3225_v41  ;;  %vm898_vm15 = vmor %vm896_vm14, %vm897_vm13 }
 0x1ae   :  { %v2350_v44 = vpop.eup %2349  ;;  %v903_v39 = vor.u32 1.1754944e-38, %v902_v24  ;;  %v954_v16 = vmul.f32 %v3299_v30, %v953_v62  ;;  %vm957_vm1 = vweird.f32 %v3299_v30  ;;  %v915_v22 = vand.u32 2147483647, %v3225_v41 }
 0x1af   :  { %v3509_v25 = vpop.eup %2351  ;;  %v3511_v31 = vadd.f32 1.0, %v2350_v44  ;;  %v899_v3 = vsel %vm898_vm15, %v3252_v33, %v895_v48  ;;  %vm901_vm2 = vcmp.eq.f32.partialorder %v900_v5, 8.507059e+37  ;;  %vm956_vm3 = vweird.f32 %v3249_v46  ;;  %v611_v48 = vpop.f32.mrf.mxu2 }
 0x1b0   :  { %v2354_v36 = vpop.eup %2353  ;;  %v904_v49 = vsel %vm901_vm2, %v903_v39, %v899_v3  ;;  %v955_v27 = vadd.f32 %v3299_v30, %v954_v16  ;;  %v908_v53 = vsub.f32 1.0, %v907_v42  ;;  %vm911_vm4 = vweird.f32 %v3225_v41  ;;  %vm958_vm5 = vmor %vm956_vm3, %vm957_vm1 }
 0x1b1   :  { %v2356_v6 = vpop.eup %2355  ;;  %vm961_vm6 = vcmp.eq.f32.partialorder %v960_v20, 8.507059e+37  ;;  %v963_v34 = vor.u32 1.1754944e-38, %v962_v1  ;;  %vm912_vm7 = vweird.f32 %v3273_v40  ;;  %v917_v15 = vand.u32 2147483648, %v3225_v41  ;;  %v640_v20 = vpop.f32.mrf.mxu3 }
 0x1b2   :  { %v2358_v60 = vpop.eup %2357  ;;  %v959_v33 = vsel %vm958_vm5, %v3299_v30, %v955_v27  ;;  %v909_v46 = vmul.f32 %v3273_v40, %v908_v53  ;;  %vm3521_vm8 = vcmp.eq.f32.partialorder %v915_v22, 8.507059e+37  ;;  %v967_v8 = vmul.f32 %v3327_v0, %v3264_v45  ;;  %vm913_vm9 = vmor %vm911_vm4, %vm912_vm7 }
 0x1b3   :  { %2359 = vrcp.f32 %v3511_v31  ;;  %v3528_v58 = vadd.f32 1.0, %v2354_v36  ;;  %v964_v24 = vsel %vm961_vm6, %v963_v34, %v959_v33  ;;  %v1259_v47 = vmul.f32 %v904_v49, %v3113_v28  ;;  %v4065_v49 = vld [vmem:[#allocation32_spill] sm:$0xff] }
 0x1b4   :  { %v3531_v4 = vadd.f32 1.0, %v2356_v6  ;;  %v1263_v30 = vmul.f32 %v964_v24, %v3141_v11  ;;  %v910_v5 = vadd.f32 %v3273_v40, %v909_v46  ;;  %v968_v62 = vsub.f32 1.0, %v967_v8 }
 0x1b5   :  { %v3535_v1 = vadd.f32 1.0, %v2358_v60  ;;  %v918_v42 = vor.u32 1.1754944e-38, %v917_v15  ;;  %vm972_vm10 = vweird.f32 %v3327_v0  ;;  %v975_v28 = vand.u32 2147483647, %v3264_v45  ;;  %v4066_v15 = vld [vmem:[#allocation27_spill] sm:$0xff] }
 0x1b6   :  { %v1287_v44 = vpack.c.bf16 %v1263_v30, %v1259_v47  ;;  %v914_v11 = vsel %vm913_vm9, %v3273_v40, %v910_v5  ;;  %v969_v39 = vmul.f32 %v3327_v0, %v968_v62  ;;  %v977_v16 = vand.u32 2147483648, %v3264_v45  ;;  %v4064_v40 = vld [vmem:[#allocation30_spill] sm:$0xff] }
 0x1b7   :  { %2361 = vrcp.f32 %v3528_v58  ;;  %v919_v22 = vsel %vm3521_vm8, %v918_v42, %v914_v11  ;;  %v612_v41 = vadd.f32 %v611_v48, %v3026_v54  ;;  %v641_v3 = vadd.f32 %v640_v20, %v3028_v55  ;;  %v4067_v42 = vld [vmem:[#allocation31_spill] sm:$0xff] }
 0x1b8   :  { %2363 = vrcp.f32 %v3531_v4  ;;  %1572 = vmatmul.bf16.gmra.mxu0 %v1287_v44  ;;  %v970_v36 = vadd.f32 %v3327_v0, %v969_v39  ;;  %vm971_vm11 = vweird.f32 %v3264_v45  ;;  %v922_v27 = vmul.f32 %v4065_v49, %v4064_v40 }
 0x1b9   :  { %v3556_v53 = vpop.eup %2359  ;;  %2365 = vrcp.f32 %v3535_v1  ;;  %vm973_vm12 = vmor %vm971_vm11, %vm972_vm10  ;;  %v978_v54 = vor.u32 1.1754944e-38, %v977_v16  ;;  %v2045_v6 = vmul.f32 -1.442695, %v612_v41  ;;  %v2046_v55 = vmul.f32 -1.442695, %v641_v3 }
 0x1ba   :  { %v974_v34 = vsel %vm973_vm12, %v3327_v0, %v970_v36  ;;  %vm976_vm13 = vcmp.eq.f32.partialorder %v975_v28, 8.507059e+37  ;;  %v1260_v60 = vmul.f32 %v919_v22, %v4066_v15  ;;  %v923_v33 = vsub.f32 1.0, %v922_v27 }
 0x1bb   :  { %v979_v45 = vsel %vm976_vm13, %v978_v54, %v974_v34  ;;  %2367 = vpow2.f32 %v2045_v6  ;;  %v932_v46 = vand.u32 2147483648, %v4064_v40  ;;  %v982_v43 = vmul.f32 %v3362_v56, %v3290_v51 }
 0x1bc   :  { %v1264_v8 = vmul.f32 %v979_v45, %v3477_v63  ;;  %v924_v24 = vmul.f32 %v4065_v49, %v923_v33  ;;  %vm927_vm14 = vweird.f32 %v4065_v49  ;;  %v930_v47 = vand.u32 2147483647, %v4064_v40  ;;  %v4068_v33 = vld [vmem:[#allocation28_spill] sm:$0xff] }
 0x1bd   :  { %v3570_v0 = vpop.eup %2361  ;;  %2369 = vpow2.f32 %v2046_v55  ;;  %vm926_vm15 = vweird.f32 %v4064_v40  ;;  %v983_v30 = vsub.f32 1.0, %v982_v43  ;;  %v990_v5 = vand.u32 2147483647, %v3290_v51 }
 0x1be   :  { %v3574_v62 = vpop.eup %2363  ;;  %v1288_v48 = vpack.c.bf16 %v1264_v8, %v1260_v60  ;;  %v925_v20 = vadd.f32 %v4065_v49, %v924_v24  ;;  %v992_v63 = vand.u32 2147483648, %v3290_v51  ;;  %v937_v28 = vmul.f32 %v3288_v59, %v4067_v42  ;;  %vm928_vm1 = vmor %vm926_vm15, %vm927_vm14 }
 0x1bf   :  { %v3580_v44 = vpop.eup %2365  ;;  %v933_v11 = vor.u32 1.1754944e-38, %v932_v46  ;;  %v984_v39 = vmul.f32 %v3362_v56, %v983_v30  ;;  %vm986_vm2 = vweird.f32 %v3290_v51  ;;  %vm987_vm3 = vweird.f32 %v3362_v56 }
 0x1c0   :  { %1601 = vmatmul.bf16.gmra.mxu1 %v1288_v48  ;;  %v929_v16 = vsel %vm928_vm1, %v4065_v49, %v925_v20  ;;  %vm931_vm4 = vcmp.eq.f32.partialorder %v930_v47, 8.507059e+37  ;;  %v938_v22 = vsub.f32 1.0, %v937_v28  ;;  %v945_v41 = vand.u32 2147483647, %v4067_v42  ;;  %vm988_vm5 = vmor %vm986_vm2, %vm987_vm3 }
 0x1c1   :  { %v2368_v3 = vpop.eup %2367  ;;  %v934_v36 = vsel %vm931_vm4, %v933_v11, %v929_v16  ;;  %v985_v40 = vadd.f32 %v3362_v56, %v984_v39  ;;  %v947_v27 = vand.u32 2147483648, %v4067_v42  ;;  %v997_v54 = vmul.f32 %v3377_v52, %v3321_v14 }
 0x1c2   :  { %vm991_vm6 = vcmp.eq.f32.partialorder %v990_v5, 8.507059e+37  ;;  %v993_v51 = vor.u32 1.1754944e-38, %v992_v63  ;;  %v939_v6 = vmul.f32 %v3288_v59, %v938_v22  ;;  %vm942_vm7 = vweird.f32 %v3288_v59 }
 0x1c3   :  { %v2370_v49 = vpop.eup %2369  ;;  %v3593_v55 = vadd.f32 1.0, %v2368_v3  ;;  %v989_v34 = vsel %vm988_vm5, %v3362_v56, %v985_v40  ;;  %vm941_vm8 = vweird.f32 %v4067_v42  ;;  %v998_v15 = vsub.f32 1.0, %v997_v54 }
 0x1c4   :  { %v994_v60 = vsel %vm991_vm6, %v993_v51, %v989_v34  ;;  %v1261_v45 = vmul.f32 %v934_v36, %v4068_v33  ;;  %v940_v46 = vadd.f32 %v3288_v59, %v939_v6  ;;  %vm946_vm9 = vcmp.eq.f32.partialorder %v945_v41, 8.507059e+37  ;;  %vm943_vm10 = vmor %vm941_vm8, %vm942_vm7  ;;  %v4069_v41 = vld [vmem:[#allocation29_spill] sm:$0xff] }
 0x1c5   :  { %v1265_v43 = vmul.f32 %v994_v60, %v3484_v9  ;;  %v948_v8 = vor.u32 1.1754944e-38, %v947_v27  ;;  %v999_v24 = vmul.f32 %v3377_v52, %v998_v15  ;;  %vm1002_vm11 = vweird.f32 %v3377_v52 }
 0x1c6   :  { %v944_v47 = vsel %vm943_vm10, %v3288_v59, %v940_v46  ;;  %v1005_v56 = vand.u32 2147483647, %v3321_v14  ;;  %v1007_v30 = vand.u32 2147483648, %v3321_v14  ;;  %v1012_v5 = vmul.f32 %v3383_v29, %v3330_v19 }
 0x1c7   :  { %v3607_v48 = vadd.f32 1.0, %v2370_v49  ;;  %v1289_v20 = vpack.c.bf16 %v1265_v43, %v1261_v45  ;;  %v1000_v9 = vadd.f32 %v3377_v52, %v999_v24  ;;  %vm1001_vm12 = vweird.f32 %v3321_v14  ;;  %v4070_v49 = vld [vmem:[#allocation33_spill] sm:$0xff]  ;;  %v4071_v24 = vld [vmem:[#allocation11_spill] sm:$0xff] }
 0x1c8   :  { %2371 = vrcp.f32 %v3593_v55  ;;  %v949_v63 = vsel %vm946_vm9, %v948_v8, %v944_v47  ;;  %vm1003_vm13 = vmor %vm1001_vm12, %vm1002_vm11  ;;  %v1008_v42 = vor.u32 1.1754944e-38, %v1007_v30  ;;  %v1013_v59 = vsub.f32 1.0, %v1012_v5 }
 0x1c9   :  { %1630 = vmatmul.bf16.gmra.mxu2 %v1289_v20  ;;  %v1004_v28 = vsel %vm1003_vm13, %v3377_v52, %v1000_v9  ;;  %vm1006_vm14 = vcmp.eq.f32.partialorder %v1005_v56, 8.507059e+37  ;;  %vm1017_vm15 = vweird.f32 %v3383_v29  ;;  %v1022_v11 = vand.u32 2147483648, %v3330_v19 }
 0x1ca   :  { %v1009_v39 = vsel %vm1006_vm14, %v1008_v42, %v1004_v28  ;;  %v1014_v16 = vmul.f32 %v3383_v29, %v1013_v59  ;;  %v1020_v22 = vand.u32 2147483647, %v3330_v19  ;;  %v1072_v14 = vmul.f32 %v3433_v37, %v3373_v13  ;;  %v4072_v28 = vld [vmem:[#allocation15_spill] sm:$0xff] }
 0x1cb   :  { %2373 = vrcp.f32 %v3607_v48  ;;  %v1262_v3 = vmul.f32 %v949_v63, %v4069_v41  ;;  %v1266_v36 = vmul.f32 %v1009_v39, %v3496_v2  ;;  %vm1016_vm1 = vweird.f32 %v3330_v19 }
 0x1cc   :  { %v1015_v52 = vadd.f32 %v3383_v29, %v1014_v16  ;;  %v1073_v40 = vsub.f32 1.0, %v1072_v14  ;;  %vm1076_vm2 = vweird.f32 %v3373_v13  ;;  %v1080_v27 = vand.u32 2147483647, %v3373_v13  ;;  %vm1018_vm3 = vmor %vm1016_vm1, %vm1017_vm15 }
 0x1cd   :  { %v1290_v54 = vpack.c.bf16 %v1266_v36, %v1262_v3  ;;  %v1023_v51 = vor.u32 1.1754944e-38, %v1022_v11  ;;  %v1082_v6 = vand.u32 2147483648, %v3373_v13  ;;  %v1027_v34 = vmul.f32 %v3399_v32, %v4070_v49 }
 0x1ce   :  { %v3631_v2 = vpop.eup %2371  ;;  %v1019_v19 = vsel %vm1018_vm3, %v3383_v29, %v1015_v52  ;;  %vm1021_vm4 = vcmp.eq.f32.partialorder %v1020_v22, 8.507059e+37  ;;  %v1074_v15 = vmul.f32 %v3433_v37, %v1073_v40  ;;  %vm1077_vm5 = vweird.f32 %v3433_v37 }
 0x1cf   :  { %1659 = vmatmul.bf16.gmra.mxu3 %v1290_v54  ;;  %v1024_v60 = vsel %vm1021_vm4, %v1023_v51, %v1019_v19  ;;  %v1028_v33 = vsub.f32 1.0, %v1027_v34  ;;  %vm1031_vm6 = vweird.f32 %v4070_v49  ;;  %v1037_v45 = vand.u32 2147483648, %v4070_v49  ;;  %vm1078_vm9 = vmor %vm1076_vm2, %vm1077_vm5  ;;  %v4073_v51 = vld [vmem:[#allocation12_spill] sm:$0xff] }
 0x1d0   :  { %v1075_v46 = vadd.f32 %v3433_v37, %v1074_v15  ;;  %vm1081_vm7 = vcmp.eq.f32.partialorder %v1080_v27, 8.507059e+37  ;;  %vm1032_vm8 = vweird.f32 %v3399_v32  ;;  %v1087_v29 = vmul.f32 %v3442_v38, %v3380_v35  ;;  %v4074_v19 = vld [vmem:[#allocation16_spill] sm:$0xff] }
 0x1d1   :  { %v3642_v43 = vpop.eup %2373  ;;  %v1083_v8 = vor.u32 1.1754944e-38, %v1082_v6  ;;  %v1267_v47 = vmul.f32 %v1024_v60, %v4071_v24  ;;  %v1029_v56 = vmul.f32 %v3399_v32, %v1028_v33  ;;  %v1035_v30 = vand.u32 2147483647, %v4070_v49  ;;  %vm1033_vm11 = vmor %vm1031_vm6, %vm1032_vm8 }
 0x1d2   :  { %v1079_v5 = vsel %vm1078_vm9, %v3433_v37, %v1075_v46  ;;  %v1038_v20 = vor.u32 1.1754944e-38, %v1037_v45  ;;  %v1088_v9 = vsub.f32 1.0, %v1087_v29  ;;  %vm1091_vm10 = vweird.f32 %v3380_v35 }
 0x1d3   :  { %v1084_v63 = vsel %vm1081_vm7, %v1083_v8, %v1079_v5  ;;  %v1030_v42 = vadd.f32 %v3399_v32, %v1029_v56  ;;  %v1097_v59 = vand.u32 2147483648, %v3380_v35  ;;  %v1042_v13 = vmul.f32 %v3406_v50, %v3358_v21 }
 0x1d4   :  { %v1271_v11 = vmul.f32 %v1084_v63, %v4072_v28  ;;  %v1089_v37 = vmul.f32 %v3442_v38, %v1088_v9  ;;  %vm1092_vm12 = vweird.f32 %v3442_v38  ;;  %v1095_v39 = vand.u32 2147483647, %v3380_v35  ;;  %v4075_v9 = vld [vmem:[#allocation13_spill] sm:$0xff] }
 0x1d5   :  { %v1034_v16 = vsel %vm1033_vm11, %v3399_v32, %v1030_v42  ;;  %vm1036_vm13 = vcmp.eq.f32.partialorder %v1035_v30, 8.507059e+37  ;;  %v1043_v22 = vsub.f32 1.0, %v1042_v13  ;;  %v1050_v14 = vand.u32 2147483647, %v3358_v21  ;;  %vm1093_vm14 = vmor %vm1091_vm10, %vm1092_vm12 }
 0x1d6   :  { %v1291_v41 = vpack.c.bf16 %v1271_v11, %v1267_v47  ;;  %v1039_v3 = vsel %vm1036_vm13, %v1038_v20, %v1034_v16  ;;  %v1090_v36 = vadd.f32 %v3442_v38, %v1089_v37  ;;  %v1052_v52 = vand.u32 2147483648, %v3358_v21  ;;  %v4076_v11 = vld [vmem:[#allocation17_spill] sm:$0xff] }
 0x1d7   :  { %v1098_v40 = vor.u32 1.1754944e-38, %v1097_v59  ;;  %v1044_v27 = vmul.f32 %v3406_v50, %v1043_v22  ;;  %vm1047_vm15 = vweird.f32 %v3406_v50  ;;  %v1102_v32 = vmul.f32 %v3480_v12, %v3435_v7 }
 0x1d8   :  { %1577 = vmatmul.bf16.gmra.mxu0 %v1291_v41  ;;  %v1094_v54 = vsel %vm1093_vm14, %v3442_v38, %v1090_v36  ;;  %vm1096_vm1 = vcmp.eq.f32.partialorder %v1095_v39, 8.507059e+37  ;;  %v1268_v6 = vmul.f32 %v1039_v3, %v4073_v51  ;;  %vm1046_vm2 = vweird.f32 %v3358_v21 }
 0x1d9   :  { %v1099_v49 = vsel %vm1096_vm1, %v1098_v40, %v1094_v54  ;;  %v1045_v35 = vadd.f32 %v3406_v50, %v1044_v27  ;;  %vm1051_vm3 = vcmp.eq.f32.partialorder %v1050_v14, 8.507059e+37  ;;  %v1103_v34 = vsub.f32 1.0, %v1102_v32  ;;  %vm1048_vm4 = vmor %vm1046_vm2, %vm1047_vm15 }
 0x1da   :  { %v1272_v15 = vmul.f32 %v1099_v49, %v4074_v19  ;;  %v1053_v60 = vor.u32 1.1754944e-38, %v1052_v52  ;;  %v1112_v33 = vand.u32 2147483648, %v3435_v7  ;;  %v1057_v45 = vmul.f32 %v3417_v23, %v3366_v18 }
 0x1db   :  { %v1049_v38 = vsel %vm1048_vm4, %v3406_v50, %v1045_v35  ;;  %v1104_v46 = vmul.f32 %v3480_v12, %v1103_v34  ;;  %vm1107_vm5 = vweird.f32 %v3480_v12  ;;  %v1110_v21 = vand.u32 2147483647, %v3435_v7 }
 0x1dc   :  { %v1292_v29 = vpack.c.bf16 %v1272_v15, %v1268_v6  ;;  %v1054_v8 = vsel %vm1051_vm3, %v1053_v60, %v1049_v38  ;;  %vm1106_vm6 = vweird.f32 %v3435_v7  ;;  %v1058_v24 = vsub.f32 1.0, %v1057_v45  ;;  %v4079_v6 = vld [vmem:[#allocation14_spill] sm:$0xff] }
 0x1dd   :  { %v1105_v47 = vadd.f32 %v3480_v12, %v1104_v46  ;;  %vm1061_vm7 = vweird.f32 %v3366_v18  ;;  %vm1062_vm8 = vweird.f32 %v3417_v23  ;;  %v1067_v56 = vand.u32 2147483648, %v3366_v18  ;;  %vm1108_vm9 = vmor %vm1106_vm6, %vm1107_vm5  ;;  %v4080_v60 = vld [vmem:[#allocation18_spill] sm:$0xff] }
 0x1de   :  { %1606 = vmatmul.bf16.gmra.mxu1 %v1292_v29  ;;  %v1113_v50 = vor.u32 1.1754944e-38, %v1112_v33  ;;  %v1059_v30 = vmul.f32 %v3417_v23, %v1058_v24  ;;  %v1065_v5 = vand.u32 2147483647, %v3366_v18  ;;  %v1117_v20 = vmul.f32 %v3489_v61, %v3455_v17  ;;  %vm1063_vm12 = vmor %vm1061_vm7, %vm1062_vm8 }
 0x1df   :  { %v1109_v7 = vsel %vm1108_vm9, %v3480_v12, %v1105_v47  ;;  %vm1111_vm10 = vcmp.eq.f32.partialorder %v1110_v21, 8.507059e+37  ;;  %v1269_v63 = vmul.f32 %v1054_v8, %v4075_v9  ;;  %v1125_v42 = vand.u32 2147483647, %v3455_v17 }
 0x1e0   :  { %v1114_v59 = vsel %vm1111_vm10, %v1113_v50, %v1109_v7  ;;  %v1060_v13 = vadd.f32 %v3417_v23, %v1059_v30  ;;  %v1118_v28 = vsub.f32 1.0, %v1117_v20  ;;  %vm1121_vm11 = vweird.f32 %v3455_v17 }
 0x1e1   :  { %v1273_v37 = vmul.f32 %v1114_v59, %v4076_v11  ;;  %v1068_v39 = vor.u32 1.1754944e-38, %v1067_v56  ;;  %v1127_v12 = vand.u32 2147483648, %v3455_v17  ;;  %v1132_v16 = vmul.f32 %v3499_v26, %v3462_v10 }
 0x1e2   :  { %v1064_v22 = vsel %vm1063_vm12, %v3417_v23, %v1060_v13  ;;  %vm1066_vm13 = vcmp.eq.f32.partialorder %v1065_v5, 8.507059e+37  ;;  %v1119_v14 = vmul.f32 %v3489_v61, %v1118_v28  ;;  %vm1122_vm14 = vweird.f32 %v3489_v61  ;;  %v4081_v5 = vld [vmem:[#allocation19_spill] sm:$0xff] }
 0x1e3   :  { %v1293_v41 = vpack.c.bf16 %v1273_v37, %v1269_v63  ;;  %v1069_v3 = vsel %vm1066_vm13, %v1068_v39, %v1064_v22  ;;  %vm3710_vm15 = vcmp.eq.f32.partialorder %v1125_v42, 8.507059e+37  ;;  %v1133_v18 = vsub.f32 1.0, %v1132_v16  ;;  %vm1123_vm2 = vmor %vm1121_vm11, %vm1122_vm14  ;;  %v4082_v63 = vld [vmem:[#allocation23_spill] sm:$0xff] }
 0x1e4   :  { %v1120_v52 = vadd.f32 %v3489_v61, %v1119_v14  ;;  %vm1136_vm1 = vweird.f32 %v3462_v10  ;;  %v1142_v40 = vand.u32 2147483648, %v3462_v10  ;;  %v1192_v23 = vmul.f32 %v3574_v62, %v3531_v4 }
 0x1e5   :  { %1635 = vmatmul.bf16.gmra.mxu2 %v1293_v41  ;;  %v1128_v27 = vor.u32 1.1754944e-38, %v1127_v12  ;;  %v1134_v32 = vmul.f32 %v3499_v26, %v1133_v18  ;;  %vm1137_vm3 = vweird.f32 %v3499_v26  ;;  %v1140_v54 = vand.u32 2147483647, %v3462_v10  ;;  %v4083_v18 = vld [vmem:[#allocation20_spill] sm:$0xff] }
 0x1e6   :  { %v1124_v51 = vsel %vm1123_vm2, %v3489_v61, %v1120_v52  ;;  %v1270_v49 = vmul.f32 %v1069_v3, %v4079_v6  ;;  %v1193_v35 = vsub.f32 1.0, %v1192_v23  ;;  %vm1197_vm4 = vweird.f32 %v3574_v62  ;;  %vm1138_vm5 = vmor %vm1136_vm1, %vm1137_vm3 }
 0x1e7   :  { %v1129_v34 = vsel %vm3710_vm15, %v1128_v27, %v1124_v51  ;;  %v1135_v17 = vadd.f32 %v3499_v26, %v1134_v32  ;;  %v1202_v19 = vand.u32 2147483648, %v3531_v4  ;;  %v1147_v15 = vmul.f32 %v3509_v25, %v3465_v57  ;;  %v4084_v27 = vld [vmem:[#allocation24_spill] sm:$0xff] }
 0x1e8   :  { %v1274_v33 = vmul.f32 %v1129_v34, %v4080_v60  ;;  %v1143_v61 = vor.u32 1.1754944e-38, %v1142_v40  ;;  %v1194_v45 = vmul.f32 %v3574_v62, %v1193_v35  ;;  %v1200_v38 = vand.u32 2147483647, %v3531_v4 }
 0x1e9   :  { %v1139_v46 = vsel %vm1138_vm5, %v3499_v26, %v1135_v17  ;;  %vm1141_vm6 = vcmp.eq.f32.partialorder %v1140_v54, 8.507059e+37  ;;  %vm1196_vm7 = vweird.f32 %v3531_v4  ;;  %v1148_v21 = vsub.f32 1.0, %v1147_v15 }
 0x1ea   :  { %v1294_v29 = vpack.c.bf16 %v1274_v33, %v1270_v49  ;;  %v1144_v8 = vsel %vm1141_vm6, %v1143_v61, %v1139_v46  ;;  %v1195_v24 = vadd.f32 %v3574_v62, %v1194_v45  ;;  %v1203_v47 = vor.u32 1.1754944e-38, %v1202_v19  ;;  %vm1198_vm8 = vmor %vm1196_vm7, %vm1197_vm4  ;;  %v4085_v46 = vld [vmem:[#allocation21_spill] sm:$0xff] }
 0x1eb   :  { %v1149_v10 = vmul.f32 %v3509_v25, %v1148_v21  ;;  %vm1152_vm9 = vweird.f32 %v3509_v25  ;;  %v1157_v56 = vand.u32 2147483648, %v3465_v57  ;;  %v1207_v26 = vmul.f32 %v3580_v44, %v3535_v1 }
 0x1ec   :  { %1664 = vmatmul.bf16.gmra.mxu3 %v1294_v29  ;;  %v1199_v4 = vsel %vm1198_vm8, %v3574_v62, %v1195_v24  ;;  %vm1201_vm10 = vcmp.eq.f32.partialorder %v1200_v38, 8.507059e+37  ;;  %vm1151_vm11 = vweird.f32 %v3465_v57  ;;  %v1155_v50 = vand.u32 2147483647, %v3465_v57  ;;  %v4086_v24 = vld [vmem:[#allocation25_spill] sm:$0xff] }
 0x1ed   :  { %v1204_v30 = vsel %vm1201_vm10, %v1203_v47, %v1199_v4  ;;  %v1275_v20 = vmul.f32 %v1144_v8, %v4081_v5  ;;  %v1150_v7 = vadd.f32 %v3509_v25, %v1149_v10  ;;  %v1208_v9 = vsub.f32 1.0, %v1207_v26  ;;  %vm1153_vm12 = vmor %vm1151_vm11, %vm1152_vm9 }
 0x1ee   :  { %v1279_v42 = vmul.f32 %v1204_v30, %v4082_v63  ;;  %vm1212_vm13 = vweird.f32 %v3580_v44  ;;  %v1217_v59 = vand.u32 2147483648, %v3535_v1  ;;  %v1162_v62 = vmul.f32 %v3556_v53, %v3511_v31  ;;  %v4088_v63 = vld [vmem:[#allocation26_spill] sm:$0xff] }
 0x1ef   :  { %v1154_v13 = vsel %vm1153_vm12, %v3509_v25, %v1150_v7  ;;  %v1158_v28 = vor.u32 1.1754944e-38, %v1157_v56  ;;  %v1209_v57 = vmul.f32 %v3580_v44, %v1208_v9  ;;  %v1215_v11 = vand.u32 2147483647, %v3535_v1  ;;  %v4087_v7 = vld [vmem:[#allocation22_spill] sm:$0xff] }
 0x1f0   :  { %v1295_v37 = vpack.c.bf16 %v1279_v42, %v1275_v20  ;;  %vm1156_vm14 = vcmp.eq.f32.partialorder %v1155_v50, 8.507059e+37  ;;  %vm1211_vm15 = vweird.f32 %v3535_v1  ;;  %v1163_v16 = vsub.f32 1.0, %v1162_v62  ;;  %v3813_v62 = vld [vmem:[%s3977_s8] ss:$0 sm:$0xff] }
 0x1f1   :  { %v1159_v39 = vsel %vm1156_vm14, %v1158_v28, %v1154_v13  ;;  %v1210_v12 = vadd.f32 %v3580_v44, %v1209_v57  ;;  %vm1166_vm1 = vweird.f32 %v3511_v31  ;;  %vm1213_vm2 = vmor %vm1211_vm15, %vm1212_vm13  ;;  %v1218_v25 = vor.u32 1.1754944e-38, %v1217_v59 }
 0x1f2   :  { %1582 = vmatmul.bf16.gmra.mxu0 %v1295_v37  ;;  %vm1167_vm3 = vweird.f32 %v3556_v53  ;;  %v1172_v22 = vand.u32 2147483648, %v3511_v31  ;;  %v1222_v14 = vmul.f32 %v3631_v2, %v3593_v55  ;;  %vm1216_vm4 = vcmp.eq.f32.partialorder %v1215_v11, 8.507059e+37 }
 0x1f3   :  { %v1214_v1 = vsel %vm1213_vm2, %v3580_v44, %v1210_v12  ;;  %v1164_v41 = vmul.f32 %v3556_v53, %v1163_v16  ;;  %v1170_v3 = vand.u32 2147483647, %v3511_v31  ;;  %v1276_v52 = vmul.f32 %v1159_v39, %v4083_v18  ;;  %vm1168_vm5 = vmor %vm1166_vm1, %vm1167_vm3 }
 0x1f4   :  { %v1219_v36 = vsel %vm1216_vm4, %v1218_v25, %v1214_v1  ;;  %v1223_v40 = vsub.f32 1.0, %v1222_v14  ;;  %v1230_v23 = vand.u32 2147483647, %v3593_v55  ;;  %v1232_v51 = vand.u32 2147483648, %v3593_v55 }
 0x1f5   :  { %v1280_v32 = vmul.f32 %v1219_v36, %v4084_v27  ;;  %v1165_v54 = vadd.f32 %v3556_v53, %v1164_v41  ;;  %v1177_v44 = vmul.f32 %v3570_v0, %v3528_v58  ;;  %v1173_v6 = vor.u32 1.1754944e-38, %v1172_v22  ;;  %v4089_v22 = vld [vmem:[#allocation3_spill] sm:$0xff] }
 0x1f6   :  { %v1224_v49 = vmul.f32 %v3631_v2, %v1223_v40  ;;  %vm1226_vm6 = vweird.f32 %v3593_v55  ;;  %vm1227_vm7 = vweird.f32 %v3631_v2  ;;  %vm1171_vm8 = vcmp.eq.f32.partialorder %v1170_v3, 8.507059e+37 }
 0x1f7   :  { %v1296_v35 = vpack.c.bf16 %v1280_v32, %v1276_v52  ;;  %v1169_v34 = vsel %vm1168_vm5, %v3556_v53, %v1165_v54  ;;  %v1178_v17 = vsub.f32 1.0, %v1177_v44  ;;  %vm1231_vm9 = vcmp.eq.f32.partialorder %v1230_v23, 8.507059e+37  ;;  %vm1228_vm10 = vmor %vm1226_vm6, %vm1227_vm7  ;;  %v4090_v23 = vld [vmem:[#allocation4_spill] sm:$0xff] }
 0x1f8   :  { %v1174_v19 = vsel %vm1171_vm8, %v1173_v6, %v1169_v34  ;;  %v1225_v15 = vadd.f32 %v3631_v2, %v1224_v49  ;;  %v1237_v31 = vmul.f32 %v3642_v43, %v3607_v48  ;;  %v1233_v60 = vor.u32 1.1754944e-38, %v1232_v51 }
 0x1f9   :  { %1611 = vmatmul.bf16.gmra.mxu1 %v1296_v35  ;;  %v1179_v33 = vmul.f32 %v3570_v0, %v1178_v17  ;;  %vm1182_vm11 = vweird.f32 %v3570_v0  ;;  %v1187_v55 = vand.u32 2147483648, %v3528_v58  ;;  %vm1181_vm12 = vweird.f32 %v3528_v58 }
 0x1fa   :  { %v1229_v53 = vsel %vm1228_vm10, %v3631_v2, %v1225_v15  ;;  %v1185_v61 = vand.u32 2147483647, %v3528_v58  ;;  %v1238_v45 = vsub.f32 1.0, %v1237_v31  ;;  %v1277_v21 = vmul.f32 %v1174_v19, %v4085_v46  ;;  %vm1183_vm13 = vmor %vm1181_vm12, %vm1182_vm11 }
 0x1fb   :  { %v1234_v38 = vsel %vm1231_vm9, %v1233_v60, %v1229_v53  ;;  %v1180_v29 = vadd.f32 %v3570_v0, %v1179_v33  ;;  %v1247_v8 = vand.u32 2147483648, %v3607_v48  ;;  %vm1242_vm14 = vweird.f32 %v3642_v43 }
 0x1fc   :  { %v1281_v47 = vmul.f32 %v1234_v38, %v4086_v24  ;;  %v1239_v10 = vmul.f32 %v3642_v43, %v1238_v45  ;;  %v1245_v2 = vand.u32 2147483647, %v3607_v48  ;;  %v1188_v58 = vor.u32 1.1754944e-38, %v1187_v55 }
 0x1fd   :  { %v1184_v56 = vsel %vm1183_vm13, %v3570_v0, %v1180_v29  ;;  %vm1186_vm15 = vcmp.eq.f32.partialorder %v1185_v61, 8.507059e+37  ;;  %vm1241_vm1 = vweird.f32 %v3607_v48  ;;  %v1248_v30 = vor.u32 1.1754944e-38, %v1247_v8  ;;  %v4091_v61 = vld [vmem:[#allocation6_spill] sm:$0xff] }
 0x1fe   :  { %v1297_v26 = vpack.c.bf16 %v1281_v47, %v1277_v21  ;;  %v1240_v4 = vadd.f32 %v3642_v43, %v1239_v10  ;;  %v1189_v50 = vsel %vm1186_vm15, %v1188_v58, %v1184_v56  ;;  %vm1243_vm2 = vmor %vm1241_vm1, %vm1242_vm14  ;;  %vm1246_vm3 = vcmp.eq.f32.partialorder %v1245_v2, 8.507059e+37  ;;  %v4092_v47 = vld [vmem:[#allocation5_spill] sm:$0xff] }
 0x1ff   :  { %v1278_v9 = vmul.f32 %v1189_v50, %v4087_v7 }
 0x200   :  { %1640 = vmatmul.bf16.gmra.mxu2 %v1297_v26  ;;  %v1244_v5 = vsel %vm1243_vm2, %v3642_v43, %v1240_v4 }
 0x201   :  { %v1249_v20 = vsel %vm1246_vm3, %v1248_v30, %v1244_v5 }
 0x202   :  { %v1282_v42 = vmul.f32 %v1249_v20, %v4088_v63 }
 0x204   :  { %v1298_v0 = vpack.c.bf16 %v1282_v42, %v1278_v9 }
 0x206   :  { %1669 = vmatmul.bf16.gmra.mxu3 %v1298_v0 }
 0x213   :  { %v1568_v59 = vpop.f32.mrf.mxu0 }
 0x214   :  { %v1569_v48 = vadd.f32 %v3813_v62, %v1568_v59 }
 0x219   :  { %v1597_v13 = vpop.f32.mrf.mxu1 }
 0x21a   :  { %v1598_v28 = vadd.f32 %v1597_v13, %v1569_v48  ;;  %v4093_v13 = vld [vmem:[#allocation8_spill] sm:$0xff] }
 0x21b   :  { %v1570_v43 = vpop.f32.mrf.mxu0 }
 0x21c   :  { %v1571_v37 = vadd.f32 %v3813_v62, %v1570_v43 }
 0x221   :  { %v1599_v16 = vpop.f32.mrf.mxu1 }
 0x222   :  { %v1600_v25 = vadd.f32 %v1599_v16, %v1571_v37  ;;  %v4094_v16 = vld [vmem:[#allocation7_spill] sm:$0xff] }
 0x229   :  { %v1626_v57 = vpop.f32.mrf.mxu2 }
 0x22a   :  { %v1627_v11 = vadd.f32 %v1626_v57, %v1598_v28 }
 0x22e   :  { %v1655_v39 = vpop.f32.mrf.mxu3 }
 0x22f   :  { %v1656_v12 = vadd.f32 %v1655_v39, %v1627_v11 }
 0x231   :  { %v3818_v14 = vadd.f32 %v1656_v12, %v4089_v22  ;;  %v1628_v1 = vpop.f32.mrf.mxu2 }
 0x232   :  { %v1629_v41 = vadd.f32 %v1628_v1, %v1600_v25 }
 0x233   :  { %v1685_v3 = vsel %vm49_vm0, %v3818_v14, 0.0  ;;  %v1717_v36 = vmul.f32 %v3818_v14, %v3818_v14 }
 0x234   :  { %1686 = vadd.xlane.f32.xlu1 %v1685_v3 }
 0x235   :  { %v1725_v18 = vsel %vm49_vm0, %v1717_v36, 0.0  ;;  %v1573_v44 = vpop.f32.mrf.mxu0 }
 0x236   :  { %v1657_v52 = vpop.f32.mrf.mxu3  ;;  %1726 = vadd.xlane.f32.xlu0 %v1725_v18  ;;  %v1574_v6 = vadd.f32 %v3813_v62, %v1573_v44 }
 0x237   :  { %v1658_v40 = vadd.f32 %v1657_v52, %v1629_v41 }
 0x239   :  { %v3826_v27 = vadd.f32 %v1658_v40, %v4090_v23 }
 0x23b   :  { %v1688_v32 = vsel %vm49_vm0, %v3826_v27, 0.0  ;;  %v1718_v54 = vmul.f32 %v3826_v27, %v3826_v27 }
 0x23c   :  { %1689 = vadd.xlane.f32.xlu2 %v1688_v32 }
 0x23d   :  { %v1728_v51 = vsel %vm49_vm0, %v1718_v54, 0.0  ;;  %v1602_v49 = vpop.f32.mrf.mxu1  ;;  %v1575_v17 = vpop.f32.mrf.mxu0 }
 0x23e   :  { %1729 = vadd.xlane.f32.xlu1 %v1728_v51  ;;  %v1603_v34 = vadd.f32 %v1602_v49, %v1574_v6  ;;  %v1576_v15 = vadd.f32 %v3813_v62, %v1575_v17  ;;  %v4095_v49 = vld [vmem:[#allocation10_spill] sm:$0xff] }
 0x245   :  { %v1604_v33 = vpop.f32.mrf.mxu1 }
 0x246   :  { %v1605_v53 = vadd.f32 %v1604_v33, %v1576_v15 }
 0x24c   :  { %v1631_v35 = vpop.f32.mrf.mxu2 }
 0x24d   :  { %v1632_v19 = vadd.f32 %v1631_v35, %v1603_v34 }
 0x252   :  { %v1660_v31 = vpop.f32.mrf.mxu3 }
 0x253   :  { %v1661_v60 = vadd.f32 %v1660_v31, %v1632_v19 }
 0x254   :  { %v1633_v55 = vpop.f32.mrf.mxu2 }
 0x255   :  { %v3836_v45 = vadd.f32 %v1661_v60, %v4091_v61  ;;  %v1634_v38 = vadd.f32 %v1633_v55, %v1605_v53  ;;  %v1578_v58 = vpop.f32.mrf.mxu0  ;;  %v4096_v60 = vld [vmem:[#allocation9_spill] sm:$0xff] }
 0x256   :  { %v1579_v4 = vadd.f32 %v3813_v62, %v1578_v58 }
 0x257   :  { %v1691_v46 = vsel %vm49_vm0, %v3836_v45, 0.0  ;;  %v1719_v21 = vmul.f32 %v3836_v45, %v3836_v45 }
 0x258   :  { %1692 = vadd.xlane.f32.xlu0 %v1691_v46 }
 0x259   :  { %v1731_v29 = vsel %vm49_vm0, %v1719_v21, 0.0 }
 0x25a   :  { %v1662_v8 = vpop.f32.mrf.mxu3  ;;  %1732 = vadd.xlane.f32.xlu2 %v1731_v29  ;;  %v4097_v29 = vld [vmem:[#allocation2_spill] sm:$0xff] }
 0x25b   :  { %v1663_v24 = vadd.f32 %v1662_v8, %v1634_v38  ;;  %v1607_v50 = vpop.f32.mrf.mxu1 }
 0x25c   :  { %v1608_v5 = vadd.f32 %v1607_v50, %v1579_v4 }
 0x25d   :  { %v3844_v10 = vadd.f32 %v1663_v24, %v4092_v47  ;;  %v1580_v20 = vpop.f32.mrf.mxu0 }
 0x25e   :  { %v1581_v9 = vadd.f32 %v3813_v62, %v1580_v20 }
 0x25f   :  { %v1694_v2 = vsel %vm49_vm0, %v3844_v10, 0.0  ;;  %v1720_v56 = vmul.f32 %v3844_v10, %v3844_v10 }
 0x260   :  { %1695 = vadd.xlane.f32.xlu1 %v1694_v2 }
 0x261   :  { %v1734_v26 = vsel %vm49_vm0, %v1720_v56, 0.0 }
 0x262   :  { %1735 = vadd.xlane.f32.xlu0 %v1734_v26 }
 0x263   :  { %v1609_v0 = vpop.f32.mrf.mxu1 }
 0x264   :  { %v1610_v48 = vadd.f32 %v1609_v0, %v1581_v9 }
 0x268   :  { %v1636_v30 = vpop.f32.mrf.mxu2 }
 0x269   :  { %v1637_v7 = vadd.f32 %v1636_v30, %v1608_v5 }
 0x26f   :  { %v1665_v63 = vpop.f32.mrf.mxu3  ;;  %v1583_v22 = vpop.f32.mrf.mxu0 }
 0x270   :  { %v1666_v42 = vadd.f32 %v1665_v63, %v1637_v7  ;;  %v1638_v59 = vpop.f32.mrf.mxu2  ;;  %v1584_v41 = vadd.f32 %v3813_v62, %v1583_v22 }
 0x271   :  { %v1639_v57 = vadd.f32 %v1638_v59, %v1610_v48 }
 0x272   :  { %v3854_v28 = vadd.f32 %v1666_v42, %v4093_v13 }
 0x274   :  { %v1697_v43 = vsel %vm49_vm0, %v3854_v28, 0.0  ;;  %v1721_v11 = vmul.f32 %v3854_v28, %v3854_v28 }
 0x275   :  { %1698 = vadd.xlane.f32.xlu2 %v1697_v43 }
 0x276   :  { %v1737_v37 = vsel %vm49_vm0, %v1721_v11, 0.0  ;;  %v1612_v3 = vpop.f32.mrf.mxu1 }
 0x277   :  { %v1667_v39 = vpop.f32.mrf.mxu3  ;;  %1738 = vadd.xlane.f32.xlu1 %v1737_v37  ;;  %v1613_v18 = vadd.f32 %v1612_v3, %v1584_v41  ;;  %v1585_v52 = vpop.f32.mrf.mxu0  ;;  %v3895_v37 = vld [vmem:[%s3978_s9] ss:$0 sm:$0xff] }
 0x278   :  { %v1668_v12 = vadd.f32 %v1667_v39, %v1639_v57  ;;  %v1586_v23 = vadd.f32 %v3813_v62, %v1585_v52 }
 0x27a   :  { %v3862_v25 = vadd.f32 %v1668_v12, %v4094_v16  ;;  %v3900_v16 = vld [vmem:[%s3979_s10] ss:$0 sm:$0xff] }
 0x27c   :  { %v1700_v1 = vsel %vm49_vm0, %v3862_v25, 0.0  ;;  %v1722_v38 = vmul.f32 %v3862_v25, %v3862_v25 }
 0x27d   :  { %1701 = vadd.xlane.f32.xlu0 %v1700_v1 }
 0x27e   :  { %v1614_v51 = vpop.f32.mrf.mxu1  ;;  %v1740_v46 = vsel %vm49_vm0, %v1722_v38, 0.0 }
 0x27f   :  { %v1615_v6 = vadd.f32 %v1614_v51, %v1586_v23 }
 0x283   :  { %v1641_v36 = vpop.f32.mrf.mxu2 }
 0x284   :  { %v1642_v40 = vadd.f32 %v1641_v36, %v1613_v18 }
 0x289   :  { %v1670_v32 = vpop.f32.mrf.mxu3 }
 0x28a   :  { %v1671_v54 = vadd.f32 %v1670_v32, %v1642_v40 }
 0x28b   :  { %v1643_v44 = vpop.f32.mrf.mxu2 }
 0x28c   :  { %v3869_v35 = vadd.f32 %v1671_v54, %v4095_v49  ;;  %v1644_v34 = vadd.f32 %v1643_v44, %v1615_v6 }
 0x28e   :  { %v1703_v17 = vsel %vm49_vm0, %v3869_v35, 0.0  ;;  %v1723_v19 = vmul.f32 %v3869_v35, %v3869_v35 }
 0x28f   :  { %1704 = vadd.xlane.f32.xlu1 %v1703_v17 }
 0x290   :  { %v1743_v15 = vsel %vm49_vm0, %v1723_v19, 0.0 }
 0x291   :  { %v1672_v31 = vpop.f32.mrf.mxu3  ;;  %1744 = vadd.xlane.f32.xlu0 %v1743_v15 }
 0x292   :  { %v1673_v62 = vadd.f32 %v1672_v31, %v1644_v34 }
 0x294   :  { %v3877_v33 = vadd.f32 %v1673_v62, %v4096_v60 }
 0x296   :  { %v1706_v55 = vsel %vm49_vm0, %v3877_v33, 0.0  ;;  %v1724_v53 = vmul.f32 %v3877_v33, %v3877_v33 }
 0x297   :  { %1707 = vadd.xlane.f32.xlu2 %v1706_v55 }
 0x298   :  { %v1746_v61 = vsel %vm49_vm0, %v1724_v53, 0.0 }
 0x299   :  { %1747 = vadd.xlane.f32.xlu1 %v1746_v61 }
 0x29f   :  { %1741 = vadd.xlane.f32.xlu2 %v1740_v46 }
 0x2a7   :  { %v1687_v21 = vpop.xlane.xlu1 %1686 }
 0x2a8   :  { %v1709_v8 = vmul.f32 %v1687_v21, %v4097_v29 }
 0x2a9   :  { %v1727_v24 = vpop.xlane.xlu0 %1726 }
 0x2aa   :  { %v1757_v47 = vmul.f32 %v1709_v8, %v1709_v8  ;;  %v1749_v2 = vmul.f32 %v1727_v24, %v4097_v29  ;;  %v1781_v11 = vsub.f32 %v3818_v14, %v1709_v8 }
 0x2ac   :  { %v1765_v56 = vsub.f32 %v1749_v2, %v1757_v47 }
 0x2ae   :  { %v1773_v58 = vmax.f32 %v1765_v56, 0.0 }
 0x2af   :  { %v1690_v26 = vpop.xlane.xlu2 %1689 }
 0x2b0   :  { %v1789_v4 = vadd.f32 1e-05, %v1773_v58  ;;  %v1710_v50 = vmul.f32 %v1690_v26, %v4097_v29 }
 0x2b1   :  { %v1730_v30 = vpop.xlane.xlu1 %1729 }
 0x2b2   :  { %2375 = vrsqrt.f32 %v1789_v4  ;;  %v1758_v5 = vmul.f32 %v1710_v50, %v1710_v50  ;;  %v1750_v20 = vmul.f32 %v1730_v30, %v4097_v29  ;;  %vm1803_vm5 = vweird.f32 %v1789_v4 }
 0x2b3   :  { %v1782_v52 = vsub.f32 %v3826_v27, %v1710_v50 }
 0x2b4   :  { %v1766_v7 = vsub.f32 %v1750_v20, %v1758_v5 }
 0x2b6   :  { %v1774_v9 = vmax.f32 %v1766_v7, 0.0 }
 0x2b8   :  { %v2376_v63 = vpop.eup %2375  ;;  %v1790_v0 = vadd.f32 1e-05, %v1774_v9 }
 0x2b9   :  { %v1798_v42 = vmul.f32 %v2376_v63, %v1789_v4  ;;  %vm1804_vm4 = vweird.f32 %v2376_v63 }
 0x2ba   :  { %2377 = vrsqrt.f32 %v1790_v0  ;;  %vm1805_vm6 = vmor %vm1803_vm5, %vm1804_vm4  ;;  %vm1813_vm8 = vweird.f32 %v1790_v0 }
 0x2bb   :  { %v1799_v59 = vmul.f32 %v2376_v63, %v1798_v42 }
 0x2bd   :  { %v1800_v48 = vmul.f32 0.5, %v1799_v59 }
 0x2bf   :  { %v1801_v13 = vsub.f32 1.5, %v1800_v48 }
 0x2c0   :  { %v2378_v57 = vpop.eup %2377 }
 0x2c1   :  { %v1802_v43 = vmul.f32 %v2376_v63, %v1801_v13  ;;  %v1808_v39 = vmul.f32 %v2378_v57, %v1790_v0  ;;  %vm1814_vm7 = vweird.f32 %v2378_v57 }
 0x2c2   :  { %vm1815_vm9 = vmor %vm1813_vm8, %vm1814_vm7 }
 0x2c3   :  { %v1806_v12 = vsel %vm1805_vm6, %v2376_v63, %v1802_v43  ;;  %v1809_v1 = vmul.f32 %v2378_v57, %v1808_v39 }
 0x2c4   :  { %v1877_v22 = vmul.f32 %v1806_v12, %v1781_v11 }
 0x2c5   :  { %v1810_v3 = vmul.f32 0.5, %v1809_v1 }
 0x2c6   :  { %v1888_v41 = vmul.f32 %v3895_v37, %v1877_v22 }
 0x2c7   :  { %v1811_v36 = vsub.f32 1.5, %v1810_v3 }
 0x2c8   :  { %v1899_v14 = vadd.f32 %v3900_v16, %v1888_v41 }
 0x2c9   :  { %v1812_v18 = vmul.f32 %v2378_v57, %v1811_v36 }
 0x2ca   :  { %1907 = vst.msk [vmem:[%s3980_s11] sm:$0xff] %vm49_vm0, %v1899_v14 }
 0x2cb   :  { %v1693_v40 = vpop.xlane.xlu0 %1692  ;;  %v1816_v23 = vsel %vm1815_vm9, %v2378_v57, %v1812_v18 }
 0x2cc   :  { %v1711_v32 = vmul.f32 %v1693_v40, %v4097_v29  ;;  %v1878_v54 = vmul.f32 %v1816_v23, %v1782_v52 }
 0x2cd   :  { %v1733_v51 = vpop.xlane.xlu2 %1732 }
 0x2ce   :  { %v1759_v44 = vmul.f32 %v1711_v32, %v1711_v32  ;;  %v1751_v6 = vmul.f32 %v1733_v51, %v4097_v29  ;;  %v1889_v49 = vmul.f32 %v3895_v37, %v1878_v54  ;;  %v1783_v58 = vsub.f32 %v3836_v45, %v1711_v32 }
 0x2d0   :  { %v1767_v34 = vsub.f32 %v1751_v6, %v1759_v44  ;;  %v1900_v17 = vadd.f32 %v3900_v16, %v1889_v49 }
 0x2d2   :  { %v1775_v19 = vmax.f32 %v1767_v34, 0.0  ;;  %1908 = vst.msk [vmem:[%s3980_s11 + $0x8] sm:$0xff] %vm49_vm0, %v1900_v17 }
 0x2d3   :  { %v1696_v27 = vpop.xlane.xlu1 %1695 }
 0x2d4   :  { %v1791_v15 = vadd.f32 1e-05, %v1775_v19  ;;  %v1712_v31 = vmul.f32 %v1696_v27, %v4097_v29 }
 0x2d5   :  { %v1736_v62 = vpop.xlane.xlu0 %1735 }
 0x2d6   :  { %2379 = vrsqrt.f32 %v1791_v15  ;;  %v1760_v60 = vmul.f32 %v1712_v31, %v1712_v31  ;;  %v1752_v55 = vmul.f32 %v1736_v62, %v4097_v29  ;;  %vm1823_vm11 = vweird.f32 %v1791_v15 }
 0x2d7   :  { %v1784_v57 = vsub.f32 %v3844_v10, %v1712_v31 }
 0x2d8   :  { %v1768_v53 = vsub.f32 %v1752_v55, %v1760_v60 }
 0x2da   :  { %v1776_v61 = vmax.f32 %v1768_v53, 0.0 }
 0x2dc   :  { %v2380_v38 = vpop.eup %2379  ;;  %v1792_v21 = vadd.f32 1e-05, %v1776_v61 }
 0x2dd   :  { %v1818_v46 = vmul.f32 %v2380_v38, %v1791_v15  ;;  %vm1824_vm10 = vweird.f32 %v2380_v38 }
 0x2de   :  { %2381 = vrsqrt.f32 %v1792_v21  ;;  %vm1825_vm12 = vmor %vm1823_vm11, %vm1824_vm10  ;;  %vm1833_vm14 = vweird.f32 %v1792_v21 }
 0x2df   :  { %v1819_v8 = vmul.f32 %v2380_v38, %v1818_v46 }
 0x2e1   :  { %v1820_v24 = vmul.f32 0.5, %v1819_v8 }
 0x2e3   :  { %v1821_v47 = vsub.f32 1.5, %v1820_v24 }
 0x2e4   :  { %v2382_v2 = vpop.eup %2381 }
 0x2e5   :  { %v1822_v56 = vmul.f32 %v2380_v38, %v1821_v47  ;;  %v1828_v26 = vmul.f32 %v2382_v2, %v1792_v21  ;;  %vm1834_vm13 = vweird.f32 %v2382_v2 }
 0x2e6   :  { %vm1835_vm15 = vmor %vm1833_vm14, %vm1834_vm13 }
 0x2e7   :  { %v1826_v4 = vsel %vm1825_vm12, %v2380_v38, %v1822_v56  ;;  %v1829_v30 = vmul.f32 %v2382_v2, %v1828_v26 }
 0x2e8   :  { %v1879_v50 = vmul.f32 %v1826_v4, %v1783_v58  ;;  %v1699_v5 = vpop.xlane.xlu2 %1698 }
 0x2e9   :  { %v1713_v20 = vmul.f32 %v1699_v5, %v4097_v29  ;;  %v1830_v9 = vmul.f32 0.5, %v1829_v30 }
 0x2ea   :  { %v1890_v7 = vmul.f32 %v3895_v37, %v1879_v50  ;;  %v1739_v63 = vpop.xlane.xlu1 %1738 }
 0x2eb   :  { %v1761_v42 = vmul.f32 %v1713_v20, %v1713_v20  ;;  %v1753_v0 = vmul.f32 %v1739_v63, %v4097_v29  ;;  %v1831_v48 = vsub.f32 1.5, %v1830_v9  ;;  %v1785_v23 = vsub.f32 %v3854_v28, %v1713_v20 }
 0x2ec   :  { %v1901_v59 = vadd.f32 %v3900_v16, %v1890_v7 }
 0x2ed   :  { %v1769_v45 = vsub.f32 %v1753_v0, %v1761_v42  ;;  %v1832_v13 = vmul.f32 %v2382_v2, %v1831_v48 }
 0x2ee   :  { %1909 = vst.msk [vmem:[%s3980_s11 + $0x10] sm:$0xff] %vm49_vm0, %v1901_v59 }
 0x2ef   :  { %v1777_v43 = vmax.f32 %v1769_v45, 0.0  ;;  %v1836_v11 = vsel %vm1835_vm15, %v2382_v2, %v1832_v13 }
 0x2f0   :  { %v1880_v39 = vmul.f32 %v1836_v11, %v1784_v57  ;;  %v1702_v36 = vpop.xlane.xlu0 %1701 }
 0x2f1   :  { %v1793_v12 = vadd.f32 1e-05, %v1777_v43  ;;  %v1714_v53 = vmul.f32 %v1702_v36, %v4097_v29 }
 0x2f2   :  { %v1891_v22 = vmul.f32 %v3895_v37, %v1880_v39 }
 0x2f3   :  { %2383 = vrsqrt.f32 %v1793_v12  ;;  %vm1843_vm2 = vweird.f32 %v1793_v12  ;;  %v1762_v8 = vmul.f32 %v1714_v53, %v1714_v53 }
 0x2f4   :  { %v1902_v1 = vadd.f32 %v3900_v16, %v1891_v22 }
 0x2f6   :  { %1910 = vst.msk [vmem:[%s3980_s11 + $0x18] sm:$0xff] %vm49_vm0, %v1902_v1 }
 0x2f9   :  { %v2384_v41 = vpop.eup %2383 }
 0x2fa   :  { %v1838_v3 = vmul.f32 %v2384_v41, %v1793_v12  ;;  %vm1844_vm1 = vweird.f32 %v2384_v41 }
 0x2fb   :  { %vm1845_vm3 = vmor %vm1843_vm2, %vm1844_vm1 }
 0x2fc   :  { %v1839_v14 = vmul.f32 %v2384_v41, %v1838_v3 }
 0x2fe   :  { %v1840_v10 = vmul.f32 0.5, %v1839_v14  ;;  %v1786_v14 = vsub.f32 %v3862_v25, %v1714_v53 }
 0x300   :  { %v1841_v18 = vsub.f32 1.5, %v1840_v10 }
 0x302   :  { %v1842_v52 = vmul.f32 %v2384_v41, %v1841_v18  ;;  %v1705_v40 = vpop.xlane.xlu1 %1704 }
 0x303   :  { %v1715_v32 = vmul.f32 %v1705_v40, %v4097_v29 }
 0x304   :  { %v1846_v54 = vsel %vm1845_vm3, %v2384_v41, %v1842_v52  ;;  %v1745_v51 = vpop.xlane.xlu0 %1744 }
 0x305   :  { %v1881_v44 = vmul.f32 %v1846_v54, %v1785_v23  ;;  %v1763_v6 = vmul.f32 %v1715_v32, %v1715_v32  ;;  %v1755_v49 = vmul.f32 %v1745_v51, %v4097_v29  ;;  %v1787_v7 = vsub.f32 %v3869_v35, %v1715_v32 }
 0x307   :  { %v1892_v34 = vmul.f32 %v3895_v37, %v1881_v44  ;;  %v1771_v17 = vsub.f32 %v1755_v49, %v1763_v6 }
 0x309   :  { %v1903_v19 = vadd.f32 %v3900_v16, %v1892_v34  ;;  %v1779_v27 = vmax.f32 %v1771_v17, 0.0 }
 0x30a   :  { %v1708_v15 = vpop.xlane.xlu2 %1707 }
 0x30b   :  { %1911 = vst.msk [vmem:[%s3980_s11 + $0x20] sm:$0xff] %vm49_vm0, %v1903_v19  ;;  %v1795_v28 = vadd.f32 1e-05, %v1779_v27  ;;  %v1716_v31 = vmul.f32 %v1708_v15, %v4097_v29 }
 0x30c   :  { %v1748_v62 = vpop.xlane.xlu1 %1747 }
 0x30d   :  { %2385 = vrsqrt.f32 %v1795_v28  ;;  %v1764_v60 = vmul.f32 %v1716_v31, %v1716_v31  ;;  %v1756_v55 = vmul.f32 %v1748_v62, %v4097_v29  ;;  %vm1863_vm5 = vweird.f32 %v1795_v28 }
 0x30e   :  { %v1788_v11 = vsub.f32 %v3877_v33, %v1716_v31 }
 0x30f   :  { %v1772_v61 = vsub.f32 %v1756_v55, %v1764_v60 }
 0x311   :  { %v1780_v38 = vmax.f32 %v1772_v61, 0.0 }
 0x312   :  { %v1742_v46 = vpop.xlane.xlu2 %1741 }
 0x313   :  { %v2386_v21 = vpop.eup %2385  ;;  %v1754_v24 = vmul.f32 %v1742_v46, %v4097_v29  ;;  %v1796_v2 = vadd.f32 1e-05, %v1780_v38 }
 0x314   :  { %v1858_v47 = vmul.f32 %v2386_v21, %v1795_v28  ;;  %vm1864_vm4 = vweird.f32 %v2386_v21 }
 0x315   :  { %v1770_v56 = vsub.f32 %v1754_v24, %v1762_v8  ;;  %2387 = vrsqrt.f32 %v1796_v2  ;;  %vm1865_vm6 = vmor %vm1863_vm5, %vm1864_vm4  ;;  %vm1873_vm8 = vweird.f32 %v1796_v2 }
 0x316   :  { %v1859_v58 = vmul.f32 %v2386_v21, %v1858_v47 }
 0x317   :  { %v1778_v26 = vmax.f32 %v1770_v56, 0.0 }
 0x318   :  { %v1860_v4 = vmul.f32 0.5, %v1859_v58 }
 0x319   :  { %v1794_v50 = vadd.f32 1e-05, %v1778_v26 }
 0x31a   :  { %v1861_v30 = vsub.f32 1.5, %v1860_v4 }
 0x31b   :  { %2389 = vrsqrt.f32 %v1794_v50  ;;  %v2388_v5 = vpop.eup %2387  ;;  %vm1853_vm11 = vweird.f32 %v1794_v50 }
 0x31c   :  { %v1862_v20 = vmul.f32 %v2386_v21, %v1861_v30  ;;  %v1868_v9 = vmul.f32 %v2388_v5, %v1796_v2  ;;  %vm1874_vm7 = vweird.f32 %v2388_v5 }
 0x31d   :  { %vm1875_vm9 = vmor %vm1873_vm8, %vm1874_vm7 }
 0x31e   :  { %v1866_v63 = vsel %vm1865_vm6, %v2386_v21, %v1862_v20  ;;  %v1869_v42 = vmul.f32 %v2388_v5, %v1868_v9 }
 0x31f   :  { %v1883_v29 = vmul.f32 %v1866_v63, %v1787_v7 }
 0x320   :  { %v1870_v48 = vmul.f32 0.5, %v1869_v42 }
 0x321   :  { %v2390_v0 = vpop.eup %2389  ;;  %v1894_v59 = vmul.f32 %v3895_v37, %v1883_v29 }
 0x322   :  { %v1848_v45 = vmul.f32 %v2390_v0, %v1794_v50  ;;  %v1871_v57 = vsub.f32 1.5, %v1870_v48  ;;  %vm1854_vm10 = vweird.f32 %v2390_v0 }
 0x323   :  { %v1905_v13 = vadd.f32 %v3900_v16, %v1894_v59  ;;  %vm1855_vm12 = vmor %vm1853_vm11, %vm1854_vm10 }
 0x324   :  { %v1849_v43 = vmul.f32 %v2390_v0, %v1848_v45  ;;  %v1872_v35 = vmul.f32 %v2388_v5, %v1871_v57 }
 0x325   :  { %1913 = vst.msk [vmem:[%s3980_s11 + $0x30] sm:$0xff] %vm49_vm0, %v1905_v13 }
 0x326   :  { %v1850_v39 = vmul.f32 0.5, %v1849_v43  ;;  %v1876_v12 = vsel %vm1875_vm9, %v2388_v5, %v1872_v35 }
 0x327   :  { %v1884_v22 = vmul.f32 %v1876_v12, %v1788_v11 }
 0x328   :  { %v1851_v1 = vsub.f32 1.5, %v1850_v39 }
 0x329   :  { %v1895_v41 = vmul.f32 %v3895_v37, %v1884_v22 }
 0x32a   :  { %v1852_v3 = vmul.f32 %v2390_v0, %v1851_v1 }
 0x32b   :  { %v1906_v36 = vadd.f32 %v3900_v16, %v1895_v41 }
 0x32c   :  { %v1856_v10 = vsel %vm1855_vm12, %v2390_v0, %v1852_v3 }
 0x32d   :  { %v1882_v18 = vmul.f32 %v1856_v10, %v1786_v14  ;;  %1914 = vst.msk [vmem:[%s3980_s11 + $0x38] sm:$0xff] %vm49_vm0, %v1906_v36 }
 0x32f   :  { %v1893_v33 = vmul.f32 %v3895_v37, %v1882_v18 }
 0x331   :  { %v1904_v52 = vadd.f32 %v3900_v16, %v1893_v33 }
 0x333   :  { %1912 = vst.msk [vmem:[%s3980_s11 + $0x28] sm:$0xff] %vm49_vm0, %v1904_v52 }

// kernel: tpu_custom_call.1
= control target key start
LH: loop header
LB: loop body
LE: loop exit
PB: predicated region body
PF: predicated region fallthrough
CT: control target
= control target key end

     0   :  { %vm49_vm0 = vcmask 261120   ;;  %v2391_v32 = vmov 32.0   ;;  %s3969_s0 = inlined_call_operand.vmem [shape: f32[64,32], index: 0, kind: input, shape index: {}]   ;;  %s3970_s1 = inlined_call_operand.vmem [shape: f32[1,32], index: 1, kind: input, shape index: {}]   ;;  %s3971_s2 = inlined_call_operand.vmem [shape: f32[1,32], index: 2, kind: input, shape index: {}]   ;;  %s3972_s3 = inlined_call_operand.vmem [shape: bf16[32,512], index: 3, kind: input, shape index: {}]   ;;  %s3973_s4 = inlined_call_operand.vmem [shape: bf16[32,512], index: 4, kind: input, shape index: {}]   ;;  %s3974_s7 = inlined_call_operand.vmem [shape: bf16[512,32], index: 7, kind: input, shape index: {}]   ;;  %s3975_s5 = inlined_call_operand.vmem [shape: f32[1,512], index: 5, kind: input, shape index: {}]   ;;  %s3976_s6 = inlined_call_operand.vmem [shape: f32[1,512], index: 6, kind: input, shape index: {}]   ;;  %s3977_s8 = inlined_call_operand.vmem [shape: f32[1,32], index: 8, kind: input, shape index: {}]   ;;  %s3978_s9 = inlined_call_operand.vmem [shape: f32[1,32], index: 9, kind: input, shape index: {}]   ;;  %s3979_s10 = inlined_call_operand.vmem [shape: f32[1,32], index: 10, kind: input, shape index: {}]   ;;  %s3980_s11 = inlined_call_operand.vmem [shape: f32[64,32], index: 11, kind: output, shape index: {}]  }
   0x1   :  { %v2455_v0 = vld [vmem:[%s3969_s0] sm:$0xff]  ;;  %v2460_v1 = vld [vmem:[%s3969_s0 + $0x10] sm:$0xff]  ;;  %v2471_v5 = vld [vmem:[%s3969_s0 + $0x8] sm:$0xff]  ;;  %2229 = vrcp.f32 %v2391_v32 }
   0x2   :  { %v50_v2 = vsel %vm49_vm0, %v2455_v0, 0.0  ;;  %v56_v3 = vsel %vm49_vm0, %v2460_v1, 0.0  ;;  %v89_v4 = vmul.f32 %v2455_v0, %v2455_v0  ;;  %v2477_v7 = vld [vmem:[%s3969_s0 + $0x18] sm:$0xff]  ;;  %v90_v8 = vmul.f32 %v2471_v5, %v2471_v5  ;;  %v2491_v13 = vld [vmem:[%s3969_s0 + $0x20] sm:$0xff]  ;;  %v2501_v17 = vld [vmem:[%s3969_s0 + $0x28] sm:$0xff] }
   0x3   :  { %51 = vadd.xlane.f32.xlu0 %v50_v2  ;;  %57 = vadd.xlane.f32.xlu2 %v56_v3  ;;  %v53_v9 = vsel %vm49_vm0, %v2471_v5, 0.0  ;;  %v59_v10 = vsel %vm49_vm0, %v2477_v7, 0.0  ;;  %v91_v12 = vmul.f32 %v2460_v1, %v2460_v1  ;;  %v92_v14 = vmul.f32 %v2477_v7, %v2477_v7  ;;  %v2514_v23 = vld [vmem:[%s3969_s0 + $0x30] sm:$0xff]  ;;  %v2522_v26 = vld [vmem:[%s3969_s0 + $0x38] sm:$0xff]  ;;  %v1937_v46 = vld [vmem:[%s3972_s3 + $0x20] sm:$0xf] }
   0x4   :  { %v97_v6 = vsel %vm49_vm0, %v89_v4, 0.0  ;;  %v100_v11 = vsel %vm49_vm0, %v90_v8, 0.0  ;;  %v62_v16 = vsel %vm49_vm0, %v2491_v13, 0.0  ;;  %v94_v19 = vmul.f32 %v2501_v17, %v2501_v17  ;;  %v2181_v47 = vld [vmem:[%s3972_s3 + $0x2c] sm:$0xf0] }
   0x5   :  { %98 = vadd.xlane.f32.xlu1 %v97_v6  ;;  %v103_v15 = vsel %vm49_vm0, %v91_v12, 0.0  ;;  %v106_v18 = vsel %vm49_vm0, %v92_v14, 0.0  ;;  %v93_v20 = vmul.f32 %v2491_v13, %v2491_v13  ;;  %v65_v21 = vsel %vm49_vm0, %v2501_v17, 0.0  ;;  %v2179_v48 = vld [vmem:[%s3972_s3 + $0x24] sm:$0xf] }
   0x6   :  { %v112_v22 = vsel %vm49_vm0, %v94_v19, 0.0  ;;  %v95_v25 = vmul.f32 %v2514_v23, %v2514_v23  ;;  %v68_v27 = vsel %vm49_vm0, %v2514_v23, 0.0  ;;  %v71_v29 = vsel %vm49_vm0, %v2522_v26, 0.0  ;;  %v1939_v50 = vld [vmem:[%s3972_s3 + $0x30] sm:$0xf0] }
   0x7   :  { %v109_v24 = vsel %vm49_vm0, %v93_v20, 0.0  ;;  %v96_v30 = vmul.f32 %v2522_v26, %v2522_v26  ;;  %v2230_v33 = vpop.eup %2229  ;;  %v1938_v49 = vor.u32 %v2181_v47, %v1937_v46  ;;  %v1945_v51 = vld [vmem:[%s3972_s3 + $0x28] sm:$0xf]  ;;  %v2182_v52 = vld [vmem:[%s3972_s3 + $0x34] sm:$0xf0]  ;;  %v1942_v56 = vor.u32 %v2179_v48, %v1939_v50 }
   0x8   :  { %v115_v28 = vsel %vm49_vm0, %v95_v25, 0.0  ;;  %v75_v34 = vmul.f32 32.0, %v2230_v33  ;;  %vm79_vm1 = vweird.f32 %v2230_v33  ;;  %v1946_v57 = vor.u32 %v2182_v52, %v1945_v51  ;;  %v2180_v58 = vld [vmem:[%s3972_s3 + $0x2c] sm:$0xf]  ;;  %v1947_v59 = vld [vmem:[%s3972_s3 + $0x38] sm:$0xf0] }
   0x9   :  { %v118_v31 = vsel %vm49_vm0, %v96_v30, 0.0  ;;  %359 = vmatpush.bf16.msra.mxu0 %v1938_v49  ;;  %v1950_v61 = vor.u32 %v2180_v58, %v1947_v59  ;;  %388 = vmatpush.bf16.msra.mxu1 %v1942_v56  ;;  %v1921_v2 = vld [vmem:[%s3972_s3] sm:$0xf]  ;;  %v2177_v3 = vld [vmem:[%s3972_s3 + $0xc] sm:$0xf0] }
   0xa   :  { %v76_v35 = vsub.f32 1.0, %v75_v34  ;;  %417 = vmatpush.bf16.msra.mxu2 %v1946_v57  ;;  %v2175_v8 = vld [vmem:[%s3972_s3 + $0x4] sm:$0xf]  ;;  %v1922_v12 = vor.u32 %v2177_v3, %v1921_v2  ;;  %v2178_v14 = vld [vmem:[%s3972_s3 + $0x14] sm:$0xf0] }
   0xb   :  { %54 = vadd.xlane.f32.xlu0 %v53_v9  ;;  %60 = vadd.xlane.f32.xlu2 %v59_v10  ;;  %v1923_v9 = vld [vmem:[%s3972_s3 + $0x10] sm:$0xf0]  ;;  %v1929_v10 = vld [vmem:[%s3972_s3 + $0x8] sm:$0xf] }
   0xc   :  { %v77_v36 = vmul.f32 %v2230_v33, %v76_v35  ;;  %446 = vmatpush.bf16.msra.mxu3 %v1950_v61  ;;  %v1930_v19 = vor.u32 %v2178_v14, %v1929_v10 }
   0xd   :  { %101 = vadd.xlane.f32.xlu1 %v100_v11  ;;  %360 = vmatpush.bf16.msra.mxu0 %v1922_v12 }
   0xe   :  { %v78_v37 = vadd.f32 %v2230_v33, %v77_v36  ;;  %418 = vmatpush.bf16.msra.mxu2 %v1930_v19 }
  0x10   :  { %v2532_v38 = vsel %vm79_vm1, %v2230_v33, %v78_v37 }
  0x11   :  { %3998 = vst [vmem:[#allocation2_spill] sm:$0xff] %v2532_v38 }
  0x13   :  { %104 = vadd.xlane.f32.xlu0 %v103_v15  ;;  %63 = vadd.xlane.f32.xlu2 %v62_v16  ;;  %v2176_v15 = vld [vmem:[%s3972_s3 + $0xc] sm:$0xf]  ;;  %v1931_v16 = vld [vmem:[%s3972_s3 + $0x18] sm:$0xf0] }
  0x14   :  { %v1934_v20 = vor.u32 %v2176_v15, %v1931_v16 }
  0x15   :  { %107 = vadd.xlane.f32.xlu1 %v106_v18  ;;  %v1926_v18 = vor.u32 %v2175_v8, %v1923_v9 }
  0x16   :  { %447 = vmatpush.bf16.msra.mxu3 %v1934_v20  ;;  %v2651_v20 = vld [vmem:[%s3970_s1] ss:$0 sm:$0xff] }
  0x17   :  { %389 = vmatpush.bf16.msra.mxu1 %v1926_v18 }
  0x1b   :  { %66 = vadd.xlane.f32.xlu0 %v65_v21  ;;  %113 = vadd.xlane.f32.xlu2 %v112_v22 }
  0x1d   :  { %110 = vadd.xlane.f32.xlu1 %v109_v24 }
  0x23   :  { %69 = vadd.xlane.f32.xlu0 %v68_v27  ;;  %116 = vadd.xlane.f32.xlu2 %v115_v28 }
  0x25   :  { %72 = vadd.xlane.f32.xlu1 %v71_v29 }
  0x2b   :  { %119 = vadd.xlane.f32.xlu0 %v118_v31 }
  0x76   :  { %v52_v39 = vpop.xlane.xlu0 %51  ;;  %v58_v40 = vpop.xlane.xlu2 %57 }
  0x77   :  { %v2535_v41 = vmul.f32 %v2532_v38, %v52_v39  ;;  %v2576_v4 = vmul.f32 %v2532_v38, %v58_v40 }
  0x78   :  { %v99_v42 = vpop.xlane.xlu1 %98 }
  0x79   :  { %v129_v43 = vmul.f32 %v2535_v41, %v2535_v41  ;;  %v121_v44 = vmul.f32 %v99_v42, %v2532_v38  ;;  %v131_v24 = vmul.f32 %v2576_v4, %v2576_v4  ;;  %v153_v10 = vsub.f32 %v2455_v0, %v2535_v41 }
  0x7b   :  { %v137_v45 = vsub.f32 %v121_v44, %v129_v43 }
  0x7d   :  { %v145_v53 = vmax.f32 %v137_v45, 0.0 }
  0x7e   :  { %v55_v54 = vpop.xlane.xlu0 %54  ;;  %v61_v55 = vpop.xlane.xlu2 %60 }
  0x7f   :  { %v2565_v60 = vmul.f32 %v2532_v38, %v55_v54  ;;  %v2567_v62 = vadd.f32 1e-05, %v145_v53  ;;  %v2601_v21 = vmul.f32 %v2532_v38, %v61_v55 }
  0x80   :  { %v102_v63 = vpop.xlane.xlu1 %101 }
  0x81   :  { %v130_v6 = vmul.f32 %v2565_v60, %v2565_v60  ;;  %2231 = vrsqrt.f32 %v2567_v62  ;;  %v122_v11 = vmul.f32 %v102_v63, %v2532_v38  ;;  %v132_v31 = vmul.f32 %v2601_v21, %v2601_v21 }
  0x82   :  { %vm175_vm3 = vweird.f32 %v2567_v62 }
  0x83   :  { %v138_v22 = vsub.f32 %v122_v11, %v130_v6 }
  0x85   :  { %v146_v25 = vmax.f32 %v138_v22, 0.0 }
  0x86   :  { %v105_v27 = vpop.xlane.xlu0 %104  ;;  %v64_v28 = vpop.xlane.xlu2 %63 }
  0x87   :  { %v123_v29 = vmul.f32 %v105_v27, %v2532_v38  ;;  %v2232_v30 = vpop.eup %2231  ;;  %v162_v32 = vadd.f32 1e-05, %v146_v25  ;;  %v2611_v40 = vmul.f32 %v2532_v38, %v64_v28 }
  0x88   :  { %v108_v33 = vpop.xlane.xlu1 %107  ;;  %v170_v34 = vmul.f32 %v2232_v30, %v2567_v62  ;;  %vm176_vm2 = vweird.f32 %v2232_v30 }
  0x89   :  { %v139_v35 = vsub.f32 %v123_v29, %v131_v24  ;;  %2233 = vrsqrt.f32 %v162_v32  ;;  %v124_v36 = vmul.f32 %v108_v33, %v2532_v38  ;;  %v133_v51 = vmul.f32 %v2611_v40, %v2611_v40  ;;  %vm2629_vm4 = vmor %vm175_vm3, %vm176_vm2 }
  0x8a   :  { %v171_v37 = vmul.f32 %v2232_v30, %v170_v34  ;;  %vm185_vm6 = vweird.f32 %v162_v32  ;;  %v154_v29 = vsub.f32 %v2471_v5, %v2565_v60  ;;  %v2670_v34 = vld [vmem:[%s3971_s2] ss:$0 sm:$0xff] }
  0x8b   :  { %v147_v39 = vmax.f32 %v139_v35, 0.0  ;;  %v140_v42 = vsub.f32 %v124_v36, %v132_v31 }
  0x8c   :  { %v172_v43 = vmul.f32 0.5, %v171_v37 }
  0x8d   :  { %v2613_v44 = vadd.f32 1e-05, %v147_v39  ;;  %v148_v45 = vmax.f32 %v140_v42, 0.0 }
  0x8e   :  { %v67_v46 = vpop.xlane.xlu0 %66  ;;  %v114_v47 = vpop.xlane.xlu2 %113  ;;  %v173_v48 = vsub.f32 1.5, %v172_v43 }
  0x8f   :  { %2235 = vrsqrt.f32 %v2613_v44  ;;  %v2617_v49 = vmul.f32 %v2532_v38, %v67_v46  ;;  %v2234_v50 = vpop.eup %2233  ;;  %v2621_v52 = vadd.f32 1e-05, %v148_v45  ;;  %v126_v53 = vmul.f32 %v114_v47, %v2532_v38 }
  0x90   :  { %v111_v54 = vpop.xlane.xlu1 %110  ;;  %v174_v55 = vmul.f32 %v2232_v30, %v173_v48  ;;  %v180_v56 = vmul.f32 %v2234_v50, %v162_v32  ;;  %vm186_vm5 = vweird.f32 %v2234_v50  ;;  %vm195_vm12 = vweird.f32 %v2613_v44 }
  0x91   :  { %v134_v57 = vmul.f32 %v2617_v49, %v2617_v49  ;;  %2237 = vrsqrt.f32 %v2621_v52  ;;  %v125_v58 = vmul.f32 %v111_v54, %v2532_v38  ;;  %vm187_vm7 = vmor %vm185_vm6, %vm186_vm5  ;;  %vm205_vm8 = vweird.f32 %v2621_v52 }
  0x92   :  { %v181_v59 = vmul.f32 %v2234_v50, %v180_v56  ;;  %v178_v6 = vsel %vm2629_vm4, %v2232_v30, %v174_v55 }
  0x93   :  { %v142_v61 = vsub.f32 %v126_v53, %v134_v57  ;;  %v141_v2 = vsub.f32 %v125_v58, %v133_v51  ;;  %v249_v0 = vmul.f32 %v178_v6, %v153_v10  ;;  %v1995_v10 = vld [vmem:[%s3973_s4 + $0x38] sm:$0xf0] }
  0x94   :  { %v182_v8 = vmul.f32 0.5, %v181_v59  ;;  %v1993_v59 = vld [vmem:[%s3973_s4 + $0x28] sm:$0xf] }
  0x95   :  { %v2633_v3 = vpop.eup %2235  ;;  %v150_v9 = vmax.f32 %v142_v61, 0.0  ;;  %v149_v11 = vmax.f32 %v141_v2, 0.0  ;;  %v260_v35 = vmul.f32 %v2651_v20, %v249_v0  ;;  %v2190_v61 = vld [vmem:[%s3973_s4 + $0x34] sm:$0xf0] }
  0x96   :  { %v190_v62 = vmul.f32 %v2633_v3, %v2613_v44  ;;  %v70_v12 = vpop.xlane.xlu0 %69  ;;  %v117_v14 = vpop.xlane.xlu2 %116  ;;  %v183_v15 = vsub.f32 1.5, %v182_v8  ;;  %vm196_vm10 = vweird.f32 %v2633_v3  ;;  %v156_v44 = vsub.f32 %v2477_v7, %v2601_v21 }
  0x97   :  { %v2641_v16 = vadd.f32 1e-05, %v150_v9  ;;  %v2644_v18 = vmul.f32 %v2532_v38, %v70_v12  ;;  %v2646_v19 = vpop.eup %2237  ;;  %v2654_v22 = vadd.f32 1e-05, %v149_v11  ;;  %v127_v27 = vmul.f32 %v117_v14, %v2532_v38  ;;  %v2188_v9 = vld [vmem:[%s3973_s4 + $0x2c] sm:$0xf]  ;;  %vm2740_vm13 = vmor %vm195_vm12, %vm196_vm10 }
  0x98   :  { %v191_v41 = vmul.f32 %v2633_v3, %v190_v62  ;;  %v184_v24 = vmul.f32 %v2234_v50, %v183_v15  ;;  %v200_v25 = vmul.f32 %v2646_v19, %v2621_v52  ;;  %v73_v28 = vpop.xlane.xlu1 %72  ;;  %vm206_vm9 = vweird.f32 %v2646_v19  ;;  %v1985_v12 = vld [vmem:[%s3973_s4 + $0x20] sm:$0xf]  ;;  %v2189_v14 = vld [vmem:[%s3973_s4 + $0x2c] sm:$0xf0]  ;;  %v2187_v15 = vld [vmem:[%s3973_s4 + $0x24] sm:$0xf] }
  0x99   :  { %2239 = vrsqrt.f32 %v2641_v16  ;;  %v135_v33 = vmul.f32 %v2644_v18, %v2644_v18  ;;  %v2674_v5 = vmul.f32 %v2532_v38, %v73_v28  ;;  %v2687_v51 = vadd.f32 %v2670_v34, %v260_v35  ;;  %vm2711_vm11 = vmor %vm205_vm8, %vm206_vm9 }
  0x9a   :  { %v192_v30 = vmul.f32 0.5, %v191_v41  ;;  %2241 = vrsqrt.f32 %v2654_v22  ;;  %v188_v31 = vsel %vm187_vm7, %v2234_v50, %v184_v24  ;;  %v201_v32 = vmul.f32 %v2646_v19, %v200_v25  ;;  %v1987_v41 = vld [vmem:[%s3973_s4 + $0x30] sm:$0xf0] }
  0x9b   :  { %v250_v36 = vmul.f32 %v188_v31, %v154_v29  ;;  %v143_v39 = vsub.f32 %v127_v27, %v135_v33  ;;  %v136_v43 = vmul.f32 %v2674_v5, %v2674_v5  ;;  %4001 = vst [vmem:[#allocation3_spill] sm:$0xff] %v2687_v51  ;;  %v1994_v11 = vor.u32 %v2190_v61, %v1993_v59  ;;  %v1977_v27 = vld [vmem:[%s3973_s4 + $0x8] sm:$0xf]  ;;  %v1979_v31 = vld [vmem:[%s3973_s4 + $0x18] sm:$0xf0] }
  0x9c   :  { %v193_v60 = vsub.f32 1.5, %v192_v30  ;;  %v202_v37 = vmul.f32 0.5, %v201_v32  ;;  %v155_v7 = vsub.f32 %v2460_v1, %v2576_v4  ;;  %v1998_v25 = vor.u32 %v2188_v9, %v1995_v10  ;;  %v2186_v1 = vld [vmem:[%s3973_s4 + $0x14] sm:$0xf0]  ;;  %v2184_v30 = vld [vmem:[%s3973_s4 + $0xc] sm:$0xf] }
  0x9d   :  { %v261_v42 = vmul.f32 %v2651_v20, %v250_v36  ;;  %v151_v55 = vmax.f32 %v143_v39, 0.0  ;;  %591 = vmatpush.bf16.msrb.mxu2 %v1994_v11  ;;  %v1990_v29 = vor.u32 %v2187_v15, %v1987_v41  ;;  %v1978_v35 = vor.u32 %v2186_v1, %v1977_v27  ;;  %v2185_v39 = vld [vmem:[%s3973_s4 + $0xc] sm:$0xf0] }
  0x9e   :  { %v120_v45 = vpop.xlane.xlu0 %119  ;;  %v203_v47 = vsub.f32 1.5, %v202_v37  ;;  %v194_v56 = vmul.f32 %v2633_v3, %v193_v60  ;;  %620 = vmatpush.bf16.msrb.mxu3 %v1998_v25  ;;  %v1982_v36 = vor.u32 %v2184_v30, %v1979_v31  ;;  %v1969_v60 = vld [vmem:[%s3973_s4] sm:$0xf]  ;;  %vm225_vm14 = vweird.f32 %v2641_v16 }
  0x9f   :  { %v2679_v46 = vpop.eup %2239  ;;  %v128_v48 = vmul.f32 %v120_v45, %v2532_v38  ;;  %v2690_v53 = vadd.f32 %v2670_v34, %v261_v42  ;;  %v2744_v0 = vadd.f32 1e-05, %v151_v55  ;;  %562 = vmatpush.bf16.msrb.mxu1 %v1990_v29  ;;  %v2183_v42 = vld [vmem:[%s3973_s4 + $0x4] sm:$0xf]  ;;  %v1970_v45 = vor.u32 %v2185_v39, %v1969_v60  ;;  %v2198_v60 = vld [vmem:[%s3974_s7 + $0x38] sm:$0xff] }
  0xa0   :  { %v2684_v50 = vpop.eup %2241  ;;  %v220_v54 = vmul.f32 %v2679_v46, %v2641_v16  ;;  %v204_v57 = vmul.f32 %v2646_v19, %v203_v47  ;;  %v198_v21 = vsel %vm2740_vm13, %v2633_v3, %v194_v56  ;;  %v1986_v3 = vor.u32 %v2189_v14, %v1985_v12  ;;  %v2206_v39 = vld [vmem:[%s3974_s7 + $0x78] sm:$0xff] }
  0xa1   :  { %4002 = vst [vmem:[#allocation4_spill] sm:$0xff] %v2690_v53  ;;  %v210_v58 = vmul.f32 %v2684_v50, %v2654_v22  ;;  %v2707_v63 = vpack.c.bf16 %v2690_v53, %v2687_v51  ;;  %v144_v8 = vsub.f32 %v128_v48, %v136_v43  ;;  %v251_v37 = vmul.f32 %v198_v21, %v155_v7  ;;  %v1971_v43 = vld [vmem:[%s3973_s4 + $0x10] sm:$0xf0] }
  0xa2   :  { %v221_v6 = vmul.f32 %v2679_v46, %v220_v54  ;;  %v208_v52 = vsel %vm2711_vm11, %v2646_v19, %v204_v57  ;;  %2243 = vrsqrt.f32 %v2744_v0  ;;  %533 = vmatpush.bf16.msrb.mxu0 %v1986_v3  ;;  %592 = vmatpush.bf16.msrb.mxu2 %v1978_v35  ;;  %v1974_v48 = vor.u32 %v2183_v42, %v1971_v43 }
  0xa3   :  { %v211_v62 = vmul.f32 %v2684_v50, %v210_v58  ;;  %1951 = vmatmul.msk.bf16.vlgmr.msra.gmra.mxu0 %vm49_vm0, %v2707_v63  ;;  %1955 = vmatmul.msk.bf16.vlgmr.msra.gmra.mxu1 %vm49_vm0, %v2707_v63  ;;  %v152_v24 = vmax.f32 %v144_v8, 0.0  ;;  %v252_v4 = vmul.f32 %v208_v52, %v156_v44  ;;  %v262_v56 = vmul.f32 %v2651_v20, %v251_v37  ;;  %v2222_v37 = vld [vmem:[%s3974_s7 + $0xf8] sm:$0xff] }
  0xa4   :  { %1959 = vmatmul.msk.bf16.vlgmr.msra.gmra.mxu2 %vm49_vm0, %v2707_v63  ;;  %1963 = vmatmul.msk.bf16.vlgmr.msra.gmra.mxu3 %vm49_vm0, %v2707_v63  ;;  %v222_v28 = vmul.f32 0.5, %v221_v6  ;;  %vm226_vm15 = vweird.f32 %v2679_v46  ;;  %vm215_vm1 = vweird.f32 %v2654_v22  ;;  %vm216_vm2 = vweird.f32 %v2684_v50 }
  0xa5   :  { %v212_v32 = vmul.f32 0.5, %v211_v62  ;;  %v2774_v33 = vadd.f32 1e-05, %v152_v24  ;;  %v263_v47 = vmul.f32 %v2651_v20, %v252_v4  ;;  %621 = vmatpush.bf16.msrb.mxu3 %v1982_v36  ;;  %563 = vmatpush.bf16.msrb.mxu1 %v1974_v48  ;;  %v2802_v6 = vadd.f32 %v2670_v34, %v262_v56  ;;  %vm227_vm3 = vmor %vm225_vm14, %vm226_vm15  ;;  %v2214_v36 = vld [vmem:[%s3974_s7 + $0xb8] sm:$0xff]  ;;  %v2213_v48 = vld [vmem:[%s3974_s7 + $0xb0] sm:$0xff] }
  0xa6   :  { %v223_v54 = vsub.f32 1.5, %v222_v28  ;;  %534 = vmatpush.bf16.msrb.mxu0 %v1970_v45  ;;  %vm217_vm4 = vmor %vm215_vm1, %vm216_vm2  ;;  %v157_v22 = vsub.f32 %v2491_v13, %v2611_v40  ;;  %v158_v11 = vsub.f32 %v2501_v17, %v2617_v49  ;;  %vm235_vm7 = vweird.f32 %v2744_v0  ;;  %1617 = vmatpush.bf16.msra.mxu2 %v2214_v36  ;;  %v2205_v56 = vld [vmem:[%s3974_s7 + $0x70] sm:$0xff] }
  0xa7   :  { %2245 = vrsqrt.f32 %v2774_v33  ;;  %v213_v55 = vsub.f32 1.5, %v212_v32  ;;  %v2795_v58 = vadd.f32 %v2670_v34, %v263_v47  ;;  %4008 = vst [vmem:[#allocation6_spill] sm:$0xff] %v2802_v6  ;;  %vm245_vm5 = vweird.f32 %v2774_v33 }
  0xa8   :  { %v2244_v57 = vpop.eup %2243  ;;  %v224_v61 = vmul.f32 %v2679_v46, %v223_v54  ;;  %v160_v25 = vsub.f32 %v2522_v26, %v2674_v5  ;;  %v2197_v54 = vld [vmem:[%s3974_s7 + $0x30] sm:$0xff] }
  0xa9   :  { %4007 = vst [vmem:[#allocation5_spill] sm:$0xff] %v2795_v58  ;;  %v214_v2 = vmul.f32 %v2684_v50, %v213_v55  ;;  %v230_v8 = vmul.f32 %v2244_v57, %v2744_v0  ;;  %v280_v9 = vpack.c.bf16 %v2795_v58, %v2802_v6  ;;  %vm236_vm8 = vweird.f32 %v2244_v57  ;;  %1646 = vmatpush.bf16.msra.mxu3 %v2222_v37  ;;  %v2221_v55 = vld [vmem:[%s3974_s7 + $0xf0] sm:$0xff] }
  0xaa   :  { %v228_v10 = vsel %vm227_vm3, %v2679_v46, %v224_v61  ;;  %vm237_vm10 = vmor %vm235_vm7, %vm236_vm8  ;;  %v159_v0 = vsub.f32 %v2514_v23, %v2644_v18  ;;  %1559 = vmatpush.bf16.msra.mxu0 %v2198_v60  ;;  %1588 = vmatpush.bf16.msra.mxu1 %v2206_v39 }
  0xab   :  { %v218_v52 = vsel %vm217_vm4, %v2684_v50, %v214_v2  ;;  %v231_v12 = vmul.f32 %v2244_v57, %v230_v8  ;;  %v254_v14 = vmul.f32 %v228_v10, %v158_v11  ;;  %1618 = vmatpush.bf16.msra.mxu2 %v2213_v48  ;;  %v477_v48 = vld [vmem:[%s3976_s6] sm:$0xf] }
  0xac   :  { %v253_v46 = vmul.f32 %v218_v52, %v157_v22 }
  0xad   :  { %v2246_v59 = vpop.eup %2245  ;;  %v232_v50 = vmul.f32 0.5, %v231_v12  ;;  %v265_v44 = vmul.f32 %v2651_v20, %v254_v14  ;;  %1647 = vmatpush.bf16.msra.mxu3 %v2221_v55  ;;  %v2220_v55 = vld [vmem:[%s3974_s7 + $0xe8] sm:$0xff] }
  0xae   :  { %v240_v16 = vmul.f32 %v2246_v59, %v2774_v33  ;;  %v264_v13 = vmul.f32 %v2651_v20, %v253_v46  ;;  %vm246_vm6 = vweird.f32 %v2246_v59  ;;  %1560 = vmatpush.bf16.msra.mxu0 %v2197_v54  ;;  %1589 = vmatpush.bf16.msra.mxu1 %v2205_v56  ;;  %v2212_v54 = vld [vmem:[%s3974_s7 + $0xa8] sm:$0xff]  ;;  %v2195_v56 = vld [vmem:[%s3974_s7 + $0x20] sm:$0xff] }
  0xaf   :  { %v233_v19 = vsub.f32 1.5, %v232_v50  ;;  %v2822_v17 = vadd.f32 %v2670_v34, %v265_v44  ;;  %vm247_vm9 = vmor %vm245_vm5, %vm246_vm6  ;;  %1619 = vmatpush.bf16.msra.mxu2 %v2212_v54  ;;  %v3026_v54 = vperm.slane %v477_v48, 2 }
  0xb0   :  { %v241_v62 = vmul.f32 %v2246_v59, %v240_v16  ;;  %v2825_v49 = vadd.f32 %v2670_v34, %v264_v13 }
  0xb1   :  { %4009 = vst [vmem:[#allocation7_spill] sm:$0xff] %v2822_v17  ;;  %v234_v7 = vmul.f32 %v2244_v57, %v233_v19  ;;  %1648 = vmatpush.bf16.msra.mxu3 %v2220_v55  ;;  %v3028_v55 = vperm.slane %v477_v48, 3 }
  0xb2   :  { %v242_v15 = vmul.f32 0.5, %v241_v62  ;;  %4010 = vst [vmem:[#allocation8_spill] sm:$0xff] %v2825_v49  ;;  %v281_v21 = vpack.c.bf16 %v2822_v17, %v2825_v49 }
  0xb3   :  { %1952 = vmatmul.msk.bf16.gmra.mxu0 %vm49_vm0, %v280_v9  ;;  %1956 = vmatmul.msk.bf16.gmra.mxu1 %vm49_vm0, %v280_v9  ;;  %v238_v27 = vsel %vm237_vm10, %v2244_v57, %v234_v7  ;;  %v291_v57 = vld [vmem:[%s3975_s5] sm:$0xf] }
  0xb4   :  { %1960 = vmatmul.msk.bf16.gmra.mxu2 %vm49_vm0, %v280_v9  ;;  %1964 = vmatmul.msk.bf16.gmra.mxu3 %vm49_vm0, %v280_v9  ;;  %v243_v40 = vsub.f32 1.5, %v242_v15  ;;  %v255_v4 = vmul.f32 %v238_v27, %v159_v0  ;;  %v2929_v61 = vperm.slane %v291_v57, 1  ;;  %v2941_v62 = vperm.slane %v291_v57, 2  ;;  %v2196_v0 = vld [vmem:[%s3974_s7 + $0x28] sm:$0xff] }
  0xb5   :  { %v2943_v22 = vperm.slane %v291_v57, 3  ;;  %1561 = vmatpush.bf16.msra.mxu0 %v2196_v0  ;;  %v2194_v0 = vld [vmem:[%s3974_s7 + $0x18] sm:$0xff] }
  0xb6   :  { %v244_v41 = vmul.f32 %v2246_v59, %v243_v40  ;;  %v266_v3 = vmul.f32 %v2651_v20, %v255_v4 }
  0xb8   :  { %v248_v24 = vsel %vm247_vm9, %v2246_v59, %v244_v41  ;;  %v2844_v5 = vadd.f32 %v2670_v34, %v266_v3  ;;  %v2927_v59 = vperm.slane %v291_v57, 0  ;;  %v2203_v57 = vld [vmem:[%s3974_s7 + $0x60] sm:$0xff] }
  0xb9   :  { %v256_v1 = vmul.f32 %v248_v24, %v160_v25  ;;  %1562 = vmatpush.bf16.msra.mxu0 %v2195_v56  ;;  %v2193_v56 = vld [vmem:[%s3974_s7 + $0x10] sm:$0xff] }
  0xba   :  { %4012 = vst [vmem:[#allocation10_spill] sm:$0xff] %v2844_v5 }
  0xbb   :  { %v267_v28 = vmul.f32 %v2651_v20, %v256_v1  ;;  %v2204_v1 = vld [vmem:[%s3974_s7 + $0x68] sm:$0xff] }
  0xbc   :  { %1590 = vmatpush.bf16.msra.mxu1 %v2204_v1 }
  0xbd   :  { %v2841_v26 = vadd.f32 %v2670_v34, %v267_v28  ;;  %1563 = vmatpush.bf16.msra.mxu0 %v2194_v0 }
  0xbf   :  { %4011 = vst [vmem:[#allocation9_spill] sm:$0xff] %v2841_v26  ;;  %v282_v29 = vpack.c.bf16 %v2841_v26, %v2844_v5 }
  0xc0   :  { %1591 = vmatpush.bf16.msra.mxu1 %v2203_v57  ;;  %v2201_v57 = vld [vmem:[%s3974_s7 + $0x50] sm:$0xff] }
  0xc1   :  { %1564 = vmatpush.bf16.msra.mxu0 %v2193_v56 }
  0xc3   :  { %1953 = vmatmul.msk.bf16.gmra.mxu0 %vm49_vm0, %v281_v21  ;;  %1957 = vmatmul.msk.bf16.gmra.mxu1 %vm49_vm0, %v281_v21 }
  0xc4   :  { %1961 = vmatmul.msk.bf16.gmra.mxu2 %vm49_vm0, %v281_v21  ;;  %1965 = vmatmul.msk.bf16.gmra.mxu3 %vm49_vm0, %v281_v21 }
  0xd3   :  { %1954 = vmatmul.msk.bf16.gmra.mxu0 %vm49_vm0, %v282_v29  ;;  %1958 = vmatmul.msk.bf16.gmra.mxu1 %vm49_vm0, %v282_v29 }
  0xd4   :  { %1962 = vmatmul.msk.bf16.gmra.mxu2 %vm49_vm0, %v282_v29  ;;  %1966 = vmatmul.msk.bf16.gmra.mxu3 %vm49_vm0, %v282_v29 }
  0xe3   :  { %1999 = vmatmul.msk.bf16.vlgmr.msrb.gmra.mxu0 %vm49_vm0, %v2707_v63  ;;  %2003 = vmatmul.msk.bf16.vlgmr.msrb.gmra.mxu1 %vm49_vm0, %v2707_v63 }
  0xe4   :  { %2007 = vmatmul.msk.bf16.vlgmr.msrb.gmra.mxu2 %vm49_vm0, %v2707_v63  ;;  %2011 = vmatmul.msk.bf16.vlgmr.msrb.gmra.mxu3 %vm49_vm0, %v2707_v63 }
  0xf3   :  { %2000 = vmatmul.msk.bf16.gmra.mxu0 %vm49_vm0, %v280_v9  ;;  %2004 = vmatmul.msk.bf16.gmra.mxu1 %vm49_vm0, %v280_v9 }
  0xf4   :  { %2008 = vmatmul.msk.bf16.gmra.mxu2 %vm49_vm0, %v280_v9  ;;  %2012 = vmatmul.msk.bf16.gmra.mxu3 %vm49_vm0, %v280_v9 }
 0x103   :  { %2001 = vmatmul.msk.bf16.gmra.mxu0 %vm49_vm0, %v281_v21  ;;  %2005 = vmatmul.msk.bf16.gmra.mxu1 %vm49_vm0, %v281_v21 }
 0x104   :  { %2009 = vmatmul.msk.bf16.gmra.mxu2 %vm49_vm0, %v281_v21  ;;  %2013 = vmatmul.msk.bf16.gmra.mxu3 %vm49_vm0, %v281_v21 }
 0x113   :  { %2002 = vmatmul.msk.bf16.gmra.mxu0 %vm49_vm0, %v282_v29  ;;  %2006 = vmatmul.msk.bf16.gmra.mxu1 %vm49_vm0, %v282_v29 }
 0x114   :  { %2010 = vmatmul.msk.bf16.gmra.mxu2 %vm49_vm0, %v282_v29  ;;  %2014 = vmatmul.msk.bf16.gmra.mxu3 %vm49_vm0, %v282_v29 }
 0x120   :  { %v2872_v23 = vpop.f32.mrf.mxu0  ;;  %v2874_v18 = vpop.f32.mrf.mxu1 }
 0x127   :  { %v2876_v20 = vpop.f32.mrf.mxu2  ;;  %v2878_v34 = vpop.f32.mrf.mxu3 }
 0x128   :  { %v2880_v63 = vpop.f32.mrf.mxu0  ;;  %v2882_v30 = vpop.f32.mrf.mxu1 }
 0x129   :  { %v3100_v38 = vadd.f32 %v2882_v30, %v2929_v61 }
 0x12f   :  { %v2884_v31 = vpop.f32.mrf.mxu2  ;;  %v2886_v32 = vpop.f32.mrf.mxu3 }
 0x130   :  { %v2888_v33 = vpop.f32.mrf.mxu0  ;;  %v2890_v35 = vpop.f32.mrf.mxu1  ;;  %v3104_v26 = vadd.f32 %v2884_v31, %v2941_v62 }
 0x131   :  { %v3117_v30 = vadd.f32 %v2890_v35, %v2929_v61 }
 0x133   :  { %4029 = vst [vmem:[#allocation27_spill] sm:$0xff] %v3117_v30 }
 0x137   :  { %v2904_v42 = vpop.f32.mrf.mxu2  ;;  %v2906_v43 = vpop.f32.mrf.mxu3 }
 0x138   :  { %v2908_v45 = vpop.f32.mrf.mxu0  ;;  %v2910_v47 = vpop.f32.mrf.mxu1  ;;  %v3133_v35 = vadd.f32 %v2906_v43, %v2943_v22 }
 0x13a   :  { %4031 = vst [vmem:[#allocation29_spill] sm:$0xff] %v3133_v35 }
 0x13f   :  { %v2931_v2 = vpop.f32.mrf.mxu2  ;;  %v2933_v16 = vpop.f32.mrf.mxu3 }
 0x140   :  { %v372_v8 = vpop.f32.mrf.mxu0  ;;  %v401_v9 = vpop.f32.mrf.mxu1 }
 0x141   :  { %v2936_v10 = vadd.f32 %v372_v8, %v2927_v59  ;;  %v2939_v52 = vadd.f32 %v401_v9, %v2929_v61  ;;  %v3002_v8 = vperm.slane %v477_v48, 0  ;;  %v3004_v9 = vperm.slane %v477_v48, 1 }
 0x143   :  { %4013 = vst [vmem:[#allocation11_spill] sm:$0xff] %v2936_v10 }
 0x144   :  { %4014 = vst [vmem:[#allocation12_spill] sm:$0xff] %v2939_v52 }
 0x147   :  { %v430_v11 = vpop.f32.mrf.mxu2  ;;  %v459_v12 = vpop.f32.mrf.mxu3 }
 0x148   :  { %v2946_v14 = vadd.f32 %v430_v11, %v2941_v62  ;;  %v2949_v46 = vadd.f32 %v459_v12, %v2943_v22  ;;  %v374_v15 = vpop.f32.mrf.mxu0  ;;  %v403_v50 = vpop.f32.mrf.mxu1 }
 0x149   :  { %v2952_v44 = vadd.f32 %v374_v15, %v2927_v59  ;;  %v2955_v13 = vadd.f32 %v403_v50, %v2929_v61 }
 0x14a   :  { %4015 = vst [vmem:[#allocation13_spill] sm:$0xff] %v2946_v14 }
 0x14b   :  { %4016 = vst [vmem:[#allocation14_spill] sm:$0xff] %v2949_v46 }
 0x14c   :  { %4017 = vst [vmem:[#allocation15_spill] sm:$0xff] %v2952_v44 }
 0x14d   :  { %4018 = vst [vmem:[#allocation16_spill] sm:$0xff] %v2955_v13 }
 0x14f   :  { %v432_v40 = vpop.f32.mrf.mxu2  ;;  %v461_v19 = vpop.f32.mrf.mxu3 }
 0x150   :  { %v2958_v41 = vadd.f32 %v432_v40, %v2941_v62  ;;  %v2961_v7 = vadd.f32 %v461_v19, %v2943_v22  ;;  %v377_v21 = vpop.f32.mrf.mxu0  ;;  %v406_v24 = vpop.f32.mrf.mxu1 }
 0x151   :  { %v2964_v25 = vadd.f32 %v377_v21, %v2927_v59  ;;  %v2967_v27 = vadd.f32 %v406_v24, %v2929_v61  ;;  %v2211_v21 = vld [vmem:[%s3974_s7 + $0xa0] sm:$0xff] }
 0x152   :  { %4019 = vst [vmem:[#allocation17_spill] sm:$0xff] %v2958_v41  ;;  %v2219_v24 = vld [vmem:[%s3974_s7 + $0xe0] sm:$0xff]  ;;  %1620 = vmatpush.bf16.msra.mxu2 %v2211_v21 }
 0x153   :  { %4020 = vst [vmem:[#allocation18_spill] sm:$0xff] %v2961_v7  ;;  %1649 = vmatpush.bf16.msra.mxu3 %v2219_v24 }
 0x154   :  { %4021 = vst [vmem:[#allocation19_spill] sm:$0xff] %v2964_v25 }
 0x155   :  { %4022 = vst [vmem:[#allocation20_spill] sm:$0xff] %v2967_v27 }
 0x157   :  { %v435_v4 = vpop.f32.mrf.mxu2  ;;  %v464_v28 = vpop.f32.mrf.mxu3 }
 0x158   :  { %v2976_v3 = vadd.f32 %v435_v4, %v2941_v62  ;;  %v2979_v29 = vadd.f32 %v464_v28, %v2943_v22  ;;  %v379_v36 = vpop.f32.mrf.mxu0  ;;  %v408_v60 = vpop.f32.mrf.mxu1  ;;  %v2202_v28 = vld [vmem:[%s3974_s7 + $0x58] sm:$0xff] }
 0x159   :  { %v2982_v37 = vadd.f32 %v379_v36, %v2927_v59  ;;  %v2985_v39 = vadd.f32 %v408_v60, %v2929_v61  ;;  %1592 = vmatpush.bf16.msra.mxu1 %v2202_v28  ;;  %v2192_v28 = vld [vmem:[%s3974_s7 + $0x8] sm:$0xff] }
 0x15a   :  { %4023 = vst [vmem:[#allocation21_spill] sm:$0xff] %v2976_v3  ;;  %1565 = vmatpush.bf16.msra.mxu0 %v2192_v28  ;;  %v2199_v28 = vld [vmem:[%s3974_s7 + $0x40] sm:$0xff] }
 0x15b   :  { %4024 = vst [vmem:[#allocation22_spill] sm:$0xff] %v2979_v29 }
 0x15c   :  { %4025 = vst [vmem:[#allocation23_spill] sm:$0xff] %v2982_v37 }
 0x15d   :  { %4026 = vst [vmem:[#allocation24_spill] sm:$0xff] %v2985_v39  ;;  %1593 = vmatpush.bf16.msra.mxu1 %v2201_v57  ;;  %v2209_v57 = vld [vmem:[%s3974_s7 + $0x90] sm:$0xff] }
 0x15f   :  { %v437_v11 = vpop.f32.mrf.mxu2  ;;  %v466_v12 = vpop.f32.mrf.mxu3 }
 0x160   :  { %v3007_v15 = vadd.f32 %v437_v11, %v2941_v62  ;;  %v3010_v50 = vadd.f32 %v466_v12, %v2943_v22  ;;  %v536_v40 = vpop.f32.mrf.mxu0  ;;  %v565_v19 = vpop.f32.mrf.mxu1  ;;  %v2210_v11 = vld [vmem:[%s3974_s7 + $0x98] sm:$0xff] }
 0x161   :  { %v537_v1 = vadd.f32 %v536_v40, %v3002_v8  ;;  %v566_v4 = vadd.f32 %v565_v19, %v3004_v9  ;;  %v2218_v12 = vld [vmem:[%s3974_s7 + $0xd8] sm:$0xff]  ;;  %1621 = vmatpush.bf16.msra.mxu2 %v2210_v11  ;;  %v2217_v11 = vld [vmem:[%s3974_s7 + $0xd0] sm:$0xff] }
 0x162   :  { %4027 = vst [vmem:[#allocation25_spill] sm:$0xff] %v3007_v15  ;;  %1650 = vmatpush.bf16.msra.mxu3 %v2218_v12 }
 0x163   :  { %4028 = vst [vmem:[#allocation26_spill] sm:$0xff] %v3010_v50  ;;  %v2015_v36 = vmul.f32 -1.442695, %v537_v1  ;;  %v2016_v60 = vmul.f32 -1.442695, %v566_v4 }
 0x165   :  { %2247 = vpow2.f32 %v2015_v36  ;;  %v2200_v36 = vld [vmem:[%s3974_s7 + $0x48] sm:$0xff]  ;;  %1622 = vmatpush.bf16.msra.mxu2 %v2209_v57 }
 0x166   :  { %2249 = vpow2.f32 %v2016_v60  ;;  %1594 = vmatpush.bf16.msra.mxu1 %v2200_v36  ;;  %1651 = vmatpush.bf16.msra.mxu3 %v2217_v11  ;;  %v3070_v36 = vadd.f32 %v2872_v23, %v2927_v59  ;;  %v2208_v23 = vld [vmem:[%s3974_s7 + $0x88] sm:$0xff] }
 0x167   :  { %v594_v48 = vpop.f32.mrf.mxu2  ;;  %v623_v40 = vpop.f32.mrf.mxu3 }
 0x168   :  { %v595_v19 = vadd.f32 %v594_v48, %v3026_v54  ;;  %v624_v21 = vadd.f32 %v623_v40, %v3028_v55  ;;  %v538_v24 = vpop.f32.mrf.mxu0  ;;  %v567_v0 = vpop.f32.mrf.mxu1 }
 0x169   :  { %v539_v1 = vadd.f32 %v538_v24, %v3002_v8  ;;  %v568_v4 = vadd.f32 %v567_v0, %v3004_v9  ;;  %v2191_v0 = vld [vmem:[%s3974_s7] sm:$0xff]  ;;  %1623 = vmatpush.bf16.msra.mxu2 %v2208_v23 }
 0x16a   :  { %v2017_v60 = vmul.f32 -1.442695, %v595_v19  ;;  %v2018_v56 = vmul.f32 -1.442695, %v624_v21  ;;  %1566 = vmatpush.bf16.msra.mxu0 %v2191_v0  ;;  %1595 = vmatpush.bf16.msra.mxu1 %v2199_v28  ;;  %v3113_v28 = vadd.f32 %v2888_v33, %v2927_v59  ;;  %v2207_v33 = vld [vmem:[%s3974_s7 + $0x80] sm:$0xff] }
 0x16b   :  { %v2248_v12 = vpop.eup %2247  ;;  %v2019_v24 = vmul.f32 -1.442695, %v539_v1  ;;  %v2020_v21 = vmul.f32 -1.442695, %v568_v4  ;;  %v3075_v1 = vadd.f32 %v2874_v18, %v2929_v61  ;;  %v3079_v4 = vadd.f32 %v2876_v20, %v2941_v62  ;;  %v2216_v18 = vld [vmem:[%s3974_s7 + $0xc8] sm:$0xff] }
 0x16c   :  { %v2250_v48 = vpop.eup %2249  ;;  %v3058_v40 = vadd.f32 1.0, %v2248_v12  ;;  %2251 = vpow2.f32 %v2017_v60  ;;  %v3083_v60 = vadd.f32 %v2878_v34, %v2943_v22  ;;  %v3094_v20 = vadd.f32 %v2880_v63, %v2927_v59  ;;  %1652 = vmatpush.bf16.msra.mxu3 %v2216_v18 }
 0x16d   :  { %v3060_v19 = vadd.f32 1.0, %v2250_v48  ;;  %2253 = vpow2.f32 %v2018_v56  ;;  %1624 = vmatpush.bf16.msra.mxu2 %v2207_v33 }
 0x16e   :  { %2255 = vrcp.f32 %v3058_v40  ;;  %vm776_vm11 = vweird.f32 %v3058_v40 }
 0x16f   :  { %2257 = vrcp.f32 %v3060_v19  ;;  %v596_v56 = vpop.f32.mrf.mxu2  ;;  %v625_v57 = vpop.f32.mrf.mxu3  ;;  %v797_v50 = vand.u32 2147483648, %v3060_v19  ;;  %vm791_vm2 = vweird.f32 %v3060_v19 }
 0x170   :  { %2259 = vpow2.f32 %v2019_v24  ;;  %v597_v34 = vadd.f32 %v596_v56, %v3026_v54  ;;  %v626_v11 = vadd.f32 %v625_v57, %v3028_v55  ;;  %v541_v12 = vpop.f32.mrf.mxu0  ;;  %v570_v48 = vpop.f32.mrf.mxu1  ;;  %v3109_v24 = vadd.f32 %v2886_v32, %v2943_v22 }
 0x171   :  { %2261 = vpow2.f32 %v2020_v21  ;;  %v542_v0 = vadd.f32 %v541_v12, %v3002_v8  ;;  %v3121_v21 = vadd.f32 %v2904_v42, %v2941_v62  ;;  %v571_v32 = vadd.f32 %v570_v48, %v3004_v9 }
 0x172   :  { %v2252_v63 = vpop.eup %2251  ;;  %v2021_v31 = vmul.f32 -1.442695, %v597_v34  ;;  %v2022_v23 = vmul.f32 -1.442695, %v626_v11  ;;  %v3141_v11 = vadd.f32 %v2908_v45, %v2927_v59 }
 0x173   :  { %v2254_v56 = vpop.eup %2253  ;;  %4030 = vst [vmem:[#allocation28_spill] sm:$0xff] %v3121_v21  ;;  %v3123_v57 = vadd.f32 1.0, %v2252_v63  ;;  %v2023_v42 = vmul.f32 -1.442695, %v542_v0  ;;  %v782_v63 = vand.u32 2147483648, %v3058_v40 }
 0x174   :  { %v3129_v18 = vpop.eup %2255  ;;  %v3135_v34 = vadd.f32 1.0, %v2254_v56  ;;  %2263 = vpow2.f32 %v2021_v31  ;;  %v780_v31 = vand.u32 2147483647, %v3058_v40  ;;  %v2024_v33 = vmul.f32 -1.442695, %v571_v32 }
 0x175   :  { %v3137_v12 = vpop.eup %2257  ;;  %v772_v48 = vmul.f32 %v3129_v18, %v3058_v40  ;;  %2265 = vrcp.f32 %v3123_v57  ;;  %vm777_vm12 = vweird.f32 %v3129_v18  ;;  %vm806_vm10 = vweird.f32 %v3123_v57 }
 0x176   :  { %v2260_v43 = vpop.eup %2259  ;;  %v787_v0 = vmul.f32 %v3137_v12, %v3060_v19  ;;  %2267 = vrcp.f32 %v3135_v34  ;;  %vm3189_vm13 = vcmp.eq.f32.partialorder %v780_v31, 8.507059e+37  ;;  %vm3204_vm14 = vmor %vm776_vm11, %vm777_vm12  ;;  %vm792_vm1 = vweird.f32 %v3137_v12 }
 0x177   :  { %v2262_v59 = vpop.eup %2261  ;;  %v773_v56 = vsub.f32 1.0, %v772_v48  ;;  %v3153_v5 = vadd.f32 1.0, %v2260_v43  ;;  %2269 = vpow2.f32 %v2022_v23  ;;  %v599_v17 = vpop.f32.mrf.mxu2  ;;  %v3162_v43 = vor.u32 1.1754944e-38, %v782_v63  ;;  %vm3315_vm8 = vmor %vm791_vm2, %vm792_vm1 }
 0x178   :  { %v628_v49 = vpop.f32.mrf.mxu3  ;;  %v3155_v58 = vadd.f32 1.0, %v2262_v59  ;;  %2271 = vpow2.f32 %v2023_v42  ;;  %v600_v6 = vadd.f32 %v599_v17, %v3026_v54  ;;  %v543_v53 = vpop.f32.mrf.mxu0  ;;  %v788_v32 = vsub.f32 1.0, %v787_v0  ;;  %v2215_v0 = vld [vmem:[%s3974_s7 + $0xc0] sm:$0xff] }
 0x179   :  { %v572_v51 = vpop.f32.mrf.mxu1  ;;  %v774_v29 = vmul.f32 %v3129_v18, %v773_v56  ;;  %2273 = vrcp.f32 %v3153_v5  ;;  %v629_v48 = vadd.f32 %v628_v49, %v3028_v55  ;;  %v544_v56 = vadd.f32 %v543_v53, %v3002_v8  ;;  %1653 = vmatpush.bf16.msra.mxu3 %v2215_v0 }
 0x17a   :  { %v2264_v23 = vpop.eup %2263  ;;  %2275 = vrcp.f32 %v3155_v58  ;;  %v2025_v59 = vmul.f32 -1.442695, %v600_v6  ;;  %v573_v63 = vadd.f32 %v572_v51, %v3004_v9  ;;  %v3196_v37 = vmul.f32 %v3137_v12, %v788_v32 }
 0x17b   :  { %v3166_v17 = vpop.eup %2265  ;;  %v3168_v42 = vadd.f32 1.0, %v2264_v23  ;;  %2277 = vpow2.f32 %v2024_v33  ;;  %v2026_v45 = vmul.f32 -1.442695, %v629_v48  ;;  %v3177_v6 = vadd.f32 %v3129_v18, %v774_v29 }
 0x17c   :  { %v3171_v15 = vpop.eup %2267  ;;  %v802_v49 = vmul.f32 %v3166_v17, %v3123_v57  ;;  %2279 = vpow2.f32 %v2025_v59  ;;  %v2027_v53 = vmul.f32 -1.442695, %v544_v56  ;;  %v3185_v48 = vor.u32 1.1754944e-38, %v797_v50 }
 0x17d   :  { %v2270_v23 = vpop.eup %2269  ;;  %v817_v33 = vmul.f32 %v3171_v15, %v3135_v34  ;;  %2281 = vrcp.f32 %v3168_v42  ;;  %v2028_v51 = vmul.f32 -1.442695, %v573_v63  ;;  %v779_v40 = vsel %vm3204_vm14, %v3129_v18, %v3177_v6 }
 0x17e   :  { %v2272_v3 = vpop.eup %2271  ;;  %v803_v59 = vsub.f32 1.0, %v802_v49  ;;  %v3187_v39 = vadd.f32 1.0, %v2270_v23  ;;  %2283 = vpow2.f32 %v2026_v45  ;;  %vm836_vm15 = vweird.f32 %v3153_v5 }
 0x17f   :  { %v3193_v27 = vpop.eup %2273  ;;  %v3198_v25 = vadd.f32 1.0, %v2272_v3  ;;  %2285 = vpow2.f32 %v2027_v53  ;;  %v601_v50 = vpop.f32.mrf.mxu2  ;;  %v818_v63 = vsub.f32 1.0, %v817_v33  ;;  %v784_v35 = vsel %vm3189_vm13, %v3162_v43, %v779_v40 }
 0x180   :  { %v630_v56 = vpop.f32.mrf.mxu3  ;;  %v3209_v49 = vpop.eup %2275  ;;  %v832_v3 = vmul.f32 %v3193_v27, %v3153_v5  ;;  %2287 = vrcp.f32 %v3187_v39  ;;  %v3219_v53 = vmul.f32 %v3166_v17, %v803_v59  ;;  %v602_v33 = vadd.f32 %v601_v50, %v3026_v54 }
 0x181   :  { %v546_v32 = vpop.f32.mrf.mxu0  ;;  %v575_v0 = vpop.f32.mrf.mxu1  ;;  %v847_v45 = vmul.f32 %v3209_v49, %v3155_v58  ;;  %2289 = vrcp.f32 %v3198_v25  ;;  %v631_v14 = vadd.f32 %v630_v56, %v3028_v55  ;;  %v3234_v44 = vmul.f32 %v3171_v15, %v818_v63 }
 0x182   :  { %v2278_v23 = vpop.eup %2277  ;;  %v833_v46 = vsub.f32 1.0, %v832_v3  ;;  %2291 = vpow2.f32 %v2028_v51  ;;  %v2029_v59 = vmul.f32 -1.442695, %v602_v33  ;;  %v547_v13 = vadd.f32 %v546_v32, %v3002_v8 }
 0x183   :  { %v2280_v7 = vpop.eup %2279  ;;  %v3225_v41 = vadd.f32 1.0, %v2278_v23  ;;  %v848_v18 = vsub.f32 1.0, %v847_v45  ;;  %v2030_v63 = vmul.f32 -1.442695, %v631_v14  ;;  %v576_v23 = vadd.f32 %v575_v0, %v3004_v9 }
 0x184   :  { %v3228_v31 = vpop.eup %2281  ;;  %v3230_v6 = vadd.f32 1.0, %v2280_v7  ;;  %v834_v50 = vmul.f32 %v3193_v27, %v833_v46  ;;  %v2031_v32 = vmul.f32 -1.442695, %v547_v13  ;;  %vm851_vm3 = vweird.f32 %v3155_v58 }
 0x185   :  { %v2284_v52 = vpop.eup %2283  ;;  %v862_v51 = vmul.f32 %v3228_v31, %v3168_v42  ;;  %2293 = vrcp.f32 %v3225_v41  ;;  %v849_v56 = vmul.f32 %v3209_v49, %v848_v18  ;;  %v2032_v13 = vmul.f32 -1.442695, %v576_v23 }
 0x186   :  { %4036 = vst [vmem:[#allocation30_spill] sm:$0xff] %v3230_v6  ;;  %v2286_v7 = vpop.eup %2285  ;;  %2295 = vrcp.f32 %v3230_v6  ;;  %v3244_v45 = vadd.f32 1.0, %v2284_v52  ;;  %v835_v21 = vadd.f32 %v3193_v27, %v834_v50  ;;  %v4038_v43 = vand.u32 2147483647, %v3060_v19 }
 0x187   :  { %v3246_v3 = vpop.eup %2287  ;;  %v3249_v46 = vadd.f32 1.0, %v2286_v7  ;;  %2297 = vpow2.f32 %v2029_v59  ;;  %v863_v10 = vsub.f32 1.0, %v862_v51  ;;  %v604_v52 = vpop.f32.mrf.mxu2  ;;  %vm837_vm5 = vweird.f32 %v3193_v27 }
 0x188   :  { %4037 = vst [vmem:[#allocation31_spill] sm:$0xff] %v3244_v45  ;;  %v3252_v33 = vpop.eup %2289  ;;  %v877_v18 = vmul.f32 %v3246_v3, %v3187_v39  ;;  %2299 = vrcp.f32 %v3244_v45  ;;  %v633_v14 = vpop.f32.mrf.mxu3  ;;  %v605_v0 = vadd.f32 %v604_v52, %v3026_v54  ;;  %vm3269_vm4 = vcmp.eq.f32.partialorder %v4038_v43, 8.507059e+37  ;;  %vm3294_vm6 = vmor %vm836_vm15, %vm837_vm5 }
 0x189   :  { %v2292_v7 = vpop.eup %2291  ;;  %2301 = vrcp.f32 %v3249_v46  ;;  %v548_v59 = vpop.f32.mrf.mxu0  ;;  %v634_v6 = vadd.f32 %v633_v14, %v3028_v55  ;;  %vm852_vm9 = vweird.f32 %v3209_v49  ;;  %vm866_vm12 = vweird.f32 %v3168_v42 }
 0x18a   :  { %v577_v51 = vpop.f32.mrf.mxu1  ;;  %v878_v30 = vsub.f32 1.0, %v877_v18  ;;  %v3264_v45 = vadd.f32 1.0, %v2292_v7  ;;  %2303 = vpow2.f32 %v2030_v63  ;;  %v2033_v23 = vmul.f32 -1.442695, %v605_v0  ;;  %vm3337_vm11 = vmor %vm851_vm3, %vm852_vm9 }
 0x18b   :  { %v3273_v40 = vpop.eup %2293  ;;  %2305 = vpow2.f32 %v2031_v32  ;;  %v549_v52 = vadd.f32 %v548_v59, %v3002_v8  ;;  %v578_v50 = vadd.f32 %v577_v51, %v3004_v9  ;;  %v3280_v63 = vmul.f32 %v3228_v31, %v863_v10 }
 0x18c   :  { %v3277_v18 = vpop.eup %2295  ;;  %2307 = vrcp.f32 %v3264_v45  ;;  %v2034_v14 = vmul.f32 -1.442695, %v634_v6  ;;  %v3285_v43 = vmul.f32 %v3246_v3, %v878_v30  ;;  %v840_v0 = vand.u32 2147483647, %v3153_v5 }
 0x18d   :  { %4041 = vst [vmem:[#allocation32_spill] sm:$0xff] %v3277_v18  ;;  %v2298_v7 = vpop.eup %2297  ;;  %2309 = vpow2.f32 %v2032_v13  ;;  %v2035_v32 = vmul.f32 -1.442695, %v549_v52  ;;  %v2036_v10 = vmul.f32 -1.442695, %v578_v50  ;;  %v842_v18 = vand.u32 2147483648, %v3153_v5 }
 0x18e   :  { %v3288_v59 = vpop.eup %2299  ;;  %v3290_v51 = vadd.f32 1.0, %v2298_v7  ;;  %2311 = vpow2.f32 %v2033_v23  ;;  %v839_v13 = vsel %vm3294_vm6, %v3193_v27, %v835_v21  ;;  %vm3304_vm7 = vcmp.eq.f32.partialorder %v840_v0, 8.507059e+37 }
 0x18f   :  { %v3299_v30 = vpop.eup %2301  ;;  %2313 = vpow2.f32 %v2034_v14  ;;  %v790_v23 = vadd.f32 %v3137_v12, %v3196_v37  ;;  %v843_v7 = vor.u32 1.1754944e-38, %v842_v18  ;;  %v850_v27 = vadd.f32 %v3209_v49, %v849_v56 }
 0x190   :  { %v2304_v50 = vpop.eup %2303  ;;  %2315 = vrcp.f32 %v3290_v51  ;;  %v855_v18 = vand.u32 2147483647, %v3155_v58  ;;  %v1251_v6 = vmul.f32 %v784_v35, %v3070_v36  ;;  %vm821_vm14 = vweird.f32 %v3135_v34 }
 0x191   :  { %v2306_v21 = vpop.eup %2305  ;;  %v3321_v14 = vadd.f32 1.0, %v2304_v50  ;;  %2317 = vpow2.f32 %v2035_v32  ;;  %v794_v37 = vsel %vm3315_vm8, %v3137_v12, %v790_v23  ;;  %v844_v56 = vsel %vm3304_vm7, %v843_v7, %v839_v13  ;;  %v606_v12 = vpop.f32.mrf.mxu2 }
 0x192   :  { %v3327_v0 = vpop.eup %2307  ;;  %v3330_v19 = vadd.f32 1.0, %v2306_v21  ;;  %2319 = vpow2.f32 %v2036_v10  ;;  %v635_v23 = vpop.f32.mrf.mxu3  ;;  %v1255_v5 = vmul.f32 %v844_v56, %v3094_v20  ;;  %v799_v10 = vsel %vm3269_vm4, %v3185_v48, %v794_v37 }
 0x193   :  { %v2310_v50 = vpop.eup %2309  ;;  %2321 = vrcp.f32 %v3321_v14  ;;  %v854_v36 = vsel %vm3337_vm11, %v3209_v49, %v850_v27  ;;  %v551_v35 = vpop.f32.mrf.mxu0  ;;  %vm3353_vm13 = vcmp.eq.f32.partialorder %v855_v18, 8.507059e+37  ;;  %v857_v20 = vand.u32 2147483648, %v3155_v58 }
 0x194   :  { %v2312_v13 = vpop.eup %2311  ;;  %2323 = vrcp.f32 %v3330_v19  ;;  %v3351_v52 = vadd.f32 1.0, %v2310_v50  ;;  %v580_v29 = vpop.f32.mrf.mxu1  ;;  %v1283_v37 = vpack.c.bf16 %v1255_v5, %v1251_v6  ;;  %v607_v49 = vadd.f32 %v606_v12, %v3026_v54 }
 0x195   :  { %v2314_v48 = vpop.eup %2313  ;;  %v3358_v21 = vadd.f32 1.0, %v2312_v13  ;;  %v636_v27 = vadd.f32 %v635_v23, %v3028_v55  ;;  %v858_v32 = vor.u32 1.1754944e-38, %v857_v20  ;;  %v552_v58 = vadd.f32 %v551_v35, %v3002_v8 }
 0x196   :  { %4050 = vst [vmem:[#allocation33_spill] sm:$0xff] %v3351_v52  ;;  %v3362_v56 = vpop.eup %2315  ;;  %2325 = vrcp.f32 %v3351_v52  ;;  %v3366_v18 = vadd.f32 1.0, %v2314_v48  ;;  %1567 = vmatmul.bf16.vlgmr.msra.gmra.mxu0 %v1283_v37  ;;  %v1252_v6 = vmul.f32 %v799_v10, %v3075_v1  ;;  %v2037_v12 = vmul.f32 -1.442695, %v607_v49 }
 0x197   :  { %v2318_v50 = vpop.eup %2317  ;;  %2327 = vrcp.f32 %v3358_v21  ;;  %v581_v23 = vadd.f32 %v580_v29, %v3004_v9  ;;  %v859_v48 = vsel %vm3353_vm13, %v858_v32, %v854_v36  ;;  %v2038_v20 = vmul.f32 -1.442695, %v636_v27 }
 0x198   :  { %v2320_v5 = vpop.eup %2319  ;;  %2329 = vrcp.f32 %v3366_v18  ;;  %v3373_v13 = vadd.f32 1.0, %v2318_v50  ;;  %vm881_vm15 = vweird.f32 %v3187_v39  ;;  %v1256_v1 = vmul.f32 %v859_v48, %v3100_v38 }
 0x199   :  { %v3377_v52 = vpop.eup %2321  ;;  %v3380_v35 = vadd.f32 1.0, %v2320_v5  ;;  %2331 = vpow2.f32 %v2037_v12  ;;  %v2039_v10 = vmul.f32 -1.442695, %v552_v58  ;;  %v2040_v37 = vmul.f32 -1.442695, %v581_v23  ;;  %v609_v49 = vpop.f32.mrf.mxu2 }
 0x19a   :  { %v3383_v29 = vpop.eup %2323  ;;  %2333 = vrcp.f32 %v3373_v13  ;;  %v805_v7 = vadd.f32 %v3166_v17, %v3219_v53  ;;  %vm807_vm1 = vweird.f32 %v3166_v17  ;;  %v1284_v36 = vpack.c.bf16 %v1256_v1, %v1252_v6 }
 0x19b   :  { %2335 = vrcp.f32 %v3380_v35  ;;  %vm3392_vm2 = vmor %vm806_vm10, %vm807_vm1  ;;  %v812_v38 = vand.u32 2147483648, %v3123_v57  ;;  %v865_v27 = vadd.f32 %v3228_v31, %v3280_v63  ;;  %vm867_vm3 = vweird.f32 %v3228_v31 }
 0x19c   :  { %v3399_v32 = vpop.eup %2325  ;;  %2337 = vpow2.f32 %v2038_v20  ;;  %v809_v53 = vsel %vm3392_vm2, %v3166_v17, %v805_v7  ;;  %v870_v58 = vand.u32 2147483647, %v3168_v42  ;;  %1596 = vmatmul.bf16.vlgmr.msra.gmra.mxu1 %v1284_v36  ;;  %vm3410_vm4 = vmor %vm866_vm12, %vm867_vm3  ;;  %v872_v12 = vand.u32 2147483648, %v3168_v42 }
 0x19d   :  { %v3406_v50 = vpop.eup %2327  ;;  %2339 = vpow2.f32 %v2039_v10  ;;  %v813_v6 = vor.u32 1.1754944e-38, %v812_v38  ;;  %v820_v17 = vadd.f32 %v3171_v15, %v3234_v44  ;;  %v4057_v5 = vand.u32 2147483647, %v3123_v57 }
 0x19e   :  { %v3417_v23 = vpop.eup %2329  ;;  %2341 = vpow2.f32 %v2040_v37  ;;  %v869_v48 = vsel %vm3410_vm4, %v3228_v31, %v865_v27  ;;  %vm822_vm6 = vweird.f32 %v3171_v15  ;;  %v873_v10 = vor.u32 1.1754944e-38, %v872_v12 }
 0x19f   :  { %vm811_vm5 = vcmp.eq.f32.partialorder %v4057_v5, 8.507059e+37  ;;  %v2332_v20 = vpop.eup %2331  ;;  %vm3427_vm7 = vmor %vm821_vm14, %vm822_vm6  ;;  %v825_v44 = vand.u32 2147483647, %v3135_v34  ;;  %v827_v57 = vand.u32 2147483648, %v3135_v34  ;;  %vm871_vm8 = vcmp.eq.f32.partialorder %v870_v58, 8.507059e+37 }
 0x1a0   :  { %v814_v1 = vsel %vm811_vm5, %v813_v6, %v809_v53  ;;  %v3433_v37 = vpop.eup %2333  ;;  %v3435_v7 = vadd.f32 1.0, %v2332_v20  ;;  %v824_v31 = vsel %vm3427_vm7, %v3171_v15, %v820_v17  ;;  %v880_v36 = vadd.f32 %v3246_v3, %v3285_v43  ;;  %v553_v20 = vpop.f32.mrf.mxu0 }
 0x1a1   :  { %v3442_v38 = vpop.eup %2335  ;;  %v874_v27 = vsel %vm871_vm8, %v873_v10, %v869_v48  ;;  %v1253_v53 = vmul.f32 %v814_v1, %v3079_v4  ;;  %v828_v6 = vor.u32 1.1754944e-38, %v827_v57  ;;  %vm882_vm9 = vweird.f32 %v3246_v3  ;;  %v638_v48 = vpop.f32.mrf.mxu3 }
 0x1a2   :  { %v2338_v34 = vpop.eup %2337  ;;  %v1257_v63 = vmul.f32 %v874_v27, %v3104_v26  ;;  %vm826_vm10 = vcmp.eq.f32.partialorder %v825_v44, 8.507059e+37  ;;  %vm3449_vm11 = vmor %vm881_vm15, %vm882_vm9  ;;  %v885_v43 = vand.u32 2147483647, %v3187_v39  ;;  %v887_v58 = vand.u32 2147483648, %v3187_v39  ;;  %v582_v39 = vpop.f32.mrf.mxu1 }
 0x1a3   :  { %v2340_v12 = vpop.eup %2339  ;;  %v3455_v17 = vadd.f32 1.0, %v2338_v34  ;;  %v829_v4 = vsel %vm826_vm10, %v828_v6, %v824_v31  ;;  %v884_v5 = vsel %vm3449_vm11, %v3246_v3, %v880_v36  ;;  %v610_v26 = vadd.f32 %v609_v49, %v3026_v54 }
 0x1a4   :  { %v2342_v1 = vpop.eup %2341  ;;  %2343 = vrcp.f32 %v3435_v7  ;;  %v3462_v10 = vadd.f32 1.0, %v2340_v12  ;;  %v1285_v42 = vpack.c.bf16 %v1257_v63, %v1253_v53  ;;  %v888_v44 = vor.u32 1.1754944e-38, %v887_v58 }
 0x1a5   :  { %2345 = vrcp.f32 %v3455_v17  ;;  %v3465_v57 = vadd.f32 1.0, %v2342_v1  ;;  %vm886_vm12 = vcmp.eq.f32.partialorder %v885_v43, 8.507059e+37  ;;  %v2041_v31 = vmul.f32 -1.442695, %v610_v26 }
 0x1a6   :  { %1625 = vmatmul.bf16.vlgmr.msra.gmra.mxu2 %v1285_v42  ;;  %v889_v3 = vsel %vm886_vm12, %v888_v44, %v884_v5  ;;  %v1254_v36 = vmul.f32 %v829_v4, %v3083_v60  ;;  %v639_v49 = vadd.f32 %v638_v48, %v3028_v55  ;;  %v554_v27 = vadd.f32 %v553_v20, %v3002_v8 }
 0x1a7   :  { %2347 = vrcp.f32 %v3462_v10  ;;  %v1258_v53 = vmul.f32 %v889_v3, %v3109_v24  ;;  %v583_v6 = vadd.f32 %v582_v39, %v3004_v9  ;;  %v892_v34 = vmul.f32 %v3252_v33, %v3198_v25 }
 0x1a8   :  { %v3477_v63 = vadd.f32 %v2910_v47, %v2929_v61  ;;  %2349 = vpow2.f32 %v2041_v31  ;;  %v2042_v15 = vmul.f32 -1.442695, %v639_v49  ;;  %v2043_v60 = vmul.f32 -1.442695, %v554_v27 }
 0x1a9   :  { %2351 = vrcp.f32 %v3465_v57  ;;  %v1286_v43 = vpack.c.bf16 %v1258_v53, %v1254_v36  ;;  %v2044_v8 = vmul.f32 -1.442695, %v583_v6  ;;  %v893_v58 = vsub.f32 1.0, %v892_v34 }
 0x1aa   :  { %v3480_v12 = vpop.eup %2343  ;;  %v3484_v9 = vadd.f32 %v2931_v2, %v2941_v62  ;;  %2353 = vpow2.f32 %v2042_v15  ;;  %v902_v24 = vand.u32 2147483648, %v3198_v25  ;;  %v952_v47 = vmul.f32 %v3299_v30, %v3249_v46 }
 0x1ab   :  { %v3489_v61 = vpop.eup %2345  ;;  %1654 = vmatmul.bf16.vlgmr.msra.gmra.mxu3 %v1286_v43  ;;  %2355 = vpow2.f32 %v2043_v60  ;;  %v894_v4 = vmul.f32 %v3252_v33, %v893_v58  ;;  %vm897_vm13 = vweird.f32 %v3252_v33  ;;  %v900_v5 = vand.u32 2147483647, %v3198_v25 }
 0x1ac   :  { %v3496_v2 = vadd.f32 %v2933_v16, %v2943_v22  ;;  %2357 = vpow2.f32 %v2044_v8  ;;  %vm896_vm14 = vweird.f32 %v3198_v25  ;;  %v953_v62 = vsub.f32 1.0, %v952_v47 }
 0x1ad   :  { %v3499_v26 = vpop.eup %2347  ;;  %v895_v48 = vadd.f32 %v3252_v33, %v894_v4  ;;  %v960_v20 = vand.u32 2147483647, %v3249_v46  ;;  %v962_v1 = vand.u32 2147483648, %v3249_v46  ;;  %v907_v42 = vmul.f32 %v3273_v40, %v3225_v41  ;;  %vm898_vm15 = vmor %vm896_vm14, %vm897_vm13 }
 0x1ae   :  { %v2350_v44 = vpop.eup %2349  ;;  %v903_v39 = vor.u32 1.1754944e-38, %v902_v24  ;;  %v954_v16 = vmul.f32 %v3299_v30, %v953_v62  ;;  %vm957_vm1 = vweird.f32 %v3299_v30  ;;  %v915_v22 = vand.u32 2147483647, %v3225_v41 }
 0x1af   :  { %v3509_v25 = vpop.eup %2351  ;;  %v3511_v31 = vadd.f32 1.0, %v2350_v44  ;;  %v899_v3 = vsel %vm898_vm15, %v3252_v33, %v895_v48  ;;  %vm901_vm2 = vcmp.eq.f32.partialorder %v900_v5, 8.507059e+37  ;;  %vm956_vm3 = vweird.f32 %v3249_v46  ;;  %v611_v48 = vpop.f32.mrf.mxu2 }
 0x1b0   :  { %v2354_v36 = vpop.eup %2353  ;;  %v904_v49 = vsel %vm901_vm2, %v903_v39, %v899_v3  ;;  %v955_v27 = vadd.f32 %v3299_v30, %v954_v16  ;;  %v908_v53 = vsub.f32 1.0, %v907_v42  ;;  %vm911_vm4 = vweird.f32 %v3225_v41  ;;  %vm958_vm5 = vmor %vm956_vm3, %vm957_vm1 }
 0x1b1   :  { %v2356_v6 = vpop.eup %2355  ;;  %vm961_vm6 = vcmp.eq.f32.partialorder %v960_v20, 8.507059e+37  ;;  %v963_v34 = vor.u32 1.1754944e-38, %v962_v1  ;;  %vm912_vm7 = vweird.f32 %v3273_v40  ;;  %v917_v15 = vand.u32 2147483648, %v3225_v41  ;;  %v640_v20 = vpop.f32.mrf.mxu3 }
 0x1b2   :  { %v2358_v60 = vpop.eup %2357  ;;  %v959_v33 = vsel %vm958_vm5, %v3299_v30, %v955_v27  ;;  %v909_v46 = vmul.f32 %v3273_v40, %v908_v53  ;;  %vm3521_vm8 = vcmp.eq.f32.partialorder %v915_v22, 8.507059e+37  ;;  %v967_v8 = vmul.f32 %v3327_v0, %v3264_v45  ;;  %vm913_vm9 = vmor %vm911_vm4, %vm912_vm7 }
 0x1b3   :  { %2359 = vrcp.f32 %v3511_v31  ;;  %v3528_v58 = vadd.f32 1.0, %v2354_v36  ;;  %v964_v24 = vsel %vm961_vm6, %v963_v34, %v959_v33  ;;  %v1259_v47 = vmul.f32 %v904_v49, %v3113_v28  ;;  %v4065_v49 = vld [vmem:[#allocation32_spill] sm:$0xff] }
 0x1b4   :  { %v3531_v4 = vadd.f32 1.0, %v2356_v6  ;;  %v1263_v30 = vmul.f32 %v964_v24, %v3141_v11  ;;  %v910_v5 = vadd.f32 %v3273_v40, %v909_v46  ;;  %v968_v62 = vsub.f32 1.0, %v967_v8 }
 0x1b5   :  { %v3535_v1 = vadd.f32 1.0, %v2358_v60  ;;  %v918_v42 = vor.u32 1.1754944e-38, %v917_v15  ;;  %vm972_vm10 = vweird.f32 %v3327_v0  ;;  %v975_v28 = vand.u32 2147483647, %v3264_v45  ;;  %v4066_v15 = vld [vmem:[#allocation27_spill] sm:$0xff] }
 0x1b6   :  { %v1287_v44 = vpack.c.bf16 %v1263_v30, %v1259_v47  ;;  %v914_v11 = vsel %vm913_vm9, %v3273_v40, %v910_v5  ;;  %v969_v39 = vmul.f32 %v3327_v0, %v968_v62  ;;  %v977_v16 = vand.u32 2147483648, %v3264_v45  ;;  %v4064_v40 = vld [vmem:[#allocation30_spill] sm:$0xff] }
 0x1b7   :  { %2361 = vrcp.f32 %v3528_v58  ;;  %v919_v22 = vsel %vm3521_vm8, %v918_v42, %v914_v11  ;;  %v612_v41 = vadd.f32 %v611_v48, %v3026_v54  ;;  %v641_v3 = vadd.f32 %v640_v20, %v3028_v55  ;;  %v4067_v42 = vld [vmem:[#allocation31_spill] sm:$0xff] }
 0x1b8   :  { %2363 = vrcp.f32 %v3531_v4  ;;  %1572 = vmatmul.bf16.gmra.mxu0 %v1287_v44  ;;  %v970_v36 = vadd.f32 %v3327_v0, %v969_v39  ;;  %vm971_vm11 = vweird.f32 %v3264_v45  ;;  %v922_v27 = vmul.f32 %v4065_v49, %v4064_v40 }
 0x1b9   :  { %v3556_v53 = vpop.eup %2359  ;;  %2365 = vrcp.f32 %v3535_v1  ;;  %vm973_vm12 = vmor %vm971_vm11, %vm972_vm10  ;;  %v978_v54 = vor.u32 1.1754944e-38, %v977_v16  ;;  %v2045_v6 = vmul.f32 -1.442695, %v612_v41  ;;  %v2046_v55 = vmul.f32 -1.442695, %v641_v3 }
 0x1ba   :  { %v974_v34 = vsel %vm973_vm12, %v3327_v0, %v970_v36  ;;  %vm976_vm13 = vcmp.eq.f32.partialorder %v975_v28, 8.507059e+37  ;;  %v1260_v60 = vmul.f32 %v919_v22, %v4066_v15  ;;  %v923_v33 = vsub.f32 1.0, %v922_v27 }
 0x1bb   :  { %v979_v45 = vsel %vm976_vm13, %v978_v54, %v974_v34  ;;  %2367 = vpow2.f32 %v2045_v6  ;;  %v932_v46 = vand.u32 2147483648, %v4064_v40  ;;  %v982_v43 = vmul.f32 %v3362_v56, %v3290_v51 }
 0x1bc   :  { %v1264_v8 = vmul.f32 %v979_v45, %v3477_v63  ;;  %v924_v24 = vmul.f32 %v4065_v49, %v923_v33  ;;  %vm927_vm14 = vweird.f32 %v4065_v49  ;;  %v930_v47 = vand.u32 2147483647, %v4064_v40  ;;  %v4068_v33 = vld [vmem:[#allocation28_spill] sm:$0xff] }
 0x1bd   :  { %v3570_v0 = vpop.eup %2361  ;;  %2369 = vpow2.f32 %v2046_v55  ;;  %vm926_vm15 = vweird.f32 %v4064_v40  ;;  %v983_v30 = vsub.f32 1.0, %v982_v43  ;;  %v990_v5 = vand.u32 2147483647, %v3290_v51 }
 0x1be   :  { %v3574_v62 = vpop.eup %2363  ;;  %v1288_v48 = vpack.c.bf16 %v1264_v8, %v1260_v60  ;;  %v925_v20 = vadd.f32 %v4065_v49, %v924_v24  ;;  %v992_v63 = vand.u32 2147483648, %v3290_v51  ;;  %v937_v28 = vmul.f32 %v3288_v59, %v4067_v42  ;;  %vm928_vm1 = vmor %vm926_vm15, %vm927_vm14 }
 0x1bf   :  { %v3580_v44 = vpop.eup %2365  ;;  %v933_v11 = vor.u32 1.1754944e-38, %v932_v46  ;;  %v984_v39 = vmul.f32 %v3362_v56, %v983_v30  ;;  %vm986_vm2 = vweird.f32 %v3290_v51  ;;  %vm987_vm3 = vweird.f32 %v3362_v56 }
 0x1c0   :  { %1601 = vmatmul.bf16.gmra.mxu1 %v1288_v48  ;;  %v929_v16 = vsel %vm928_vm1, %v4065_v49, %v925_v20  ;;  %vm931_vm4 = vcmp.eq.f32.partialorder %v930_v47, 8.507059e+37  ;;  %v938_v22 = vsub.f32 1.0, %v937_v28  ;;  %v945_v41 = vand.u32 2147483647, %v4067_v42  ;;  %vm988_vm5 = vmor %vm986_vm2, %vm987_vm3 }
 0x1c1   :  { %v2368_v3 = vpop.eup %2367  ;;  %v934_v36 = vsel %vm931_vm4, %v933_v11, %v929_v16  ;;  %v985_v40 = vadd.f32 %v3362_v56, %v984_v39  ;;  %v947_v27 = vand.u32 2147483648, %v4067_v42  ;;  %v997_v54 = vmul.f32 %v3377_v52, %v3321_v14 }
 0x1c2   :  { %vm991_vm6 = vcmp.eq.f32.partialorder %v990_v5, 8.507059e+37  ;;  %v993_v51 = vor.u32 1.1754944e-38, %v992_v63  ;;  %v939_v6 = vmul.f32 %v3288_v59, %v938_v22  ;;  %vm942_vm7 = vweird.f32 %v3288_v59 }
 0x1c3   :  { %v2370_v49 = vpop.eup %2369  ;;  %v3593_v55 = vadd.f32 1.0, %v2368_v3  ;;  %v989_v34 = vsel %vm988_vm5, %v3362_v56, %v985_v40  ;;  %vm941_vm8 = vweird.f32 %v4067_v42  ;;  %v998_v15 = vsub.f32 1.0, %v997_v54 }
 0x1c4   :  { %v994_v60 = vsel %vm991_vm6, %v993_v51, %v989_v34  ;;  %v1261_v45 = vmul.f32 %v934_v36, %v4068_v33  ;;  %v940_v46 = vadd.f32 %v3288_v59, %v939_v6  ;;  %vm946_vm9 = vcmp.eq.f32.partialorder %v945_v41, 8.507059e+37  ;;  %vm943_vm10 = vmor %vm941_vm8, %vm942_vm7  ;;  %v4069_v41 = vld [vmem:[#allocation29_spill] sm:$0xff] }
 0x1c5   :  { %v1265_v43 = vmul.f32 %v994_v60, %v3484_v9  ;;  %v948_v8 = vor.u32 1.1754944e-38, %v947_v27  ;;  %v999_v24 = vmul.f32 %v3377_v52, %v998_v15  ;;  %vm1002_vm11 = vweird.f32 %v3377_v52 }
 0x1c6   :  { %v944_v47 = vsel %vm943_vm10, %v3288_v59, %v940_v46  ;;  %v1005_v56 = vand.u32 2147483647, %v3321_v14  ;;  %v1007_v30 = vand.u32 2147483648, %v3321_v14  ;;  %v1012_v5 = vmul.f32 %v3383_v29, %v3330_v19 }
 0x1c7   :  { %v3607_v48 = vadd.f32 1.0, %v2370_v49  ;;  %v1289_v20 = vpack.c.bf16 %v1265_v43, %v1261_v45  ;;  %v1000_v9 = vadd.f32 %v3377_v52, %v999_v24  ;;  %vm1001_vm12 = vweird.f32 %v3321_v14  ;;  %v4070_v49 = vld [vmem:[#allocation33_spill] sm:$0xff]  ;;  %v4071_v24 = vld [vmem:[#allocation11_spill] sm:$0xff] }
 0x1c8   :  { %2371 = vrcp.f32 %v3593_v55  ;;  %v949_v63 = vsel %vm946_vm9, %v948_v8, %v944_v47  ;;  %vm1003_vm13 = vmor %vm1001_vm12, %vm1002_vm11  ;;  %v1008_v42 = vor.u32 1.1754944e-38, %v1007_v30  ;;  %v1013_v59 = vsub.f32 1.0, %v1012_v5 }
 0x1c9   :  { %1630 = vmatmul.bf16.gmra.mxu2 %v1289_v20  ;;  %v1004_v28 = vsel %vm1003_vm13, %v3377_v52, %v1000_v9  ;;  %vm1006_vm14 = vcmp.eq.f32.partialorder %v1005_v56, 8.507059e+37  ;;  %vm1017_vm15 = vweird.f32 %v3383_v29  ;;  %v1022_v11 = vand.u32 2147483648, %v3330_v19 }
 0x1ca   :  { %v1009_v39 = vsel %vm1006_vm14, %v1008_v42, %v1004_v28  ;;  %v1014_v16 = vmul.f32 %v3383_v29, %v1013_v59  ;;  %v1020_v22 = vand.u32 2147483647, %v3330_v19  ;;  %v1072_v14 = vmul.f32 %v3433_v37, %v3373_v13  ;;  %v4072_v28 = vld [vmem:[#allocation15_spill] sm:$0xff] }
 0x1cb   :  { %2373 = vrcp.f32 %v3607_v48  ;;  %v1262_v3 = vmul.f32 %v949_v63, %v4069_v41  ;;  %v1266_v36 = vmul.f32 %v1009_v39, %v3496_v2  ;;  %vm1016_vm1 = vweird.f32 %v3330_v19 }
 0x1cc   :  { %v1015_v52 = vadd.f32 %v3383_v29, %v1014_v16  ;;  %v1073_v40 = vsub.f32 1.0, %v1072_v14  ;;  %vm1076_vm2 = vweird.f32 %v3373_v13  ;;  %v1080_v27 = vand.u32 2147483647, %v3373_v13  ;;  %vm1018_vm3 = vmor %vm1016_vm1, %vm1017_vm15 }
 0x1cd   :  { %v1290_v54 = vpack.c.bf16 %v1266_v36, %v1262_v3  ;;  %v1023_v51 = vor.u32 1.1754944e-38, %v1022_v11  ;;  %v1082_v6 = vand.u32 2147483648, %v3373_v13  ;;  %v1027_v34 = vmul.f32 %v3399_v32, %v4070_v49 }
 0x1ce   :  { %v3631_v2 = vpop.eup %2371  ;;  %v1019_v19 = vsel %vm1018_vm3, %v3383_v29, %v1015_v52  ;;  %vm1021_vm4 = vcmp.eq.f32.partialorder %v1020_v22, 8.507059e+37  ;;  %v1074_v15 = vmul.f32 %v3433_v37, %v1073_v40  ;;  %vm1077_vm5 = vweird.f32 %v3433_v37 }
 0x1cf   :  { %1659 = vmatmul.bf16.gmra.mxu3 %v1290_v54  ;;  %v1024_v60 = vsel %vm1021_vm4, %v1023_v51, %v1019_v19  ;;  %v1028_v33 = vsub.f32 1.0, %v1027_v34  ;;  %vm1031_vm6 = vweird.f32 %v4070_v49  ;;  %v1037_v45 = vand.u32 2147483648, %v4070_v49  ;;  %vm1078_vm9 = vmor %vm1076_vm2, %vm1077_vm5  ;;  %v4073_v51 = vld [vmem:[#allocation12_spill] sm:$0xff] }
 0x1d0   :  { %v1075_v46 = vadd.f32 %v3433_v37, %v1074_v15  ;;  %vm1081_vm7 = vcmp.eq.f32.partialorder %v1080_v27, 8.507059e+37  ;;  %vm1032_vm8 = vweird.f32 %v3399_v32  ;;  %v1087_v29 = vmul.f32 %v3442_v38, %v3380_v35  ;;  %v4074_v19 = vld [vmem:[#allocation16_spill] sm:$0xff] }
 0x1d1   :  { %v3642_v43 = vpop.eup %2373  ;;  %v1083_v8 = vor.u32 1.1754944e-38, %v1082_v6  ;;  %v1267_v47 = vmul.f32 %v1024_v60, %v4071_v24  ;;  %v1029_v56 = vmul.f32 %v3399_v32, %v1028_v33  ;;  %v1035_v30 = vand.u32 2147483647, %v4070_v49  ;;  %vm1033_vm11 = vmor %vm1031_vm6, %vm1032_vm8 }
 0x1d2   :  { %v1079_v5 = vsel %vm1078_vm9, %v3433_v37, %v1075_v46  ;;  %v1038_v20 = vor.u32 1.1754944e-38, %v1037_v45  ;;  %v1088_v9 = vsub.f32 1.0, %v1087_v29  ;;  %vm1091_vm10 = vweird.f32 %v3380_v35 }
 0x1d3   :  { %v1084_v63 = vsel %vm1081_vm7, %v1083_v8, %v1079_v5  ;;  %v1030_v42 = vadd.f32 %v3399_v32, %v1029_v56  ;;  %v1097_v59 = vand.u32 2147483648, %v3380_v35  ;;  %v1042_v13 = vmul.f32 %v3406_v50, %v3358_v21 }
 0x1d4   :  { %v1271_v11 = vmul.f32 %v1084_v63, %v4072_v28  ;;  %v1089_v37 = vmul.f32 %v3442_v38, %v1088_v9  ;;  %vm1092_vm12 = vweird.f32 %v3442_v38  ;;  %v1095_v39 = vand.u32 2147483647, %v3380_v35  ;;  %v4075_v9 = vld [vmem:[#allocation13_spill] sm:$0xff] }
 0x1d5   :  { %v1034_v16 = vsel %vm1033_vm11, %v3399_v32, %v1030_v42  ;;  %vm1036_vm13 = vcmp.eq.f32.partialorder %v1035_v30, 8.507059e+37  ;;  %v1043_v22 = vsub.f32 1.0, %v1042_v13  ;;  %v1050_v14 = vand.u32 2147483647, %v3358_v21  ;;  %vm1093_vm14 = vmor %vm1091_vm10, %vm1092_vm12 }
 0x1d6   :  { %v1291_v41 = vpack.c.bf16 %v1271_v11, %v1267_v47  ;;  %v1039_v3 = vsel %vm1036_vm13, %v1038_v20, %v1034_v16  ;;  %v1090_v36 = vadd.f32 %v3442_v38, %v1089_v37  ;;  %v1052_v52 = vand.u32 2147483648, %v3358_v21  ;;  %v4076_v11 = vld [vmem:[#allocation17_spill] sm:$0xff] }
 0x1d7   :  { %v1098_v40 = vor.u32 1.1754944e-38, %v1097_v59  ;;  %v1044_v27 = vmul.f32 %v3406_v50, %v1043_v22  ;;  %vm1047_vm15 = vweird.f32 %v3406_v50  ;;  %v1102_v32 = vmul.f32 %v3480_v12, %v3435_v7 }
 0x1d8   :  { %1577 = vmatmul.bf16.gmra.mxu0 %v1291_v41  ;;  %v1094_v54 = vsel %vm1093_vm14, %v3442_v38, %v1090_v36  ;;  %vm1096_vm1 = vcmp.eq.f32.partialorder %v1095_v39, 8.507059e+37  ;;  %v1268_v6 = vmul.f32 %v1039_v3, %v4073_v51  ;;  %vm1046_vm2 = vweird.f32 %v3358_v21 }
 0x1d9   :  { %v1099_v49 = vsel %vm1096_vm1, %v1098_v40, %v1094_v54  ;;  %v1045_v35 = vadd.f32 %v3406_v50, %v1044_v27  ;;  %vm1051_vm3 = vcmp.eq.f32.partialorder %v1050_v14, 8.507059e+37  ;;  %v1103_v34 = vsub.f32 1.0, %v1102_v32  ;;  %vm1048_vm4 = vmor %vm1046_vm2, %vm1047_vm15 }
 0x1da   :  { %v1272_v15 = vmul.f32 %v1099_v49, %v4074_v19  ;;  %v1053_v60 = vor.u32 1.1754944e-38, %v1052_v52  ;;  %v1112_v33 = vand.u32 2147483648, %v3435_v7  ;;  %v1057_v45 = vmul.f32 %v3417_v23, %v3366_v18 }
 0x1db   :  { %v1049_v38 = vsel %vm1048_vm4, %v3406_v50, %v1045_v35  ;;  %v1104_v46 = vmul.f32 %v3480_v12, %v1103_v34  ;;  %vm1107_vm5 = vweird.f32 %v3480_v12  ;;  %v1110_v21 = vand.u32 2147483647, %v3435_v7 }
 0x1dc   :  { %v1292_v29 = vpack.c.bf16 %v1272_v15, %v1268_v6  ;;  %v1054_v8 = vsel %vm1051_vm3, %v1053_v60, %v1049_v38  ;;  %vm1106_vm6 = vweird.f32 %v3435_v7  ;;  %v1058_v24 = vsub.f32 1.0, %v1057_v45  ;;  %v4079_v6 = vld [vmem:[#allocation14_spill] sm:$0xff] }
 0x1dd   :  { %v1105_v47 = vadd.f32 %v3480_v12, %v1104_v46  ;;  %vm1061_vm7 = vweird.f32 %v3366_v18  ;;  %vm1062_vm8 = vweird.f32 %v3417_v23  ;;  %v1067_v56 = vand.u32 2147483648, %v3366_v18  ;;  %vm1108_vm9 = vmor %vm1106_vm6, %vm1107_vm5  ;;  %v4080_v60 = vld [vmem:[#allocation18_spill] sm:$0xff] }
 0x1de   :  { %1606 = vmatmul.bf16.gmra.mxu1 %v1292_v29  ;;  %v1113_v50 = vor.u32 1.1754944e-38, %v1112_v33  ;;  %v1059_v30 = vmul.f32 %v3417_v23, %v1058_v24  ;;  %v1065_v5 = vand.u32 2147483647, %v3366_v18  ;;  %v1117_v20 = vmul.f32 %v3489_v61, %v3455_v17  ;;  %vm1063_vm12 = vmor %vm1061_vm7, %vm1062_vm8 }
 0x1df   :  { %v1109_v7 = vsel %vm1108_vm9, %v3480_v12, %v1105_v47  ;;  %vm1111_vm10 = vcmp.eq.f32.partialorder %v1110_v21, 8.507059e+37  ;;  %v1269_v63 = vmul.f32 %v1054_v8, %v4075_v9  ;;  %v1125_v42 = vand.u32 2147483647, %v3455_v17 }
 0x1e0   :  { %v1114_v59 = vsel %vm1111_vm10, %v1113_v50, %v1109_v7  ;;  %v1060_v13 = vadd.f32 %v3417_v23, %v1059_v30  ;;  %v1118_v28 = vsub.f32 1.0, %v1117_v20  ;;  %vm1121_vm11 = vweird.f32 %v3455_v17 }
 0x1e1   :  { %v1273_v37 = vmul.f32 %v1114_v59, %v4076_v11  ;;  %v1068_v39 = vor.u32 1.1754944e-38, %v1067_v56  ;;  %v1127_v12 = vand.u32 2147483648, %v3455_v17  ;;  %v1132_v16 = vmul.f32 %v3499_v26, %v3462_v10 }
 0x1e2   :  { %v1064_v22 = vsel %vm1063_vm12, %v3417_v23, %v1060_v13  ;;  %vm1066_vm13 = vcmp.eq.f32.partialorder %v1065_v5, 8.507059e+37  ;;  %v1119_v14 = vmul.f32 %v3489_v61, %v1118_v28  ;;  %vm1122_vm14 = vweird.f32 %v3489_v61  ;;  %v4081_v5 = vld [vmem:[#allocation19_spill] sm:$0xff] }
 0x1e3   :  { %v1293_v41 = vpack.c.bf16 %v1273_v37, %v1269_v63  ;;  %v1069_v3 = vsel %vm1066_vm13, %v1068_v39, %v1064_v22  ;;  %vm3710_vm15 = vcmp.eq.f32.partialorder %v1125_v42, 8.507059e+37  ;;  %v1133_v18 = vsub.f32 1.0, %v1132_v16  ;;  %vm1123_vm2 = vmor %vm1121_vm11, %vm1122_vm14  ;;  %v4082_v63 = vld [vmem:[#allocation23_spill] sm:$0xff] }
 0x1e4   :  { %v1120_v52 = vadd.f32 %v3489_v61, %v1119_v14  ;;  %vm1136_vm1 = vweird.f32 %v3462_v10  ;;  %v1142_v40 = vand.u32 2147483648, %v3462_v10  ;;  %v1192_v23 = vmul.f32 %v3574_v62, %v3531_v4 }
 0x1e5   :  { %1635 = vmatmul.bf16.gmra.mxu2 %v1293_v41  ;;  %v1128_v27 = vor.u32 1.1754944e-38, %v1127_v12  ;;  %v1134_v32 = vmul.f32 %v3499_v26, %v1133_v18  ;;  %vm1137_vm3 = vweird.f32 %v3499_v26  ;;  %v1140_v54 = vand.u32 2147483647, %v3462_v10  ;;  %v4083_v18 = vld [vmem:[#allocation20_spill] sm:$0xff] }
 0x1e6   :  { %v1124_v51 = vsel %vm1123_vm2, %v3489_v61, %v1120_v52  ;;  %v1270_v49 = vmul.f32 %v1069_v3, %v4079_v6  ;;  %v1193_v35 = vsub.f32 1.0, %v1192_v23  ;;  %vm1197_vm4 = vweird.f32 %v3574_v62  ;;  %vm1138_vm5 = vmor %vm1136_vm1, %vm1137_vm3 }
 0x1e7   :  { %v1129_v34 = vsel %vm3710_vm15, %v1128_v27, %v1124_v51  ;;  %v1135_v17 = vadd.f32 %v3499_v26, %v1134_v32  ;;  %v1202_v19 = vand.u32 2147483648, %v3531_v4  ;;  %v1147_v15 = vmul.f32 %v3509_v25, %v3465_v57  ;;  %v4084_v27 = vld [vmem:[#allocation24_spill] sm:$0xff] }
 0x1e8   :  { %v1274_v33 = vmul.f32 %v1129_v34, %v4080_v60  ;;  %v1143_v61 = vor.u32 1.1754944e-38, %v1142_v40  ;;  %v1194_v45 = vmul.f32 %v3574_v62, %v1193_v35  ;;  %v1200_v38 = vand.u32 2147483647, %v3531_v4 }
 0x1e9   :  { %v1139_v46 = vsel %vm1138_vm5, %v3499_v26, %v1135_v17  ;;  %vm1141_vm6 = vcmp.eq.f32.partialorder %v1140_v54, 8.507059e+37  ;;  %vm1196_vm7 = vweird.f32 %v3531_v4  ;;  %v1148_v21 = vsub.f32 1.0, %v1147_v15 }
 0x1ea   :  { %v1294_v29 = vpack.c.bf16 %v1274_v33, %v1270_v49  ;;  %v1144_v8 = vsel %vm1141_vm6, %v1143_v61, %v1139_v46  ;;  %v1195_v24 = vadd.f32 %v3574_v62, %v1194_v45  ;;  %v1203_v47 = vor.u32 1.1754944e-38, %v1202_v19  ;;  %vm1198_vm8 = vmor %vm1196_vm7, %vm1197_vm4  ;;  %v4085_v46 = vld [vmem:[#allocation21_spill] sm:$0xff] }
 0x1eb   :  { %v1149_v10 = vmul.f32 %v3509_v25, %v1148_v21  ;;  %vm1152_vm9 = vweird.f32 %v3509_v25  ;;  %v1157_v56 = vand.u32 2147483648, %v3465_v57  ;;  %v1207_v26 = vmul.f32 %v3580_v44, %v3535_v1 }
 0x1ec   :  { %1664 = vmatmul.bf16.gmra.mxu3 %v1294_v29  ;;  %v1199_v4 = vsel %vm1198_vm8, %v3574_v62, %v1195_v24  ;;  %vm1201_vm10 = vcmp.eq.f32.partialorder %v1200_v38, 8.507059e+37  ;;  %vm1151_vm11 = vweird.f32 %v3465_v57  ;;  %v1155_v50 = vand.u32 2147483647, %v3465_v57  ;;  %v4086_v24 = vld [vmem:[#allocation25_spill] sm:$0xff] }
 0x1ed   :  { %v1204_v30 = vsel %vm1201_vm10, %v1203_v47, %v1199_v4  ;;  %v1275_v20 = vmul.f32 %v1144_v8, %v4081_v5  ;;  %v1150_v7 = vadd.f32 %v3509_v25, %v1149_v10  ;;  %v1208_v9 = vsub.f32 1.0, %v1207_v26  ;;  %vm1153_vm12 = vmor %vm1151_vm11, %vm1152_vm9 }
 0x1ee   :  { %v1279_v42 = vmul.f32 %v1204_v30, %v4082_v63  ;;  %vm1212_vm13 = vweird.f32 %v3580_v44  ;;  %v1217_v59 = vand.u32 2147483648, %v3535_v1  ;;  %v1162_v62 = vmul.f32 %v3556_v53, %v3511_v31  ;;  %v4088_v63 = vld [vmem:[#allocation26_spill] sm:$0xff] }
 0x1ef   :  { %v1154_v13 = vsel %vm1153_vm12, %v3509_v25, %v1150_v7  ;;  %v1158_v28 = vor.u32 1.1754944e-38, %v1157_v56  ;;  %v1209_v57 = vmul.f32 %v3580_v44, %v1208_v9  ;;  %v1215_v11 = vand.u32 2147483647, %v3535_v1  ;;  %v4087_v7 = vld [vmem:[#allocation22_spill] sm:$0xff] }
 0x1f0   :  { %v1295_v37 = vpack.c.bf16 %v1279_v42, %v1275_v20  ;;  %vm1156_vm14 = vcmp.eq.f32.partialorder %v1155_v50, 8.507059e+37  ;;  %vm1211_vm15 = vweird.f32 %v3535_v1  ;;  %v1163_v16 = vsub.f32 1.0, %v1162_v62  ;;  %v3813_v62 = vld [vmem:[%s3977_s8] ss:$0 sm:$0xff] }
 0x1f1   :  { %v1159_v39 = vsel %vm1156_vm14, %v1158_v28, %v1154_v13  ;;  %v1210_v12 = vadd.f32 %v3580_v44, %v1209_v57  ;;  %vm1166_vm1 = vweird.f32 %v3511_v31  ;;  %vm1213_vm2 = vmor %vm1211_vm15, %vm1212_vm13  ;;  %v1218_v25 = vor.u32 1.1754944e-38, %v1217_v59 }
 0x1f2   :  { %1582 = vmatmul.bf16.gmra.mxu0 %v1295_v37  ;;  %vm1167_vm3 = vweird.f32 %v3556_v53  ;;  %v1172_v22 = vand.u32 2147483648, %v3511_v31  ;;  %v1222_v14 = vmul.f32 %v3631_v2, %v3593_v55  ;;  %vm1216_vm4 = vcmp.eq.f32.partialorder %v1215_v11, 8.507059e+37 }
 0x1f3   :  { %v1214_v1 = vsel %vm1213_vm2, %v3580_v44, %v1210_v12  ;;  %v1164_v41 = vmul.f32 %v3556_v53, %v1163_v16  ;;  %v1170_v3 = vand.u32 2147483647, %v3511_v31  ;;  %v1276_v52 = vmul.f32 %v1159_v39, %v4083_v18  ;;  %vm1168_vm5 = vmor %vm1166_vm1, %vm1167_vm3 }
 0x1f4   :  { %v1219_v36 = vsel %vm1216_vm4, %v1218_v25, %v1214_v1  ;;  %v1223_v40 = vsub.f32 1.0, %v1222_v14  ;;  %v1230_v23 = vand.u32 2147483647, %v3593_v55  ;;  %v1232_v51 = vand.u32 2147483648, %v3593_v55 }
 0x1f5   :  { %v1280_v32 = vmul.f32 %v1219_v36, %v4084_v27  ;;  %v1165_v54 = vadd.f32 %v3556_v53, %v1164_v41  ;;  %v1177_v44 = vmul.f32 %v3570_v0, %v3528_v58  ;;  %v1173_v6 = vor.u32 1.1754944e-38, %v1172_v22  ;;  %v4089_v22 = vld [vmem:[#allocation3_spill] sm:$0xff] }
 0x1f6   :  { %v1224_v49 = vmul.f32 %v3631_v2, %v1223_v40  ;;  %vm1226_vm6 = vweird.f32 %v3593_v55  ;;  %vm1227_vm7 = vweird.f32 %v3631_v2  ;;  %vm1171_vm8 = vcmp.eq.f32.partialorder %v1170_v3, 8.507059e+37 }
 0x1f7   :  { %v1296_v35 = vpack.c.bf16 %v1280_v32, %v1276_v52  ;;  %v1169_v34 = vsel %vm1168_vm5, %v3556_v53, %v1165_v54  ;;  %v1178_v17 = vsub.f32 1.0, %v1177_v44  ;;  %vm1231_vm9 = vcmp.eq.f32.partialorder %v1230_v23, 8.507059e+37  ;;  %vm1228_vm10 = vmor %vm1226_vm6, %vm1227_vm7  ;;  %v4090_v23 = vld [vmem:[#allocation4_spill] sm:$0xff] }
 0x1f8   :  { %v1174_v19 = vsel %vm1171_vm8, %v1173_v6, %v1169_v34  ;;  %v1225_v15 = vadd.f32 %v3631_v2, %v1224_v49  ;;  %v1237_v31 = vmul.f32 %v3642_v43, %v3607_v48  ;;  %v1233_v60 = vor.u32 1.1754944e-38, %v1232_v51 }
 0x1f9   :  { %1611 = vmatmul.bf16.gmra.mxu1 %v1296_v35  ;;  %v1179_v33 = vmul.f32 %v3570_v0, %v1178_v17  ;;  %vm1182_vm11 = vweird.f32 %v3570_v0  ;;  %v1187_v55 = vand.u32 2147483648, %v3528_v58  ;;  %vm1181_vm12 = vweird.f32 %v3528_v58 }
 0x1fa   :  { %v1229_v53 = vsel %vm1228_vm10, %v3631_v2, %v1225_v15  ;;  %v1185_v61 = vand.u32 2147483647, %v3528_v58  ;;  %v1238_v45 = vsub.f32 1.0, %v1237_v31  ;;  %v1277_v21 = vmul.f32 %v1174_v19, %v4085_v46  ;;  %vm1183_vm13 = vmor %vm1181_vm12, %vm1182_vm11 }
 0x1fb   :  { %v1234_v38 = vsel %vm1231_vm9, %v1233_v60, %v1229_v53  ;;  %v1180_v29 = vadd.f32 %v3570_v0, %v1179_v33  ;;  %v1247_v8 = vand.u32 2147483648, %v3607_v48  ;;  %vm1242_vm14 = vweird.f32 %v3642_v43 }
 0x1fc   :  { %v1281_v47 = vmul.f32 %v1234_v38, %v4086_v24  ;;  %v1239_v10 = vmul.f32 %v3642_v43, %v1238_v45  ;;  %v1245_v2 = vand.u32 2147483647, %v3607_v48  ;;  %v1188_v58 = vor.u32 1.1754944e-38, %v1187_v55 }
 0x1fd   :  { %v1184_v56 = vsel %vm1183_vm13, %v3570_v0, %v1180_v29  ;;  %vm1186_vm15 = vcmp.eq.f32.partialorder %v1185_v61, 8.507059e+37  ;;  %vm1241_vm1 = vweird.f32 %v3607_v48  ;;  %v1248_v30 = vor.u32 1.1754944e-38, %v1247_v8  ;;  %v4091_v61 = vld [vmem:[#allocation6_spill] sm:$0xff] }
 0x1fe   :  { %v1297_v26 = vpack.c.bf16 %v1281_v47, %v1277_v21  ;;  %v1240_v4 = vadd.f32 %v3642_v43, %v1239_v10  ;;  %v1189_v50 = vsel %vm1186_vm15, %v1188_v58, %v1184_v56  ;;  %vm1243_vm2 = vmor %vm1241_vm1, %vm1242_vm14  ;;  %vm1246_vm3 = vcmp.eq.f32.partialorder %v1245_v2, 8.507059e+37  ;;  %v4092_v47 = vld [vmem:[#allocation5_spill] sm:$0xff] }
 0x1ff   :  { %v1278_v9 = vmul.f32 %v1189_v50, %v4087_v7 }
 0x200   :  { %1640 = vmatmul.bf16.gmra.mxu2 %v1297_v26  ;;  %v1244_v5 = vsel %vm1243_vm2, %v3642_v43, %v1240_v4 }
 0x201   :  { %v1249_v20 = vsel %vm1246_vm3, %v1248_v30, %v1244_v5 }
 0x202   :  { %v1282_v42 = vmul.f32 %v1249_v20, %v4088_v63 }
 0x204   :  { %v1298_v0 = vpack.c.bf16 %v1282_v42, %v1278_v9 }
 0x206   :  { %1669 = vmatmul.bf16.gmra.mxu3 %v1298_v0 }
 0x213   :  { %v1568_v59 = vpop.f32.mrf.mxu0 }
 0x214   :  { %v1569_v48 = vadd.f32 %v3813_v62, %v1568_v59 }
 0x219   :  { %v1597_v13 = vpop.f32.mrf.mxu1 }
 0x21a   :  { %v1598_v28 = vadd.f32 %v1597_v13, %v1569_v48  ;;  %v4093_v13 = vld [vmem:[#allocation8_spill] sm:$0xff] }
 0x21b   :  { %v1570_v43 = vpop.f32.mrf.mxu0 }
 0x21c   :  { %v1571_v37 = vadd.f32 %v3813_v62, %v1570_v43 }
 0x221   :  { %v1599_v16 = vpop.f32.mrf.mxu1 }
 0x222   :  { %v1600_v25 = vadd.f32 %v1599_v16, %v1571_v37  ;;  %v4094_v16 = vld [vmem:[#allocation7_spill] sm:$0xff] }
 0x229   :  { %v1626_v57 = vpop.f32.mrf.mxu2 }
 0x22a   :  { %v1627_v11 = vadd.f32 %v1626_v57, %v1598_v28 }
 0x22e   :  { %v1655_v39 = vpop.f32.mrf.mxu3 }
 0x22f   :  { %v1656_v12 = vadd.f32 %v1655_v39, %v1627_v11 }
 0x231   :  { %v3818_v14 = vadd.f32 %v1656_v12, %v4089_v22  ;;  %v1628_v1 = vpop.f32.mrf.mxu2 }
 0x232   :  { %v1629_v41 = vadd.f32 %v1628_v1, %v1600_v25 }
 0x233   :  { %v1685_v3 = vsel %vm49_vm0, %v3818_v14, 0.0  ;;  %v1717_v36 = vmul.f32 %v3818_v14, %v3818_v14 }
 0x234   :  { %1686 = vadd.xlane.f32.xlu1 %v1685_v3 }
 0x235   :  { %v1725_v18 = vsel %vm49_vm0, %v1717_v36, 0.0  ;;  %v1573_v44 = vpop.f32.mrf.mxu0 }
 0x236   :  { %v1657_v52 = vpop.f32.mrf.mxu3  ;;  %1726 = vadd.xlane.f32.xlu0 %v1725_v18  ;;  %v1574_v6 = vadd.f32 %v3813_v62, %v1573_v44 }
 0x237   :  { %v1658_v40 = vadd.f32 %v1657_v52, %v1629_v41 }
 0x239   :  { %v3826_v27 = vadd.f32 %v1658_v40, %v4090_v23 }
 0x23b   :  { %v1688_v32 = vsel %vm49_vm0, %v3826_v27, 0.0  ;;  %v1718_v54 = vmul.f32 %v3826_v27, %v3826_v27 }
 0x23c   :  { %1689 = vadd.xlane.f32.xlu2 %v1688_v32 }
 0x23d   :  { %v1728_v51 = vsel %vm49_vm0, %v1718_v54, 0.0  ;;  %v1602_v49 = vpop.f32.mrf.mxu1  ;;  %v1575_v17 = vpop.f32.mrf.mxu0 }
 0x23e   :  { %1729 = vadd.xlane.f32.xlu1 %v1728_v51  ;;  %v1603_v34 = vadd.f32 %v1602_v49, %v1574_v6  ;;  %v1576_v15 = vadd.f32 %v3813_v62, %v1575_v17  ;;  %v4095_v49 = vld [vmem:[#allocation10_spill] sm:$0xff] }
 0x245   :  { %v1604_v33 = vpop.f32.mrf.mxu1 }
 0x246   :  { %v1605_v53 = vadd.f32 %v1604_v33, %v1576_v15 }
 0x24c   :  { %v1631_v35 = vpop.f32.mrf.mxu2 }
 0x24d   :  { %v1632_v19 = vadd.f32 %v1631_v35, %v1603_v34 }
 0x252   :  { %v1660_v31 = vpop.f32.mrf.mxu3 }
 0x253   :  { %v1661_v60 = vadd.f32 %v1660_v31, %v1632_v19 }
 0x254   :  { %v1633_v55 = vpop.f32.mrf.mxu2 }
 0x255   :  { %v3836_v45 = vadd.f32 %v1661_v60, %v4091_v61  ;;  %v1634_v38 = vadd.f32 %v1633_v55, %v1605_v53  ;;  %v1578_v58 = vpop.f32.mrf.mxu0  ;;  %v4096_v60 = vld [vmem:[#allocation9_spill] sm:$0xff] }
 0x256   :  { %v1579_v4 = vadd.f32 %v3813_v62, %v1578_v58 }
 0x257   :  { %v1691_v46 = vsel %vm49_vm0, %v3836_v45, 0.0  ;;  %v1719_v21 = vmul.f32 %v3836_v45, %v3836_v45 }
 0x258   :  { %1692 = vadd.xlane.f32.xlu0 %v1691_v46 }
 0x259   :  { %v1731_v29 = vsel %vm49_vm0, %v1719_v21, 0.0 }
 0x25a   :  { %v1662_v8 = vpop.f32.mrf.mxu3  ;;  %1732 = vadd.xlane.f32.xlu2 %v1731_v29  ;;  %v4097_v29 = vld [vmem:[#allocation2_spill] sm:$0xff] }
 0x25b   :  { %v1663_v24 = vadd.f32 %v1662_v8, %v1634_v38  ;;  %v1607_v50 = vpop.f32.mrf.mxu1 }
 0x25c   :  { %v1608_v5 = vadd.f32 %v1607_v50, %v1579_v4 }
 0x25d   :  { %v3844_v10 = vadd.f32 %v1663_v24, %v4092_v47  ;;  %v1580_v20 = vpop.f32.mrf.mxu0 }
 0x25e   :  { %v1581_v9 = vadd.f32 %v3813_v62, %v1580_v20 }
 0x25f   :  { %v1694_v2 = vsel %vm49_vm0, %v3844_v10, 0.0  ;;  %v1720_v56 = vmul.f32 %v3844_v10, %v3844_v10 }
 0x260   :  { %1695 = vadd.xlane.f32.xlu1 %v1694_v2 }
 0x261   :  { %v1734_v26 = vsel %vm49_vm0, %v1720_v56, 0.0 }
 0x262   :  { %1735 = vadd.xlane.f32.xlu0 %v1734_v26 }
 0x263   :  { %v1609_v0 = vpop.f32.mrf.mxu1 }
 0x264   :  { %v1610_v48 = vadd.f32 %v1609_v0, %v1581_v9 }
 0x268   :  { %v1636_v30 = vpop.f32.mrf.mxu2 }
 0x269   :  { %v1637_v7 = vadd.f32 %v1636_v30, %v1608_v5 }
 0x26f   :  { %v1665_v63 = vpop.f32.mrf.mxu3  ;;  %v1583_v22 = vpop.f32.mrf.mxu0 }
 0x270   :  { %v1666_v42 = vadd.f32 %v1665_v63, %v1637_v7  ;;  %v1638_v59 = vpop.f32.mrf.mxu2  ;;  %v1584_v41 = vadd.f32 %v3813_v62, %v1583_v22 }
 0x271   :  { %v1639_v57 = vadd.f32 %v1638_v59, %v1610_v48 }
 0x272   :  { %v3854_v28 = vadd.f32 %v1666_v42, %v4093_v13 }
 0x274   :  { %v1697_v43 = vsel %vm49_vm0, %v3854_v28, 0.0  ;;  %v1721_v11 = vmul.f32 %v3854_v28, %v3854_v28 }
 0x275   :  { %1698 = vadd.xlane.f32.xlu2 %v1697_v43 }
 0x276   :  { %v1737_v37 = vsel %vm49_vm0, %v1721_v11, 0.0  ;;  %v1612_v3 = vpop.f32.mrf.mxu1 }
 0x277   :  { %v1667_v39 = vpop.f32.mrf.mxu3  ;;  %1738 = vadd.xlane.f32.xlu1 %v1737_v37  ;;  %v1613_v18 = vadd.f32 %v1612_v3, %v1584_v41  ;;  %v1585_v52 = vpop.f32.mrf.mxu0  ;;  %v3895_v37 = vld [vmem:[%s3978_s9] ss:$0 sm:$0xff] }
 0x278   :  { %v1668_v12 = vadd.f32 %v1667_v39, %v1639_v57  ;;  %v1586_v23 = vadd.f32 %v3813_v62, %v1585_v52 }
 0x27a   :  { %v3862_v25 = vadd.f32 %v1668_v12, %v4094_v16  ;;  %v3900_v16 = vld [vmem:[%s3979_s10] ss:$0 sm:$0xff] }
 0x27c   :  { %v1700_v1 = vsel %vm49_vm0, %v3862_v25, 0.0  ;;  %v1722_v38 = vmul.f32 %v3862_v25, %v3862_v25 }
 0x27d   :  { %1701 = vadd.xlane.f32.xlu0 %v1700_v1 }
 0x27e   :  { %v1614_v51 = vpop.f32.mrf.mxu1  ;;  %v1740_v46 = vsel %vm49_vm0, %v1722_v38, 0.0 }
 0x27f   :  { %v1615_v6 = vadd.f32 %v1614_v51, %v1586_v23 }
 0x283   :  { %v1641_v36 = vpop.f32.mrf.mxu2 }
 0x284   :  { %v1642_v40 = vadd.f32 %v1641_v36, %v1613_v18 }
 0x289   :  { %v1670_v32 = vpop.f32.mrf.mxu3 }
 0x28a   :  { %v1671_v54 = vadd.f32 %v1670_v32, %v1642_v40 }
 0x28b   :  { %v1643_v44 = vpop.f32.mrf.mxu2 }
 0x28c   :  { %v3869_v35 = vadd.f32 %v1671_v54, %v4095_v49  ;;  %v1644_v34 = vadd.f32 %v1643_v44, %v1615_v6 }
 0x28e   :  { %v1703_v17 = vsel %vm49_vm0, %v3869_v35, 0.0  ;;  %v1723_v19 = vmul.f32 %v3869_v35, %v3869_v35 }
 0x28f   :  { %1704 = vadd.xlane.f32.xlu1 %v1703_v17 }
 0x290   :  { %v1743_v15 = vsel %vm49_vm0, %v1723_v19, 0.0 }
 0x291   :  { %v1672_v31 = vpop.f32.mrf.mxu3  ;;  %1744 = vadd.xlane.f32.xlu0 %v1743_v15 }
 0x292   :  { %v1673_v62 = vadd.f32 %v1672_v31, %v1644_v34 }
 0x294   :  { %v3877_v33 = vadd.f32 %v1673_v62, %v4096_v60 }
 0x296   :  { %v1706_v55 = vsel %vm49_vm0, %v3877_v33, 0.0  ;;  %v1724_v53 = vmul.f32 %v3877_v33, %v3877_v33 }
 0x297   :  { %1707 = vadd.xlane.f32.xlu2 %v1706_v55 }
 0x298   :  { %v1746_v61 = vsel %vm49_vm0, %v1724_v53, 0.0 }
 0x299   :  { %1747 = vadd.xlane.f32.xlu1 %v1746_v61 }
 0x29f   :  { %1741 = vadd.xlane.f32.xlu2 %v1740_v46 }
 0x2a7   :  { %v1687_v21 = vpop.xlane.xlu1 %1686 }
 0x2a8   :  { %v1709_v8 = vmul.f32 %v1687_v21, %v4097_v29 }
 0x2a9   :  { %v1727_v24 = vpop.xlane.xlu0 %1726 }
 0x2aa   :  { %v1757_v47 = vmul.f32 %v1709_v8, %v1709_v8  ;;  %v1749_v2 = vmul.f32 %v1727_v24, %v4097_v29  ;;  %v1781_v11 = vsub.f32 %v3818_v14, %v1709_v8 }
 0x2ac   :  { %v1765_v56 = vsub.f32 %v1749_v2, %v1757_v47 }
 0x2ae   :  { %v1773_v58 = vmax.f32 %v1765_v56, 0.0 }
 0x2af   :  { %v1690_v26 = vpop.xlane.xlu2 %1689 }
 0x2b0   :  { %v1789_v4 = vadd.f32 1e-05, %v1773_v58  ;;  %v1710_v50 = vmul.f32 %v1690_v26, %v4097_v29 }
 0x2b1   :  { %v1730_v30 = vpop.xlane.xlu1 %1729 }
 0x2b2   :  { %2375 = vrsqrt.f32 %v1789_v4  ;;  %v1758_v5 = vmul.f32 %v1710_v50, %v1710_v50  ;;  %v1750_v20 = vmul.f32 %v1730_v30, %v4097_v29  ;;  %vm1803_vm5 = vweird.f32 %v1789_v4 }
 0x2b3   :  { %v1782_v52 = vsub.f32 %v3826_v27, %v1710_v50 }
 0x2b4   :  { %v1766_v7 = vsub.f32 %v1750_v20, %v1758_v5 }
 0x2b6   :  { %v1774_v9 = vmax.f32 %v1766_v7, 0.0 }
 0x2b8   :  { %v2376_v63 = vpop.eup %2375  ;;  %v1790_v0 = vadd.f32 1e-05, %v1774_v9 }
 0x2b9   :  { %v1798_v42 = vmul.f32 %v2376_v63, %v1789_v4  ;;  %vm1804_vm4 = vweird.f32 %v2376_v63 }
 0x2ba   :  { %2377 = vrsqrt.f32 %v1790_v0  ;;  %vm1805_vm6 = vmor %vm1803_vm5, %vm1804_vm4  ;;  %vm1813_vm8 = vweird.f32 %v1790_v0 }
 0x2bb   :  { %v1799_v59 = vmul.f32 %v2376_v63, %v1798_v42 }
 0x2bd   :  { %v1800_v48 = vmul.f32 0.5, %v1799_v59 }
 0x2bf   :  { %v1801_v13 = vsub.f32 1.5, %v1800_v48 }
 0x2c0   :  { %v2378_v57 = vpop.eup %2377 }
 0x2c1   :  { %v1802_v43 = vmul.f32 %v2376_v63, %v1801_v13  ;;  %v1808_v39 = vmul.f32 %v2378_v57, %v1790_v0  ;;  %vm1814_vm7 = vweird.f32 %v2378_v57 }
 0x2c2   :  { %vm1815_vm9 = vmor %vm1813_vm8, %vm1814_vm7 }
 0x2c3   :  { %v1806_v12 = vsel %vm1805_vm6, %v2376_v63, %v1802_v43  ;;  %v1809_v1 = vmul.f32 %v2378_v57, %v1808_v39 }
 0x2c4   :  { %v1877_v22 = vmul.f32 %v1806_v12, %v1781_v11 }
 0x2c5   :  { %v1810_v3 = vmul.f32 0.5, %v1809_v1 }
 0x2c6   :  { %v1888_v41 = vmul.f32 %v3895_v37, %v1877_v22 }
 0x2c7   :  { %v1811_v36 = vsub.f32 1.5, %v1810_v3 }
 0x2c8   :  { %v1899_v14 = vadd.f32 %v3900_v16, %v1888_v41 }
 0x2c9   :  { %v1812_v18 = vmul.f32 %v2378_v57, %v1811_v36 }
 0x2ca   :  { %1907 = vst.msk [vmem:[%s3980_s11] sm:$0xff] %vm49_vm0, %v1899_v14 }
 0x2cb   :  { %v1693_v40 = vpop.xlane.xlu0 %1692  ;;  %v1816_v23 = vsel %vm1815_vm9, %v2378_v57, %v1812_v18 }
 0x2cc   :  { %v1711_v32 = vmul.f32 %v1693_v40, %v4097_v29  ;;  %v1878_v54 = vmul.f32 %v1816_v23, %v1782_v52 }
 0x2cd   :  { %v1733_v51 = vpop.xlane.xlu2 %1732 }
 0x2ce   :  { %v1759_v44 = vmul.f32 %v1711_v32, %v1711_v32  ;;  %v1751_v6 = vmul.f32 %v1733_v51, %v4097_v29  ;;  %v1889_v49 = vmul.f32 %v3895_v37, %v1878_v54  ;;  %v1783_v58 = vsub.f32 %v3836_v45, %v1711_v32 }
 0x2d0   :  { %v1767_v34 = vsub.f32 %v1751_v6, %v1759_v44  ;;  %v1900_v17 = vadd.f32 %v3900_v16, %v1889_v49 }
 0x2d2   :  { %v1775_v19 = vmax.f32 %v1767_v34, 0.0  ;;  %1908 = vst.msk [vmem:[%s3980_s11 + $0x8] sm:$0xff] %vm49_vm0, %v1900_v17 }
 0x2d3   :  { %v1696_v27 = vpop.xlane.xlu1 %1695 }
 0x2d4   :  { %v1791_v15 = vadd.f32 1e-05, %v1775_v19  ;;  %v1712_v31 = vmul.f32 %v1696_v27, %v4097_v29 }
 0x2d5   :  { %v1736_v62 = vpop.xlane.xlu0 %1735 }
 0x2d6   :  { %2379 = vrsqrt.f32 %v1791_v15  ;;  %v1760_v60 = vmul.f32 %v1712_v31, %v1712_v31  ;;  %v1752_v55 = vmul.f32 %v1736_v62, %v4097_v29  ;;  %vm1823_vm11 = vweird.f32 %v1791_v15 }
 0x2d7   :  { %v1784_v57 = vsub.f32 %v3844_v10, %v1712_v31 }
 0x2d8   :  { %v1768_v53 = vsub.f32 %v1752_v55, %v1760_v60 }
 0x2da   :  { %v1776_v61 = vmax.f32 %v1768_v53, 0.0 }
 0x2dc   :  { %v2380_v38 = vpop.eup %2379  ;;  %v1792_v21 = vadd.f32 1e-05, %v1776_v61 }
 0x2dd   :  { %v1818_v46 = vmul.f32 %v2380_v38, %v1791_v15  ;;  %vm1824_vm10 = vweird.f32 %v2380_v38 }
 0x2de   :  { %2381 = vrsqrt.f32 %v1792_v21  ;;  %vm1825_vm12 = vmor %vm1823_vm11, %vm1824_vm10  ;;  %vm1833_vm14 = vweird.f32 %v1792_v21 }
 0x2df   :  { %v1819_v8 = vmul.f32 %v2380_v38, %v1818_v46 }
 0x2e1   :  { %v1820_v24 = vmul.f32 0.5, %v1819_v8 }
 0x2e3   :  { %v1821_v47 = vsub.f32 1.5, %v1820_v24 }
 0x2e4   :  { %v2382_v2 = vpop.eup %2381 }
 0x2e5   :  { %v1822_v56 = vmul.f32 %v2380_v38, %v1821_v47  ;;  %v1828_v26 = vmul.f32 %v2382_v2, %v1792_v21  ;;  %vm1834_vm13 = vweird.f32 %v2382_v2 }
 0x2e6   :  { %vm1835_vm15 = vmor %vm1833_vm14, %vm1834_vm13 }
 0x2e7   :  { %v1826_v4 = vsel %vm1825_vm12, %v2380_v38, %v1822_v56  ;;  %v1829_v30 = vmul.f32 %v2382_v2, %v1828_v26 }
 0x2e8   :  { %v1879_v50 = vmul.f32 %v1826_v4, %v1783_v58  ;;  %v1699_v5 = vpop.xlane.xlu2 %1698 }
 0x2e9   :  { %v1713_v20 = vmul.f32 %v1699_v5, %v4097_v29  ;;  %v1830_v9 = vmul.f32 0.5, %v1829_v30 }
 0x2ea   :  { %v1890_v7 = vmul.f32 %v3895_v37, %v1879_v50  ;;  %v1739_v63 = vpop.xlane.xlu1 %1738 }
 0x2eb   :  { %v1761_v42 = vmul.f32 %v1713_v20, %v1713_v20  ;;  %v1753_v0 = vmul.f32 %v1739_v63, %v4097_v29  ;;  %v1831_v48 = vsub.f32 1.5, %v1830_v9  ;;  %v1785_v23 = vsub.f32 %v3854_v28, %v1713_v20 }
 0x2ec   :  { %v1901_v59 = vadd.f32 %v3900_v16, %v1890_v7 }
 0x2ed   :  { %v1769_v45 = vsub.f32 %v1753_v0, %v1761_v42  ;;  %v1832_v13 = vmul.f32 %v2382_v2, %v1831_v48 }
 0x2ee   :  { %1909 = vst.msk [vmem:[%s3980_s11 + $0x10] sm:$0xff] %vm49_vm0, %v1901_v59 }
 0x2ef   :  { %v1777_v43 = vmax.f32 %v1769_v45, 0.0  ;;  %v1836_v11 = vsel %vm1835_vm15, %v2382_v2, %v1832_v13 }
 0x2f0   :  { %v1880_v39 = vmul.f32 %v1836_v11, %v1784_v57  ;;  %v1702_v36 = vpop.xlane.xlu0 %1701 }
 0x2f1   :  { %v1793_v12 = vadd.f32 1e-05, %v1777_v43  ;;  %v1714_v53 = vmul.f32 %v1702_v36, %v4097_v29 }
 0x2f2   :  { %v1891_v22 = vmul.f32 %v3895_v37, %v1880_v39 }
 0x2f3   :  { %2383 = vrsqrt.f32 %v1793_v12  ;;  %vm1843_vm2 = vweird.f32 %v1793_v12  ;;  %v1762_v8 = vmul.f32 %v1714_v53, %v1714_v53 }
 0x2f4   :  { %v1902_v1 = vadd.f32 %v3900_v16, %v1891_v22 }
 0x2f6   :  { %1910 = vst.msk [vmem:[%s3980_s11 + $0x18] sm:$0xff] %vm49_vm0, %v1902_v1 }
 0x2f9   :  { %v2384_v41 = vpop.eup %2383 }
 0x2fa   :  { %v1838_v3 = vmul.f32 %v2384_v41, %v1793_v12  ;;  %vm1844_vm1 = vweird.f32 %v2384_v41 }
 0x2fb   :  { %vm1845_vm3 = vmor %vm1843_vm2, %vm1844_vm1 }
 0x2fc   :  { %v1839_v14 = vmul.f32 %v2384_v41, %v1838_v3 }
 0x2fe   :  { %v1840_v10 = vmul.f32 0.5, %v1839_v14  ;;  %v1786_v14 = vsub.f32 %v3862_v25, %v1714_v53 }
 0x300   :  { %v1841_v18 = vsub.f32 1.5, %v1840_v10 }
 0x302   :  { %v1842_v52 = vmul.f32 %v2384_v41, %v1841_v18  ;;  %v1705_v40 = vpop.xlane.xlu1 %1704 }
 0x303   :  { %v1715_v32 = vmul.f32 %v1705_v40, %v4097_v29 }
 0x304   :  { %v1846_v54 = vsel %vm1845_vm3, %v2384_v41, %v1842_v52  ;;  %v1745_v51 = vpop.xlane.xlu0 %1744 }
 0x305   :  { %v1881_v44 = vmul.f32 %v1846_v54, %v1785_v23  ;;  %v1763_v6 = vmul.f32 %v1715_v32, %v1715_v32  ;;  %v1755_v49 = vmul.f32 %v1745_v51, %v4097_v29  ;;  %v1787_v7 = vsub.f32 %v3869_v35, %v1715_v32 }
 0x307   :  { %v1892_v34 = vmul.f32 %v3895_v37, %v1881_v44  ;;  %v1771_v17 = vsub.f32 %v1755_v49, %v1763_v6 }
 0x309   :  { %v1903_v19 = vadd.f32 %v3900_v16, %v1892_v34  ;;  %v1779_v27 = vmax.f32 %v1771_v17, 0.0 }
 0x30a   :  { %v1708_v15 = vpop.xlane.xlu2 %1707 }
 0x30b   :  { %1911 = vst.msk [vmem:[%s3980_s11 + $0x20] sm:$0xff] %vm49_vm0, %v1903_v19  ;;  %v1795_v28 = vadd.f32 1e-05, %v1779_v27  ;;  %v1716_v31 = vmul.f32 %v1708_v15, %v4097_v29 }
 0x30c   :  { %v1748_v62 = vpop.xlane.xlu1 %1747 }
 0x30d   :  { %2385 = vrsqrt.f32 %v1795_v28  ;;  %v1764_v60 = vmul.f32 %v1716_v31, %v1716_v31  ;;  %v1756_v55 = vmul.f32 %v1748_v62, %v4097_v29  ;;  %vm1863_vm5 = vweird.f32 %v1795_v28 }
 0x30e   :  { %v1788_v11 = vsub.f32 %v3877_v33, %v1716_v31 }
 0x30f   :  { %v1772_v61 = vsub.f32 %v1756_v55, %v1764_v60 }
 0x311   :  { %v1780_v38 = vmax.f32 %v1772_v61, 0.0 }
 0x312   :  { %v1742_v46 = vpop.xlane.xlu2 %1741 }
 0x313   :  { %v2386_v21 = vpop.eup %2385  ;;  %v1754_v24 = vmul.f32 %v1742_v46, %v4097_v29  ;;  %v1796_v2 = vadd.f32 1e-05, %v1780_v38 }
 0x314   :  { %v1858_v47 = vmul.f32 %v2386_v21, %v1795_v28  ;;  %vm1864_vm4 = vweird.f32 %v2386_v21 }
 0x315   :  { %v1770_v56 = vsub.f32 %v1754_v24, %v1762_v8  ;;  %2387 = vrsqrt.f32 %v1796_v2  ;;  %vm1865_vm6 = vmor %vm1863_vm5, %vm1864_vm4  ;;  %vm1873_vm8 = vweird.f32 %v1796_v2 }
 0x316   :  { %v1859_v58 = vmul.f32 %v2386_v21, %v1858_v47 }
 0x317   :  { %v1778_v26 = vmax.f32 %v1770_v56, 0.0 }
 0x318   :  { %v1860_v4 = vmul.f32 0.5, %v1859_v58 }
 0x319   :  { %v1794_v50 = vadd.f32 1e-05, %v1778_v26 }
 0x31a   :  { %v1861_v30 = vsub.f32 1.5, %v1860_v4 }
 0x31b   :  { %2389 = vrsqrt.f32 %v1794_v50  ;;  %v2388_v5 = vpop.eup %2387  ;;  %vm1853_vm11 = vweird.f32 %v1794_v50 }
 0x31c   :  { %v1862_v20 = vmul.f32 %v2386_v21, %v1861_v30  ;;  %v1868_v9 = vmul.f32 %v2388_v5, %v1796_v2  ;;  %vm1874_vm7 = vweird.f32 %v2388_v5 }
 0x31d   :  { %vm1875_vm9 = vmor %vm1873_vm8, %vm1874_vm7 }
 0x31e   :  { %v1866_v63 = vsel %vm1865_vm6, %v2386_v21, %v1862_v20  ;;  %v1869_v42 = vmul.f32 %v2388_v5, %v1868_v9 }
 0x31f   :  { %v1883_v29 = vmul.f32 %v1866_v63, %v1787_v7 }
 0x320   :  { %v1870_v48 = vmul.f32 0.5, %v1869_v42 }
 0x321   :  { %v2390_v0 = vpop.eup %2389  ;;  %v1894_v59 = vmul.f32 %v3895_v37, %v1883_v29 }
 0x322   :  { %v1848_v45 = vmul.f32 %v2390_v0, %v1794_v50  ;;  %v1871_v57 = vsub.f32 1.5, %v1870_v48  ;;  %vm1854_vm10 = vweird.f32 %v2390_v0 }
 0x323   :  { %v1905_v13 = vadd.f32 %v3900_v16, %v1894_v59  ;;  %vm1855_vm12 = vmor %vm1853_vm11, %vm1854_vm10 }
 0x324   :  { %v1849_v43 = vmul.f32 %v2390_v0, %v1848_v45  ;;  %v1872_v35 = vmul.f32 %v2388_v5, %v1871_v57 }
 0x325   :  { %1913 = vst.msk [vmem:[%s3980_s11 + $0x30] sm:$0xff] %vm49_vm0, %v1905_v13 }
 0x326   :  { %v1850_v39 = vmul.f32 0.5, %v1849_v43  ;;  %v1876_v12 = vsel %vm1875_vm9, %v2388_v5, %v1872_v35 }
 0x327   :  { %v1884_v22 = vmul.f32 %v1876_v12, %v1788_v11 }
 0x328   :  { %v1851_v1 = vsub.f32 1.5, %v1850_v39 }
 0x329   :  { %v1895_v41 = vmul.f32 %v3895_v37, %v1884_v22 }
 0x32a   :  { %v1852_v3 = vmul.f32 %v2390_v0, %v1851_v1 }
 0x32b   :  { %v1906_v36 = vadd.f32 %v3900_v16, %v1895_v41 }
 0x32c   :  { %v1856_v10 = vsel %vm1855_vm12, %v2390_v0, %v1852_v3 }
 0x32d   :  { %v1882_v18 = vmul.f32 %v1856_v10, %v1786_v14  ;;  %1914 = vst.msk [vmem:[%s3980_s11 + $0x38] sm:$0xff] %vm49_vm0, %v1906_v36 }
 0x32f   :  { %v1893_v33 = vmul.f32 %v3895_v37, %v1882_v18 }
 0x331   :  { %v1904_v52 = vadd.f32 %v3900_v16, %v1893_v33 }
 0x333   :  { %1912 = vst.msk [vmem:[%s3980_s11 + $0x28] sm:$0xff] %vm49_vm0, %v1904_v52 }

</bundles_post_ra>
